<compile_context>
chip_gen: v7x
topology: tpu7x:2x2x1
jax: 0.10.0
libtpu: 0.0.40
codegen_flags: <defaults>
</compile_context>

<pallas_src>
import functools

import jax
import jax.numpy as jnp
from jax.experimental import pallas as pl
from jax.experimental.pallas import tpu as pltpu


# ---------------------------------------------------------------------------
# Fused Block kernel: `batch_block` batch elements per grid step.
#   x_ref    : (Bblk, T, C)  residual stream input
#   mask_ref : (T, T)        additive causal bias (0 / -1e30), f32
#   wqkv_ref : (C, 3C)       fused [Q|K|V] weights, LN1 affine + attn scale
#                            folded in, bf16
#   bqkv_ref : (1, 3C)       folded QKV bias (from LN1 beta), f32
#   wp_ref   : (H, hs, C)    output projection W^T split per head, bf16
#   bp_ref   : (1, C)        projection bias, f32
#   w1_ref   : (C, 4C)       FFN Linear1 W^T with LN2 affine folded in, bf16
#   bf1_ref  : (1, 4C)       folded FFN Linear1 bias, f32
#   w2_ref   : (4C, C)       FFN Linear2 W^T, bf16
#   bf2_ref  : (1, C)        FFN Linear2 bias, f32
#   o_ref    : (Bblk, T, C)  residual stream output
# ---------------------------------------------------------------------------
def _block_kernel(x_ref, mask_ref, wqkv_ref, bqkv_ref, wp_ref, bp_ref,
                  w1_ref, bf1_ref, w2_ref, bf2_ref, o_ref,
                  *, num_heads, head_size, eps):
    bblk, T, C = x_ref.shape
    rows = bblk * T

    # Flattened (rows, C) view of the residual stream for token-parallel ops.
    x = x_ref[...].astype(jnp.float32).reshape(rows, C)

    # ---- LayerNorm 1 (affine folded into wqkv/bqkv offline) ---------------
    mu1 = jnp.mean(x, axis=-1, keepdims=True)
    var1 = jnp.mean(jnp.square(x - mu1), axis=-1, keepdims=True)
    n1 = (x - mu1) * jax.lax.rsqrt(var1 + eps)                  # (rows, C) f32

    # ---- fused QKV projection: ONE bf16 matmul for all heads --------------
    qkv = jnp.dot(n1.astype(jnp.bfloat16), wqkv_ref[...],
                  preferred_element_type=jnp.float32) + bqkv_ref[...]
    qkv = qkv.reshape(bblk, T, 3 * C)                           # (Bblk, T, 3C)

    mask_bias = mask_ref[...]                                   # (T, T) f32

    # ---- per-head attention, accumulated straight into the projection -----
    # sa = bias + sum_h (softmax(q_h k_h^T + mask) v_h) @ Wproj_rows_h
    sa = jnp.broadcast_to(bp_ref[...].astype(jnp.float32), (rows, C))
    for h in range(num_heads):
        lo = h * head_size
        q = qkv[:, :, lo:lo + head_size].astype(jnp.bfloat16)           # scale pre-folded
        k = qkv[:, :, C + lo:C + lo + head_size].astype(jnp.bfloat16)
        v = qkv[:, :, 2 * C + lo:2 * C + lo + head_size].astype(jnp.bfloat16)

        s = jnp.einsum('bqd,bkd->bqk', q, k,
                       preferred_element_type=jnp.float32) + mask_bias  # (Bblk,T,T)
        s = s - jnp.max(s, axis=-1, keepdims=True)
        p = jnp.exp(s)
        p = p * pl.reciprocal(jnp.sum(p, axis=-1, keepdims=True), approx=True)
        # TODO(synk): attention dropout skipped (identity in eval mode)
        o_h = jnp.einsum('bqk,bkd->bqd', p.astype(jnp.bfloat16), v,
                         preferred_element_type=jnp.float32)            # (Bblk,T,hs)
        sa = sa + jnp.dot(o_h.reshape(rows, head_size).astype(jnp.bfloat16),
                          wp_ref[h],                                    # (hs, C)
                          preferred_element_type=jnp.float32)

    x1 = x + sa                                                 # residual 1

    # ---- LayerNorm 2 (affine folded into w1/bf1 offline) ------------------
    mu2 = jnp.mean(x1, axis=-1, keepdims=True)
    var2 = jnp.mean(jnp.square(x1 - mu2), axis=-1, keepdims=True)
    n2 = (x1 - mu2) * jax.lax.rsqrt(var2 + eps)

    # ---- FeedForward (Linear -> ReLU -> Linear) + residual 2 ---------------
    ff = jnp.dot(n2.astype(jnp.bfloat16), w1_ref[...],
                 preferred_element_type=jnp.float32) + bf1_ref[...]
    ff = jnp.maximum(ff, 0.0)
    ff = jnp.dot(ff.astype(jnp.bfloat16), w2_ref[...],
                 preferred_element_type=jnp.float32) + bf2_ref[...]
    # TODO(synk): projection / FFN dropout skipped (identity in eval mode)

    o_ref[...] = (x1 + ff).reshape(bblk, T, C).astype(o_ref.dtype)


# ---------------------------------------------------------------------------
# One-time parameter preparation: weight transposes, QKV fusion, attention
# scale folding, LayerNorm-affine folding, bf16 cast, causal-bias build.
# Done once, NOT on every forward call.
# ---------------------------------------------------------------------------
def prepare_block_params(wq, wk, wv, w_proj, b_proj,
                         ln1_g, ln1_b, ln2_g, ln2_b,
                         w_ff1, b_ff1, w_ff2, b_ff2,
                         *, block_size, weight_dtype=jnp.bfloat16):
    H, hs, C = wq.shape
    hidden = w_ff1.shape[0]
    scale = float(hs) ** -0.5

    def fuse(w):  # (H, hs, C) PyTorch layout -> (C, H*hs) column form
        return jnp.transpose(w, (2, 0, 1)).reshape(C, H * hs)

    # Fused [Q|K|V]; attention scale folded into the Q columns.
    w_qkv = jnp.concatenate([fuse(wq) * scale, fuse(wk), fuse(wv)], axis=1)
    # Fold LayerNorm1 affine: (z*g1 + b1) @ W == z @ (diag(g1) W) + b1 @ W.
    b_qkv = (ln1_b[None, :] @ w_qkv).astype(jnp.float32)         # (1, 3C)
    w_qkv = ln1_g[:, None] * w_qkv

    # Output projection W^T, split per head so the kernel indexes the leading
    # dim instead of taking 16-lane sub-slices.
    w_proj_heads = w_proj.T.reshape(H, hs, C)

    # Fold LayerNorm2 affine into FFN Linear1.
    w1_t = w_ff1.T                                               # (C, hidden)
    b1 = (b_ff1[None, :] + ln2_b[None, :] @ w1_t).astype(jnp.float32)
    w1_t = ln2_g[:, None] * w1_t

    # Additive causal bias (finite, so fully-masked rows can never NaN).
    tril = jnp.tril(jnp.ones((block_size, block_size), dtype=bool))
    mask_bias = jnp.where(tril, 0.0, -1e30).astype(jnp.float32)

    return dict(
        num_heads=H, head_size=hs, hidden=hidden,
        mask_bias=mask_bias,
        w_qkv=w_qkv.astype(weight_dtype), b_qkv=b_qkv,
        w_proj_heads=w_proj_heads.astype(weight_dtype),
        b_proj=b_proj.reshape(1, C).astype(jnp.float32),
        w1_t=w1_t.astype(weight_dtype), b1=b1,
        w2_t=w_ff2.T.astype(weight_dtype),
        b2=b_ff2.reshape(1, C).astype(jnp.float32),
    )


def _choose_batch_block(B, T, target_rows=256):
    """Largest divisor of B such that batch_block*T ~ target MXU rows, while
    keeping >=2 grid steps when possible (v7x has 2 TensorCores)."""
    cap = max(1, target_rows // max(T, 1))
    fitting = [d for d in range(1, B + 1) if B % d == 0 and d <= cap]
    bblk = max(fitting) if fitting else 1
    if B // bblk < 2:
        two_step = [d for d in fitting if B // d >= 2]
        if two_step:
            bblk = max(two_step)
    return bblk


def block_forward(x, params, *, batch_block=None):
    """Forward pass of Block (eval mode).  x: (B, T, C)."""
    B, T, C = x.shape
    H = params["num_heads"]
    hs = params["head_size"]
    hidden = params["hidden"]
    assert H * hs == C

    if batch_block is None:
        batch_block = _choose_batch_block(B, T)
    assert B % batch_block == 0
    grid = (B // batch_block,)

    # Static slice of the precomputed causal bias (mirrors tril[:T, :T]).
    mask_bias = params["mask_bias"][:T, :T]

    kernel = functools.partial(_block_kernel, num_heads=H, head_size=hs,
                               eps=1e-5)

    def wspec(shape):  # grid-invariant operand (weights / biases / mask)
        return pl.BlockSpec(shape, lambda b, _n=len(shape): (0,) * _n)

    return pl.pallas_call(
        kernel,
        out_shape=jax.ShapeDtypeStruct((B, T, C), x.dtype),
        grid_spec=pltpu.PrefetchScalarGridSpec(
            num_scalar_prefetch=0,
            grid=grid,
            in_specs=[
                pl.BlockSpec((batch_block, T, C), lambda b: (b, 0, 0)),  # x
                wspec((T, T)),                                  # causal bias
                wspec((C, 3 * C)), wspec((1, 3 * C)),           # fused QKV W, b
                wspec((H, hs, C)), wspec((1, C)),               # proj W^T heads, b
                wspec((C, hidden)), wspec((1, hidden)),         # FFN W1^T, b1
                wspec((hidden, C)), wspec((1, C)),              # FFN W2^T, b2
            ],
            out_specs=pl.BlockSpec((batch_block, T, C), lambda b: (b, 0, 0)),
        ),
        compiler_params=pltpu.CompilerParams(
            dimension_semantics=("parallel",),
            vmem_limit_bytes=32 * 1024 * 1024),
    )(x,
      mask_bias,
      params["w_qkv"], params["b_qkv"],
      params["w_proj_heads"], params["b_proj"],
      params["w1_t"], params["b1"],
      params["w2_t"], params["b2"])


if __name__ == "__main__":
    # Small shapes consistent with the module (n_embd = n_head * head_size).
    B, T = 16, 16
    n_head, head_size = 4, 16
    n_embd = n_head * head_size          # 64
    hidden = 4 * n_embd                  # 256
    block_size = 32                      # >= T; mask sliced like tril[:T,:T]

    key = jax.random.PRNGKey(0)
    (kx, kq, kk, kv, kp, kpb, kg1, kb1, kg2, kb2,
     kw1, kbw1, kw2, kbw2) = jax.random.split(key, 14)

    x = jax.random.normal(kx, (B, T, n_embd), dtype=jnp.float32)

    # PyTorch-layout parameters (Linear weight = (out, in)), deterministic.
    s_c = 1.0 / jnp.sqrt(jnp.float32(n_embd))
    s_h = 1.0 / jnp.sqrt(jnp.float32(hidden))
    wq = jax.random.uniform(kq, (n_head, head_size, n_embd),
                            minval=-s_c, maxval=s_c, dtype=jnp.float32)
    wk = jax.random.uniform(kk, (n_head, head_size, n_embd),
                            minval=-s_c, maxval=s_c, dtype=jnp.float32)
    wv = jax.random.uniform(kv, (n_head, head_size, n_embd),
                            minval=-s_c, maxval=s_c, dtype=jnp.float32)
    w_proj = jax.random.uniform(kp, (n_embd, n_embd),
                                minval=-s_c, maxval=s_c, dtype=jnp.float32)
    b_proj = jax.random.uniform(kpb, (n_embd,),
                                minval=-s_c, maxval=s_c, dtype=jnp.float32)
    ln1_g = 1.0 + 0.1 * jax.random.normal(kg1, (n_embd,), dtype=jnp.float32)
    ln1_b = 0.1 * jax.random.normal(kb1, (n_embd,), dtype=jnp.float32)
    ln2_g = 1.0 + 0.1 * jax.random.normal(kg2, (n_embd,), dtype=jnp.float32)
    ln2_b = 0.1 * jax.random.normal(kb2, (n_embd,), dtype=jnp.float32)
    w_ff1 = jax.random.uniform(kw1, (hidden, n_embd),
                               minval=-s_c, maxval=s_c, dtype=jnp.float32)
    b_ff1 = jax.random.uniform(kbw1, (hidden,),
                               minval=-s_c, maxval=s_c, dtype=jnp.float32)
    w_ff2 = jax.random.uniform(kw2, (n_embd, hidden),
                               minval=-s_h, maxval=s_h, dtype=jnp.float32)
    b_ff2 = jax.random.uniform(kbw2, (n_embd,),
                               minval=-s_h, maxval=s_h, dtype=jnp.float32)

    params = prepare_block_params(wq, wk, wv, w_proj, b_proj,
                                  ln1_g, ln1_b, ln2_g, ln2_b,
                                  w_ff1, b_ff1, w_ff2, b_ff2,
                                  block_size=block_size)

    out = block_forward(x, params)
    out = jax.block_until_ready(out)
    assert out.shape == (B, T, n_embd)

    # Pure-JAX f32 reference (PyTorch Block, eval mode, dropout = identity).
    def ref_block(x):
        def layernorm(z, g, b):
            mu = jnp.mean(z, axis=-1, keepdims=True)
            var = jnp.mean((z - mu) ** 2, axis=-1, keepdims=True)
            return (z - mu) / jnp.sqrt(var + 1e-5) * g + b

        scale = head_size ** -0.5
        mask = jnp.tril(jnp.ones((T, T), dtype=bool))

        h1 = layernorm(x, ln1_g, ln1_b)
        outs = []
        for h in range(n_head):
            q = h1 @ wq[h].T
            k = h1 @ wk[h].T
            v = h1 @ wv[h].T
            wei = (q @ jnp.swapaxes(k, -2, -1)) * scale
            wei = jnp.where(mask, wei, -jnp.inf)
            wei = jax.nn.softmax(wei, axis=-1)
            outs.append(wei @ v)
        cat = jnp.concatenate(outs, axis=-1)
        x1 = x + (cat @ w_proj.T + b_proj)

        h2 = layernorm(x1, ln2_g, ln2_b)
        ff = jnp.maximum(h2 @ w_ff1.T + b_ff1, 0.0) @ w_ff2.T + b_ff2
        return x1 + ff

    ref_out = ref_block(x)
    # Tolerance accounts for bf16 matmul operands (f32 accumulation) and the
    # EUP approximate reciprocal in the softmax denominator.
    assert jnp.allclose(out, ref_out, atol=5e-2, rtol=5e-2), (
        float(jnp.max(jnp.abs(out - ref_out))))

    print("KERNEL_OK")
</pallas_src>

<mosaic_0001>
module attributes {stable_mosaic.version = 11 : i64} {
  func.func @_block_kernel(%arg0: i32, %arg1: memref<8x16x64xf32, #tpu.memory_space<vmem>>, %arg2: memref<16x16xf32, #tpu.memory_space<vmem>>, %arg3: memref<64x192xbf16, #tpu.memory_space<vmem>>, %arg4: memref<1x192xf32, #tpu.memory_space<vmem>>, %arg5: memref<4x16x64xbf16, #tpu.memory_space<vmem>>, %arg6: memref<1x64xf32, #tpu.memory_space<vmem>>, %arg7: memref<64x256xbf16, #tpu.memory_space<vmem>>, %arg8: memref<1x256xf32, #tpu.memory_space<vmem>>, %arg9: memref<256x64xbf16, #tpu.memory_space<vmem>>, %arg10: memref<1x64xf32, #tpu.memory_space<vmem>>, %arg11: memref<8x16x64xf32, #tpu.memory_space<vmem>>) attributes {dimension_semantics = [#tpu.dimension_semantics<parallel>], iteration_bounds = array<i64: 2>, scalar_prefetch = 0 : i64, scratch_operands = 0 : i64, tpu.core_type = #tpu.core_type<tc>, window_params = [{transform_indices = @transform_0, window_bounds = array<i64: 8, 16, 64>}, {pipeline_mode = #tpu.pipeline_mode<synchronous>, transform_indices = @transform_1, window_bounds = array<i64: 16, 16>}, {pipeline_mode = #tpu.pipeline_mode<synchronous>, transform_indices = @transform_2, window_bounds = array<i64: 64, 192>}, {pipeline_mode = #tpu.pipeline_mode<synchronous>, transform_indices = @transform_3, window_bounds = array<i64: 1, 192>}, {pipeline_mode = #tpu.pipeline_mode<synchronous>, transform_indices = @transform_4, window_bounds = array<i64: 4, 16, 64>}, {pipeline_mode = #tpu.pipeline_mode<synchronous>, transform_indices = @transform_5, window_bounds = array<i64: 1, 64>}, {pipeline_mode = #tpu.pipeline_mode<synchronous>, transform_indices = @transform_6, window_bounds = array<i64: 64, 256>}, {pipeline_mode = #tpu.pipeline_mode<synchronous>, transform_indices = @transform_7, window_bounds = array<i64: 1, 256>}, {pipeline_mode = #tpu.pipeline_mode<synchronous>, transform_indices = @transform_8, window_bounds = array<i64: 256, 64>}, {pipeline_mode = #tpu.pipeline_mode<synchronous>, transform_indices = @transform_9, window_bounds = array<i64: 1, 64>}, {transform_indices = @transform_10, window_bounds = array<i64: 8, 16, 64>}]} {
    %c0 = arith.constant 0 : index
    %c0_0 = arith.constant 0 : index
    %c0_1 = arith.constant 0 : index
    %0 = vector.load %arg1[%c0, %c0_0, %c0_1] : memref<8x16x64xf32, #tpu.memory_space<vmem>>, vector<8x16x64xf32>
    %1 = vector.shape_cast %0 : vector<8x16x64xf32> to vector<128x64xf32>
    %cst = arith.constant dense<0.000000e+00> : vector<128xf32>
    %2 = vector.multi_reduction <add>, %1, %cst [1] : vector<128x64xf32> to vector<128xf32>
    %3 = vector.shape_cast %2 : vector<128xf32> to vector<128x1xf32>
    %cst_2 = arith.constant 6.400000e+01 : f32
    %4 = vector.broadcast %cst_2 : f32 to vector<128x1xf32>
    %5 = arith.divf %3, %4 : vector<128x1xf32>
    %6 = vector.broadcast %5 : vector<128x1xf32> to vector<128x64xf32>
    %7 = arith.subf %1, %6 : vector<128x64xf32>
    %8 = arith.mulf %7, %7 : vector<128x64xf32>
    %cst_3 = arith.constant dense<0.000000e+00> : vector<128xf32>
    %9 = vector.multi_reduction <add>, %8, %cst_3 [1] : vector<128x64xf32> to vector<128xf32>
    %10 = vector.shape_cast %9 : vector<128xf32> to vector<128x1xf32>
    %cst_4 = arith.constant 6.400000e+01 : f32
    %11 = vector.broadcast %cst_4 : f32 to vector<128x1xf32>
    %12 = arith.divf %10, %11 : vector<128x1xf32>
    %13 = vector.broadcast %5 : vector<128x1xf32> to vector<128x64xf32>
    %14 = arith.subf %1, %13 : vector<128x64xf32>
    %cst_5 = arith.constant 9.99999974E-6 : f32
    %15 = vector.broadcast %cst_5 : f32 to vector<128x1xf32>
    %16 = arith.addf %12, %15 : vector<128x1xf32>
    %17 = math.rsqrt %16 : vector<128x1xf32>
    %18 = vector.broadcast %17 : vector<128x1xf32> to vector<128x64xf32>
    %19 = arith.mulf %14, %18 : vector<128x64xf32>
    %20 = arith.truncf %19 : vector<128x64xf32> to vector<128x64xbf16>
    %c0_6 = arith.constant 0 : index
    %c0_7 = arith.constant 0 : index
    %21 = vector.load %arg3[%c0_6, %c0_7] : memref<64x192xbf16, #tpu.memory_space<vmem>>, vector<64x192xbf16>
    %cst_8 = arith.constant dense<0.000000e+00> : vector<128x192xf32>
    %22 = tpu.matmul %20, %21, %cst_8 {dimension_numbers = #tpu.dot_dimension_numbers<[1], [0], [0], [1], [0, 0, 1, 1], [], []>} : vector<128x64xbf16>, vector<64x192xbf16>, vector<128x192xf32> -> vector<128x192xf32>
    %c0_9 = arith.constant 0 : index
    %c0_10 = arith.constant 0 : index
    %23 = vector.load %arg4[%c0_9, %c0_10] : memref<1x192xf32, #tpu.memory_space<vmem>>, vector<1x192xf32>
    %24 = vector.broadcast %23 : vector<1x192xf32> to vector<128x192xf32>
    %25 = arith.addf %22, %24 : vector<128x192xf32>
    %26 = vector.shape_cast %25 : vector<128x192xf32> to vector<8x16x192xf32>
    %c0_11 = arith.constant 0 : index
    %c0_12 = arith.constant 0 : index
    %27 = vector.load %arg2[%c0_11, %c0_12] : memref<16x16xf32, #tpu.memory_space<vmem>>, vector<16x16xf32>
    %c0_13 = arith.constant 0 : index
    %c0_14 = arith.constant 0 : index
    %28 = vector.load %arg6[%c0_13, %c0_14] : memref<1x64xf32, #tpu.memory_space<vmem>>, vector<1x64xf32>
    %29 = vector.shape_cast %28 : vector<1x64xf32> to vector<1x64xf32>
    %30 = vector.broadcast %29 : vector<1x64xf32> to vector<128x64xf32>
    %31 = vector.extract_strided_slice %26 {offsets = [0, 0, 0], sizes = [8, 16, 16], strides = [1, 1, 1]} : vector<8x16x192xf32> to vector<8x16x16xf32>
    %32 = arith.truncf %31 : vector<8x16x16xf32> to vector<8x16x16xbf16>
    %33 = vector.extract_strided_slice %26 {offsets = [0, 0, 64], sizes = [8, 16, 16], strides = [1, 1, 1]} : vector<8x16x192xf32> to vector<8x16x16xf32>
    %34 = arith.truncf %33 : vector<8x16x16xf32> to vector<8x16x16xbf16>
    %35 = vector.extract_strided_slice %26 {offsets = [0, 0, 128], sizes = [8, 16, 16], strides = [1, 1, 1]} : vector<8x16x192xf32> to vector<8x16x16xf32>
    %36 = arith.truncf %35 : vector<8x16x16xf32> to vector<8x16x16xbf16>
    "tpu.trace_start"() <{level = 10 : i32, message = "bqd,bkd->bqk"}> : () -> ()
    %cst_15 = arith.constant dense<0.000000e+00> : vector<8x16x16xf32>
    %37 = tpu.matmul %32, %34, %cst_15 {dimension_numbers = #tpu.dot_dimension_numbers<[2], [2], [1], [1], [0, 0, 0, 1, 1, 1], [0], [0]>} : vector<8x16x16xbf16>, vector<8x16x16xbf16>, vector<8x16x16xf32> -> vector<8x16x16xf32>
    "tpu.trace_stop"() : () -> ()
    %38 = vector.shape_cast %27 : vector<16x16xf32> to vector<1x16x16xf32>
    %39 = vector.broadcast %38 : vector<1x16x16xf32> to vector<8x16x16xf32>
    %40 = arith.addf %37, %39 : vector<8x16x16xf32>
    %cst_16 = arith.constant dense<0xFF800000> : vector<8x16xf32>
    %41 = vector.multi_reduction <maximumf>, %40, %cst_16 [2] : vector<8x16x16xf32> to vector<8x16xf32>
    %42 = vector.shape_cast %41 : vector<8x16xf32> to vector<8x16x1xf32>
    %43 = vector.broadcast %42 : vector<8x16x1xf32> to vector<8x16x16xf32>
    %44 = arith.subf %40, %43 : vector<8x16x16xf32>
    %45 = math.exp %44 : vector<8x16x16xf32>
    %cst_17 = arith.constant dense<0.000000e+00> : vector<8x16xf32>
    %46 = vector.multi_reduction <add>, %45, %cst_17 [2] : vector<8x16x16xf32> to vector<8x16xf32>
    %47 = vector.shape_cast %46 : vector<8x16xf32> to vector<8x16x1xf32>
    %48 = tpu.reciprocal %47 {approx = true} : vector<8x16x1xf32> -> vector<8x16x1xf32>
    %49 = vector.broadcast %48 : vector<8x16x1xf32> to vector<8x16x16xf32>
    %50 = arith.mulf %45, %49 : vector<8x16x16xf32>
    %51 = arith.truncf %50 : vector<8x16x16xf32> to vector<8x16x16xbf16>
    "tpu.trace_start"() <{level = 10 : i32, message = "bqk,bkd->bqd"}> : () -> ()
    %cst_18 = arith.constant dense<0.000000e+00> : vector<8x16x16xf32>
    %52 = tpu.matmul %51, %36, %cst_18 {dimension_numbers = #tpu.dot_dimension_numbers<[2], [1], [1], [2], [0, 0, 0, 1, 1, 2], [0], [0]>} : vector<8x16x16xbf16>, vector<8x16x16xbf16>, vector<8x16x16xf32> -> vector<8x16x16xf32>
    "tpu.trace_stop"() : () -> ()
    %53 = vector.shape_cast %52 : vector<8x16x16xf32> to vector<128x16xf32>
    %54 = arith.truncf %53 : vector<128x16xf32> to vector<128x16xbf16>
    %c0_19 = arith.constant 0 : index
    %c0_20 = arith.constant 0 : index
    %c0_21 = arith.constant 0 : index
    %55 = vector.load %arg5[%c0_19, %c0_20, %c0_21] : memref<4x16x64xbf16, #tpu.memory_space<vmem>>, vector<1x16x64xbf16>
    %56 = vector.shape_cast %55 : vector<1x16x64xbf16> to vector<16x64xbf16>
    %cst_22 = arith.constant dense<0.000000e+00> : vector<128x64xf32>
    %57 = tpu.matmul %54, %56, %cst_22 {dimension_numbers = #tpu.dot_dimension_numbers<[1], [0], [0], [1], [0, 0, 1, 1], [], []>} : vector<128x16xbf16>, vector<16x64xbf16>, vector<128x64xf32> -> vector<128x64xf32>
    %58 = arith.addf %30, %57 : vector<128x64xf32>
    %59 = vector.extract_strided_slice %26 {offsets = [0, 0, 16], sizes = [8, 16, 16], strides = [1, 1, 1]} : vector<8x16x192xf32> to vector<8x16x16xf32>
    %60 = arith.truncf %59 : vector<8x16x16xf32> to vector<8x16x16xbf16>
    %61 = vector.extract_strided_slice %26 {offsets = [0, 0, 80], sizes = [8, 16, 16], strides = [1, 1, 1]} : vector<8x16x192xf32> to vector<8x16x16xf32>
    %62 = arith.truncf %61 : vector<8x16x16xf32> to vector<8x16x16xbf16>
    %63 = vector.extract_strided_slice %26 {offsets = [0, 0, 144], sizes = [8, 16, 16], strides = [1, 1, 1]} : vector<8x16x192xf32> to vector<8x16x16xf32>
    %64 = arith.truncf %63 : vector<8x16x16xf32> to vector<8x16x16xbf16>
    "tpu.trace_start"() <{level = 10 : i32, message = "bqd,bkd->bqk"}> : () -> ()
    %cst_23 = arith.constant dense<0.000000e+00> : vector<8x16x16xf32>
    %65 = tpu.matmul %60, %62, %cst_23 {dimension_numbers = #tpu.dot_dimension_numbers<[2], [2], [1], [1], [0, 0, 0, 1, 1, 1], [0], [0]>} : vector<8x16x16xbf16>, vector<8x16x16xbf16>, vector<8x16x16xf32> -> vector<8x16x16xf32>
    "tpu.trace_stop"() : () -> ()
    %66 = vector.shape_cast %27 : vector<16x16xf32> to vector<1x16x16xf32>
    %67 = vector.broadcast %66 : vector<1x16x16xf32> to vector<8x16x16xf32>
    %68 = arith.addf %65, %67 : vector<8x16x16xf32>
    %cst_24 = arith.constant dense<0xFF800000> : vector<8x16xf32>
    %69 = vector.multi_reduction <maximumf>, %68, %cst_24 [2] : vector<8x16x16xf32> to vector<8x16xf32>
    %70 = vector.shape_cast %69 : vector<8x16xf32> to vector<8x16x1xf32>
    %71 = vector.broadcast %70 : vector<8x16x1xf32> to vector<8x16x16xf32>
    %72 = arith.subf %68, %71 : vector<8x16x16xf32>
    %73 = math.exp %72 : vector<8x16x16xf32>
    %cst_25 = arith.constant dense<0.000000e+00> : vector<8x16xf32>
    %74 = vector.multi_reduction <add>, %73, %cst_25 [2] : vector<8x16x16xf32> to vector<8x16xf32>
    %75 = vector.shape_cast %74 : vector<8x16xf32> to vector<8x16x1xf32>
    %76 = tpu.reciprocal %75 {approx = true} : vector<8x16x1xf32> -> vector<8x16x1xf32>
    %77 = vector.broadcast %76 : vector<8x16x1xf32> to vector<8x16x16xf32>
    %78 = arith.mulf %73, %77 : vector<8x16x16xf32>
    %79 = arith.truncf %78 : vector<8x16x16xf32> to vector<8x16x16xbf16>
    "tpu.trace_start"() <{level = 10 : i32, message = "bqk,bkd->bqd"}> : () -> ()
    %cst_26 = arith.constant dense<0.000000e+00> : vector<8x16x16xf32>
    %80 = tpu.matmul %79, %64, %cst_26 {dimension_numbers = #tpu.dot_dimension_numbers<[2], [1], [1], [2], [0, 0, 0, 1, 1, 2], [0], [0]>} : vector<8x16x16xbf16>, vector<8x16x16xbf16>, vector<8x16x16xf32> -> vector<8x16x16xf32>
    "tpu.trace_stop"() : () -> ()
    %81 = vector.shape_cast %80 : vector<8x16x16xf32> to vector<128x16xf32>
    %82 = arith.truncf %81 : vector<128x16xf32> to vector<128x16xbf16>
    %c1 = arith.constant 1 : index
    %c0_27 = arith.constant 0 : index
    %c0_28 = arith.constant 0 : index
    %83 = vector.load %arg5[%c1, %c0_27, %c0_28] : memref<4x16x64xbf16, #tpu.memory_space<vmem>>, vector<1x16x64xbf16>
    %84 = vector.shape_cast %83 : vector<1x16x64xbf16> to vector<16x64xbf16>
    %cst_29 = arith.constant dense<0.000000e+00> : vector<128x64xf32>
    %85 = tpu.matmul %82, %84, %cst_29 {dimension_numbers = #tpu.dot_dimension_numbers<[1], [0], [0], [1], [0, 0, 1, 1], [], []>} : vector<128x16xbf16>, vector<16x64xbf16>, vector<128x64xf32> -> vector<128x64xf32>
    %86 = arith.addf %58, %85 : vector<128x64xf32>
    %87 = vector.extract_strided_slice %26 {offsets = [0, 0, 32], sizes = [8, 16, 16], strides = [1, 1, 1]} : vector<8x16x192xf32> to vector<8x16x16xf32>
    %88 = arith.truncf %87 : vector<8x16x16xf32> to vector<8x16x16xbf16>
    %89 = vector.extract_strided_slice %26 {offsets = [0, 0, 96], sizes = [8, 16, 16], strides = [1, 1, 1]} : vector<8x16x192xf32> to vector<8x16x16xf32>
    %90 = arith.truncf %89 : vector<8x16x16xf32> to vector<8x16x16xbf16>
    %91 = vector.extract_strided_slice %26 {offsets = [0, 0, 160], sizes = [8, 16, 16], strides = [1, 1, 1]} : vector<8x16x192xf32> to vector<8x16x16xf32>
    %92 = arith.truncf %91 : vector<8x16x16xf32> to vector<8x16x16xbf16>
    "tpu.trace_start"() <{level = 10 : i32, message = "bqd,bkd->bqk"}> : () -> ()
    %cst_30 = arith.constant dense<0.000000e+00> : vector<8x16x16xf32>
    %93 = tpu.matmul %88, %90, %cst_30 {dimension_numbers = #tpu.dot_dimension_numbers<[2], [2], [1], [1], [0, 0, 0, 1, 1, 1], [0], [0]>} : vector<8x16x16xbf16>, vector<8x16x16xbf16>, vector<8x16x16xf32> -> vector<8x16x16xf32>
    "tpu.trace_stop"() : () -> ()
    %94 = vector.shape_cast %27 : vector<16x16xf32> to vector<1x16x16xf32>
    %95 = vector.broadcast %94 : vector<1x16x16xf32> to vector<8x16x16xf32>
    %96 = arith.addf %93, %95 : vector<8x16x16xf32>
    %cst_31 = arith.constant dense<0xFF800000> : vector<8x16xf32>
    %97 = vector.multi_reduction <maximumf>, %96, %cst_31 [2] : vector<8x16x16xf32> to vector<8x16xf32>
    %98 = vector.shape_cast %97 : vector<8x16xf32> to vector<8x16x1xf32>
    %99 = vector.broadcast %98 : vector<8x16x1xf32> to vector<8x16x16xf32>
    %100 = arith.subf %96, %99 : vector<8x16x16xf32>
    %101 = math.exp %100 : vector<8x16x16xf32>
    %cst_32 = arith.constant dense<0.000000e+00> : vector<8x16xf32>
    %102 = vector.multi_reduction <add>, %101, %cst_32 [2] : vector<8x16x16xf32> to vector<8x16xf32>
    %103 = vector.shape_cast %102 : vector<8x16xf32> to vector<8x16x1xf32>
    %104 = tpu.reciprocal %103 {approx = true} : vector<8x16x1xf32> -> vector<8x16x1xf32>
    %105 = vector.broadcast %104 : vector<8x16x1xf32> to vector<8x16x16xf32>
    %106 = arith.mulf %101, %105 : vector<8x16x16xf32>
    %107 = arith.truncf %106 : vector<8x16x16xf32> to vector<8x16x16xbf16>
    "tpu.trace_start"() <{level = 10 : i32, message = "bqk,bkd->bqd"}> : () -> ()
    %cst_33 = arith.constant dense<0.000000e+00> : vector<8x16x16xf32>
    %108 = tpu.matmul %107, %92, %cst_33 {dimension_numbers = #tpu.dot_dimension_numbers<[2], [1], [1], [2], [0, 0, 0, 1, 1, 2], [0], [0]>} : vector<8x16x16xbf16>, vector<8x16x16xbf16>, vector<8x16x16xf32> -> vector<8x16x16xf32>
    "tpu.trace_stop"() : () -> ()
    %109 = vector.shape_cast %108 : vector<8x16x16xf32> to vector<128x16xf32>
    %110 = arith.truncf %109 : vector<128x16xf32> to vector<128x16xbf16>
    %c2 = arith.constant 2 : index
    %c0_34 = arith.constant 0 : index
    %c0_35 = arith.constant 0 : index
    %111 = vector.load %arg5[%c2, %c0_34, %c0_35] : memref<4x16x64xbf16, #tpu.memory_space<vmem>>, vector<1x16x64xbf16>
    %112 = vector.shape_cast %111 : vector<1x16x64xbf16> to vector<16x64xbf16>
    %cst_36 = arith.constant dense<0.000000e+00> : vector<128x64xf32>
    %113 = tpu.matmul %110, %112, %cst_36 {dimension_numbers = #tpu.dot_dimension_numbers<[1], [0], [0], [1], [0, 0, 1, 1], [], []>} : vector<128x16xbf16>, vector<16x64xbf16>, vector<128x64xf32> -> vector<128x64xf32>
    %114 = arith.addf %86, %113 : vector<128x64xf32>
    %115 = vector.extract_strided_slice %26 {offsets = [0, 0, 48], sizes = [8, 16, 16], strides = [1, 1, 1]} : vector<8x16x192xf32> to vector<8x16x16xf32>
    %116 = arith.truncf %115 : vector<8x16x16xf32> to vector<8x16x16xbf16>
    %117 = vector.extract_strided_slice %26 {offsets = [0, 0, 112], sizes = [8, 16, 16], strides = [1, 1, 1]} : vector<8x16x192xf32> to vector<8x16x16xf32>
    %118 = arith.truncf %117 : vector<8x16x16xf32> to vector<8x16x16xbf16>
    %119 = vector.extract_strided_slice %26 {offsets = [0, 0, 176], sizes = [8, 16, 16], strides = [1, 1, 1]} : vector<8x16x192xf32> to vector<8x16x16xf32>
    %120 = arith.truncf %119 : vector<8x16x16xf32> to vector<8x16x16xbf16>
    "tpu.trace_start"() <{level = 10 : i32, message = "bqd,bkd->bqk"}> : () -> ()
    %cst_37 = arith.constant dense<0.000000e+00> : vector<8x16x16xf32>
    %121 = tpu.matmul %116, %118, %cst_37 {dimension_numbers = #tpu.dot_dimension_numbers<[2], [2], [1], [1], [0, 0, 0, 1, 1, 1], [0], [0]>} : vector<8x16x16xbf16>, vector<8x16x16xbf16>, vector<8x16x16xf32> -> vector<8x16x16xf32>
    "tpu.trace_stop"() : () -> ()
    %122 = vector.shape_cast %27 : vector<16x16xf32> to vector<1x16x16xf32>
    %123 = vector.broadcast %122 : vector<1x16x16xf32> to vector<8x16x16xf32>
    %124 = arith.addf %121, %123 : vector<8x16x16xf32>
    %cst_38 = arith.constant dense<0xFF800000> : vector<8x16xf32>
    %125 = vector.multi_reduction <maximumf>, %124, %cst_38 [2] : vector<8x16x16xf32> to vector<8x16xf32>
    %126 = vector.shape_cast %125 : vector<8x16xf32> to vector<8x16x1xf32>
    %127 = vector.broadcast %126 : vector<8x16x1xf32> to vector<8x16x16xf32>
    %128 = arith.subf %124, %127 : vector<8x16x16xf32>
    %129 = math.exp %128 : vector<8x16x16xf32>
    %cst_39 = arith.constant dense<0.000000e+00> : vector<8x16xf32>
    %130 = vector.multi_reduction <add>, %129, %cst_39 [2] : vector<8x16x16xf32> to vector<8x16xf32>
    %131 = vector.shape_cast %130 : vector<8x16xf32> to vector<8x16x1xf32>
    %132 = tpu.reciprocal %131 {approx = true} : vector<8x16x1xf32> -> vector<8x16x1xf32>
    %133 = vector.broadcast %132 : vector<8x16x1xf32> to vector<8x16x16xf32>
    %134 = arith.mulf %129, %133 : vector<8x16x16xf32>
    %135 = arith.truncf %134 : vector<8x16x16xf32> to vector<8x16x16xbf16>
    "tpu.trace_start"() <{level = 10 : i32, message = "bqk,bkd->bqd"}> : () -> ()
    %cst_40 = arith.constant dense<0.000000e+00> : vector<8x16x16xf32>
    %136 = tpu.matmul %135, %120, %cst_40 {dimension_numbers = #tpu.dot_dimension_numbers<[2], [1], [1], [2], [0, 0, 0, 1, 1, 2], [0], [0]>} : vector<8x16x16xbf16>, vector<8x16x16xbf16>, vector<8x16x16xf32> -> vector<8x16x16xf32>
    "tpu.trace_stop"() : () -> ()
    %137 = vector.shape_cast %136 : vector<8x16x16xf32> to vector<128x16xf32>
    %138 = arith.truncf %137 : vector<128x16xf32> to vector<128x16xbf16>
    %c3 = arith.constant 3 : index
    %c0_41 = arith.constant 0 : index
    %c0_42 = arith.constant 0 : index
    %139 = vector.load %arg5[%c3, %c0_41, %c0_42] : memref<4x16x64xbf16, #tpu.memory_space<vmem>>, vector<1x16x64xbf16>
    %140 = vector.shape_cast %139 : vector<1x16x64xbf16> to vector<16x64xbf16>
    %cst_43 = arith.constant dense<0.000000e+00> : vector<128x64xf32>
    %141 = tpu.matmul %138, %140, %cst_43 {dimension_numbers = #tpu.dot_dimension_numbers<[1], [0], [0], [1], [0, 0, 1, 1], [], []>} : vector<128x16xbf16>, vector<16x64xbf16>, vector<128x64xf32> -> vector<128x64xf32>
    %142 = arith.addf %114, %141 : vector<128x64xf32>
    %143 = arith.addf %1, %142 : vector<128x64xf32>
    %cst_44 = arith.constant dense<0.000000e+00> : vector<128xf32>
    %144 = vector.multi_reduction <add>, %143, %cst_44 [1] : vector<128x64xf32> to vector<128xf32>
    %145 = vector.shape_cast %144 : vector<128xf32> to vector<128x1xf32>
    %cst_45 = arith.constant 6.400000e+01 : f32
    %146 = vector.broadcast %cst_45 : f32 to vector<128x1xf32>
    %147 = arith.divf %145, %146 : vector<128x1xf32>
    %148 = vector.broadcast %147 : vector<128x1xf32> to vector<128x64xf32>
    %149 = arith.subf %143, %148 : vector<128x64xf32>
    %150 = arith.mulf %149, %149 : vector<128x64xf32>
    %cst_46 = arith.constant dense<0.000000e+00> : vector<128xf32>
    %151 = vector.multi_reduction <add>, %150, %cst_46 [1] : vector<128x64xf32> to vector<128xf32>
    %152 = vector.shape_cast %151 : vector<128xf32> to vector<128x1xf32>
    %cst_47 = arith.constant 6.400000e+01 : f32
    %153 = vector.broadcast %cst_47 : f32 to vector<128x1xf32>
    %154 = arith.divf %152, %153 : vector<128x1xf32>
    %155 = vector.broadcast %147 : vector<128x1xf32> to vector<128x64xf32>
    %156 = arith.subf %143, %155 : vector<128x64xf32>
    %cst_48 = arith.constant 9.99999974E-6 : f32
    %157 = vector.broadcast %cst_48 : f32 to vector<128x1xf32>
    %158 = arith.addf %154, %157 : vector<128x1xf32>
    %159 = math.rsqrt %158 : vector<128x1xf32>
    %160 = vector.broadcast %159 : vector<128x1xf32> to vector<128x64xf32>
    %161 = arith.mulf %156, %160 : vector<128x64xf32>
    %162 = arith.truncf %161 : vector<128x64xf32> to vector<128x64xbf16>
    %c0_49 = arith.constant 0 : index
    %c0_50 = arith.constant 0 : index
    %163 = vector.load %arg7[%c0_49, %c0_50] : memref<64x256xbf16, #tpu.memory_space<vmem>>, vector<64x256xbf16>
    %cst_51 = arith.constant dense<0.000000e+00> : vector<128x256xf32>
    %164 = tpu.matmul %162, %163, %cst_51 {dimension_numbers = #tpu.dot_dimension_numbers<[1], [0], [0], [1], [0, 0, 1, 1], [], []>} : vector<128x64xbf16>, vector<64x256xbf16>, vector<128x256xf32> -> vector<128x256xf32>
    %c0_52 = arith.constant 0 : index
    %c0_53 = arith.constant 0 : index
    %165 = vector.load %arg8[%c0_52, %c0_53] : memref<1x256xf32, #tpu.memory_space<vmem>>, vector<1x256xf32>
    %166 = vector.broadcast %165 : vector<1x256xf32> to vector<128x256xf32>
    %167 = arith.addf %164, %166 : vector<128x256xf32>
    %cst_54 = arith.constant 0.000000e+00 : f32
    %168 = vector.broadcast %cst_54 : f32 to vector<128x256xf32>
    %169 = arith.maximumf %167, %168 : vector<128x256xf32>
    %170 = arith.truncf %169 : vector<128x256xf32> to vector<128x256xbf16>
    %c0_55 = arith.constant 0 : index
    %c0_56 = arith.constant 0 : index
    %171 = vector.load %arg9[%c0_55, %c0_56] : memref<256x64xbf16, #tpu.memory_space<vmem>>, vector<256x64xbf16>
    %cst_57 = arith.constant dense<0.000000e+00> : vector<128x64xf32>
    %172 = tpu.matmul %170, %171, %cst_57 {dimension_numbers = #tpu.dot_dimension_numbers<[1], [0], [0], [1], [0, 0, 1, 1], [], []>} : vector<128x256xbf16>, vector<256x64xbf16>, vector<128x64xf32> -> vector<128x64xf32>
    %c0_58 = arith.constant 0 : index
    %c0_59 = arith.constant 0 : index
    %173 = vector.load %arg10[%c0_58, %c0_59] : memref<1x64xf32, #tpu.memory_space<vmem>>, vector<1x64xf32>
    %174 = vector.broadcast %173 : vector<1x64xf32> to vector<128x64xf32>
    %175 = arith.addf %172, %174 : vector<128x64xf32>
    %176 = arith.addf %143, %175 : vector<128x64xf32>
    %177 = vector.shape_cast %176 : vector<128x64xf32> to vector<8x16x64xf32>
    %c0_60 = arith.constant 0 : index
    %c0_61 = arith.constant 0 : index
    %c0_62 = arith.constant 0 : index
    %178 = vector.load %arg11[%c0_60, %c0_61, %c0_62] : memref<8x16x64xf32, #tpu.memory_space<vmem>>, vector<8x16x64xf32>
    tpu.vector_store %arg11[%c0_60, %c0_61, %c0_62], %177 {strides = array<i32>} : memref<8x16x64xf32, #tpu.memory_space<vmem>>, vector<8x16x64xf32>,
    return
  }
  func.func @transform_0(%arg0: i32) -> (i32, i32, i32) {
    %c0_i32 = arith.constant 0 : i32
    %c0_i32_0 = arith.constant 0 : i32
    %c0_i32_1 = arith.constant 0 : i32
    return %arg0, %c0_i32, %c0_i32_0 : i32, i32, i32
  }
  func.func @transform_1(%arg0: i32) -> (i32, i32) {
    %c0_i32 = arith.constant 0 : i32
    %c0_i32_0 = arith.constant 0 : i32
    %c0_i32_1 = arith.constant 0 : i32
    return %c0_i32, %c0_i32_0 : i32, i32
  }
  func.func @transform_2(%arg0: i32) -> (i32, i32) {
    %c0_i32 = arith.constant 0 : i32
    %c0_i32_0 = arith.constant 0 : i32
    %c0_i32_1 = arith.constant 0 : i32
    return %c0_i32, %c0_i32_0 : i32, i32
  }
  func.func @transform_3(%arg0: i32) -> (i32, i32) {
    %c0_i32 = arith.constant 0 : i32
    %c0_i32_0 = arith.constant 0 : i32
    %c0_i32_1 = arith.constant 0 : i32
    return %c0_i32, %c0_i32_0 : i32, i32
  }
  func.func @transform_4(%arg0: i32) -> (i32, i32, i32) {
    %c0_i32 = arith.constant 0 : i32
    %c0_i32_0 = arith.constant 0 : i32
    %c0_i32_1 = arith.constant 0 : i32
    %c0_i32_2 = arith.constant 0 : i32
    return %c0_i32, %c0_i32_0, %c0_i32_1 : i32, i32, i32
  }
  func.func @transform_5(%arg0: i32) -> (i32, i32) {
    %c0_i32 = arith.constant 0 : i32
    %c0_i32_0 = arith.constant 0 : i32
    %c0_i32_1 = arith.constant 0 : i32
    return %c0_i32, %c0_i32_0 : i32, i32
  }
  func.func @transform_6(%arg0: i32) -> (i32, i32) {
    %c0_i32 = arith.constant 0 : i32
    %c0_i32_0 = arith.constant 0 : i32
    %c0_i32_1 = arith.constant 0 : i32
    return %c0_i32, %c0_i32_0 : i32, i32
  }
  func.func @transform_7(%arg0: i32) -> (i32, i32) {
    %c0_i32 = arith.constant 0 : i32
    %c0_i32_0 = arith.constant 0 : i32
    %c0_i32_1 = arith.constant 0 : i32
    return %c0_i32, %c0_i32_0 : i32, i32
  }
  func.func @transform_8(%arg0: i32) -> (i32, i32) {
    %c0_i32 = arith.constant 0 : i32
    %c0_i32_0 = arith.constant 0 : i32
    %c0_i32_1 = arith.constant 0 : i32
    return %c0_i32, %c0_i32_0 : i32, i32
  }
  func.func @transform_9(%arg0: i32) -> (i32, i32) {
    %c0_i32 = arith.constant 0 : i32
    %c0_i32_0 = arith.constant 0 : i32
    %c0_i32_1 = arith.constant 0 : i32
    return %c0_i32, %c0_i32_0 : i32, i32
  }
  func.func @transform_10(%arg0: i32) -> (i32, i32, i32) {
    %c0_i32 = arith.constant 0 : i32
    %c0_i32_0 = arith.constant 0 : i32
    %c0_i32_1 = arith.constant 0 : i32
    return %arg0, %c0_i32, %c0_i32_0 : i32, i32, i32
  }
}

</mosaic_0001>

<bundles_post_ra>
// kernel: tpu_custom_call.1
= control target key start
LH: loop header
LB: loop body
LE: loop exit
PB: predicated region body
PF: predicated region fallthrough
CT: control target
= control target key end

     0   :  { %15 = vsyncpa [#allocation3], 0  ;;  %s9785_s0 = inlined_call_operand.hbm [shape: f32[16,16,64], index: 0, kind: input, shape index: {}]   ;;  %s9786_s1 = inlined_call_operand.vmem [shape: f32[16,16], index: 1, kind: input, shape index: {}]   ;;  %s9787_s2 = inlined_call_operand.vmem [shape: bf16[64,192], index: 2, kind: input, shape index: {}]   ;;  %s9788_s3 = inlined_call_operand.vmem [shape: f32[1,192], index: 3, kind: input, shape index: {}]   ;;  %s9789_s4 = inlined_call_operand.vmem [shape: bf16[4,16,64], index: 4, kind: input, shape index: {}]   ;;  %s9790_s5 = inlined_call_operand.vmem [shape: f32[1,64], index: 5, kind: input, shape index: {}]   ;;  %s9791_s6 = inlined_call_operand.vmem [shape: bf16[64,256], index: 6, kind: input, shape index: {}]   ;;  %s9792_s7 = inlined_call_operand.vmem [shape: f32[1,256], index: 7, kind: input, shape index: {}]   ;;  %s9793_s8 = inlined_call_operand.vmem [shape: bf16[256,64], index: 8, kind: input, shape index: {}]   ;;  %s9794_s9 = inlined_call_operand.vmem [shape: f32[1,64], index: 9, kind: input, shape index: {}]   ;;  %s9795_s10 = inlined_call_operand.hbm [shape: f32[16,16,64], index: 10, kind: output, shape index: {}]  }
   0x1   :  { %17 = vsyncpa [#allocation3 + $0x1], 0 }
   0x2   :  { %18 = vsyncpa [#allocation4], 0 }
   0x3   :  { %20 = vsyncpa [#allocation4 + $0x1], 0  ;;  %s7668_s13 = smov 0   ;;  %s7670_s14 = smov 0  }
   0x4   :  { %s7672_s15 = smov 0   ;;  %s7674_s16 = smov 0  }
   0x5 LB: > { %s7689_s17 = sadd.s32 4294967295, %s7595_s16   ;;  %s6131_s18 = sadd.s32 4294967294, %s7595_s16   ;;  %s7595_s16 = sphi %s7674_s16, %s9810_s16   ;;  %s7591_s15 = sphi %s7672_s15, %s9809_s15   ;;  %s7587_s14 = sphi %s7670_s14, %s9808_s14   ;;  %s7583_s13 = sphi %s7668_s13, %s9807_s13  }
   0x6   : > { %s7693_s19 = sadd.s32 1, %s7595_s16   ;;  %s33_s20 = sadd.s32 1, %s7591_s15 }
   0x7   : > { %s30_s21 = ssub.s32 %s7595_s16, %s7693_s19  ;;  %p40_p0 = scmp.ne.s32.totalorder %s7591_s15, %s7587_s14 }
   0x8   : > { %p31_p1 = scmp.eq.s32.totalorder %s30_s21, 0  ;;  %p41_p2 = scmp.eq.s32.totalorder %s7595_s16, 0 }
   0x9   : > { %p46_p3 = scmp.ne.s32.totalorder %s7587_s14, %s7583_s13  ;;  %p47_p4 = scmp.eq.s32.totalorder %s7689_s17, 0 }
   0xa   : > { %s7705_s22 = scalar_select %p31_p1, %s7591_s15, %s33_s20  }
   0xb   : > { %p7707_p5 = por %p41_p2, %p40_p0  ;;  %p7711_p6 = por %p47_p4, %p46_p3 }
   0xc   : > { %9797 = sst [smem:[#allocation8_spill]] %s7705_s22  ;;  %p259_p7 = scmp.eq.s32.totalorder %s7689_s17, 1 }
   0xd   : > { %p265_p8 = scmp.eq.s32.totalorder %s6131_s18, 1  ;;  %p7067_p10 = scmp.lt.s32.totalorder %s7595_s16, 2 }
   0xe   : > { %p7718_p11 = por %p259_p7, %p40_p0  ;;  %s312_s27 = sand.u32 1, %s7591_s15  }
   0xf   : > { %p7722_p12 = por %p265_p8, %p46_p3  ;;  %s6304_s28 = sshll.u32 %s7595_s16, 11 }
  0x10   : > { %s9800_s25 = scalar_select %p7718_p11, 1, 0 }
  0x11   : > { %s9801_s26 = scalar_select %p7722_p12, 1, 0 }
  0x12   : > { %s6134_s29 = sshll.u32 %s312_s27, 7  ;;  %s7731_s12 = scalar_lea.hbm %s9785_s0, %s6304_s28 }
  0x13   : > { %s316_s18 = scalar_lea.vmem [#allocation2], %s6134_s29  ;;  %p7735_p13 = pnand %p7067_p10, %p7707_p5 }
  0x14   : > { %s324_s20 = sshll.u32 %s316_s18, 4  ;;  %s7741_s22 = scalar_lea.sflag [#allocation3], %s312_s27  ;;  %s7739_s20 = int_to_ptr.vmem [resolvable:$true] %s324_s20 }
  0x15   : > { %s7499_s30 = scalar_lea.hbm %s7731_s12, 2048  ;;  %p7501_p1 = pneg %p7735_p13 }
  0x16   : > { %p7500_p0 = scmp.ne.s32.totalorder %s7731_s12, %s7499_s30  ;;  %s7504_s29 = scalar_lea.hbm %s9785_s0, 4096 }
  0x17   : > { %p7505_p4 = scmp.lt.u32.totalorder %s7731_s12, %s9785_s0  ;;  %p7506_p5 = scmp.lt.u32.totalorder %s7504_s29, %s7499_s30 }
  0x18   : > { %p7502_p2 = pnand %p7501_p1, %p7500_p0  ;;  %p7508_p8 = scmp.lt.u32.totalorder %s7499_s30, %s7731_s12 }
  0x19   : > { %p7507_p7 = por %p7506_p5, %p7505_p4 }
  0x1a   : > { %p7503_p3 = pneg %p7502_p2 }
  0x1b   : > { %p7509_p10 = por %p7508_p8, %p7507_p7 }
  0x1d   : > { %p7510_p9 = pnand %p7509_p10, %p7503_p3 }
  0x1f   : > { %7513 = shalt.err (!%p7510_p9)
}
  0x20   : > { %s7514_s27 = scalar_lea.vmem %s7739_s20, 2048  ;;  %s7597_s28 = smov [#allocation2]  }
  0x21   : > { %p7515_p0 = scmp.ne.s32.totalorder %s7739_s20, %s7514_s27  ;;  %s7519_s23 = sshll.u32 %s7597_s28, 4  ;;  %s7520_s23 = int_to_ptr.vmem [resolvable:$false] %s7519_s23 }
  0x22   : > { %s7521_s11 = scalar_lea.vmem %s7520_s23, 4096  ;;  %p7522_p11 = scmp.lt.s32.totalorder %s7739_s20, %s7520_s23 }
  0x23   : > { %p7517_p2 = pnand %p7515_p0, %p7501_p1  ;;  %p7523_p4 = scmp.lt.s32.totalorder %s7521_s11, %s7514_s27 }
  0x25   : > { %p7518_p12 = pneg %p7517_p2  ;;  %p7524_p5 = por %p7523_p4, %p7522_p11 }
  0x27   : > { %p7525_p7 = pnand %p7524_p5, %p7518_p12 }
  0x29   : > { %7528 = shalt.err (!%p7525_p7)
}
  0x2a   : > { %s7598_s30 = smov 128   ;;  %s7599_s29 = smov 8  }
  0x2b   : > { %7062 = dma.hbm_to_vmem [thread:$0]  (!%p7735_p13), %s7731_s12, 2048, %s7739_s20, %s7741_s22, %s7598_s30, %s7598_s30, %s7599_s29  }
  0x2c   : > { %p6138_p9 = scmp.ge.s32.totalorder %s7595_s16, 1  ;;  %p332_p1 = scmp.lt.s32.totalorder %s7595_s16, 3 }
  0x2e   : > { %p333_p3 = pnand %p6138_p9, %p332_p1 }
  0x2f   : > { %s7772_s18 = sand.u32 (!%p333_p3), 1, %s7587_s14  }
  0x30   : > { %336 = sbr.rel (%p333_p3) target bundleno = 4982 (0x1376), region = 60  ;;  %s6139_s27 = sshll.u32 (!%p333_p3), %s7772_s18, 7 }
  0x31   : > { %s339_s28 = scalar_lea.sflag (!%p333_p3), [#allocation3], %s7772_s18  ;;  %s7778_s23 = scalar_lea.vmem (!%p333_p3), [#allocation2], %s6139_s27 }
  0x37   : > { %7574 = dma.done.wait (%p7711_p6), %s339_s28, 2048  }
  0x38   : > { %7576 = vsyncadd (%p7711_p6), %s339_s28, 4294965248  ;;  %vm398_vm0 = vcmask 523264   ;;  %v382_v0 = vld [vmem:[%s7778_s23] sm:$0xff]  ;;  %v384_v1 = vld [vmem:[%s7778_s23 + $0x10] sm:$0xff]  ;;  %vm7602_vm1 = vmmov 0   ;;  %s7603_s22 = smov 64  }
  0x39   : > { %v383_v2 = vld [vmem:[%s7778_s23 + $0x8] sm:$0xff]  ;;  %v399_v3 = vsel %vm398_vm0, %v382_v0, 0.0  ;;  %v405_v4 = vsel %vm398_vm0, %v384_v1, 0.0  ;;  %v385_v5 = vld [vmem:[%s7778_s23 + $0x18] sm:$0xff]  ;;  %v386_v8 = vld [vmem:[%s7778_s23 + $0x20] sm:$0xff]  ;;  %vm841_vm2 = vcmask 130048  }
  0x3a   : > { %400 = vadd.xlane.f32.xlu0 %v399_v3  ;;  %406 = vadd.xlane.f32.xlu1 %v405_v4  ;;  %v402_v6 = vsel %vm398_vm0, %v383_v2, 0.0  ;;  %v408_v7 = vsel %vm398_vm0, %v385_v5, 0.0  ;;  %v387_v9 = vld [vmem:[%s7778_s23 + $0x28] sm:$0xff]  ;;  %v7795_v10 = vld [vmem:[%s7778_s23 + $0x30] sm:$0xff]  ;;  %v7798_v11 = vld [vmem:[%s7778_s23 + $0x38] sm:$0xff]  ;;  %v411_v14 = vsel %vm398_vm0, %v386_v8, 0.0 }
  0x3b   : > { %v7801_v12 = vld [vmem:[%s7778_s23 + $0x40] sm:$0xff]  ;;  %v7804_v13 = vld [vmem:[%s7778_s23 + $0x48] sm:$0xff]  ;;  %v414_v15 = vsel %vm398_vm0, %v387_v9, 0.0  ;;  %v7809_v16 = vld [vmem:[%s7778_s23 + $0x50] sm:$0xff]  ;;  %v417_v20 = vsel %vm398_vm0, %v7795_v10, 0.0  ;;  %v420_v21 = vsel %vm398_vm0, %v7798_v11, 0.0 }
  0x3c   : > { %v7812_v17 = vld [vmem:[%s7778_s23 + $0x58] sm:$0xff]  ;;  %v7815_v18 = vld [vmem:[%s7778_s23 + $0x60] sm:$0xff]  ;;  %v7818_v19 = vld [vmem:[%s7778_s23 + $0x68] sm:$0xff]  ;;  %v423_v22 = vsel %vm398_vm0, %v7801_v12, 0.0  ;;  %v426_v23 = vsel %vm398_vm0, %v7804_v13, 0.0  ;;  %v429_v24 = vsel %vm398_vm0, %v7809_v16, 0.0 }
  0x3d   : > { %v432_v25 = vsel %vm398_vm0, %v7812_v17, 0.0  ;;  %v435_v26 = vsel %vm398_vm0, %v7815_v18, 0.0  ;;  %v438_v27 = vsel %vm398_vm0, %v7818_v19, 0.0  ;;  %v7837_v28 = vld [vmem:[%s7778_s23 + $0x70] sm:$0xff]  ;;  %v7840_v29 = vld [vmem:[%s7778_s23 + $0x78] sm:$0xff]  ;;  %s7604_s11 = smov 112  }
  0x3e   : > { %403 = vadd.xlane.f32.xlu0 %v402_v6  ;;  %409 = vadd.xlane.f32.xlu1 %v408_v7  ;;  %v441_v30 = vsel %vm398_vm0, %v7837_v28, 0.0  ;;  %v444_v31 = vsel %vm398_vm0, %v7840_v29, 0.0  ;;  %s7605_s30 = smov 48   ;;  %s7606_s12 = smov 96  }
  0x3f   : > { %s7607_s20 = smov 32   ;;  %s7608_s28 = smov 80  }
  0x40   : > { %p9803_p11 = scmp.ne.s32.totalorder %s9800_s25, 0 }
  0x42   : > { %412 = vadd.xlane.f32.xlu0 %v411_v14  ;;  %415 = vadd.xlane.f32.xlu1 %v414_v15 }
  0x46   : > { %418 = vadd.xlane.f32.xlu0 %v417_v20  ;;  %421 = vadd.xlane.f32.xlu1 %v420_v21 }
  0x4a   : > { %424 = vadd.xlane.f32.xlu0 %v423_v22  ;;  %427 = vadd.xlane.f32.xlu1 %v426_v23 }
  0x4e   : > { %430 = vadd.xlane.f32.xlu0 %v429_v24  ;;  %433 = vadd.xlane.f32.xlu1 %v432_v25 }
  0x52   : > { %436 = vadd.xlane.f32.xlu0 %v435_v26  ;;  %439 = vadd.xlane.f32.xlu1 %v438_v27 }
  0x56   : > { %442 = vadd.xlane.f32.xlu0 %v441_v30  ;;  %445 = vadd.xlane.f32.xlu1 %v444_v31 }
  0xc7   : > { %v401_v32 = vpop.xlane.xlu0 %400  ;;  %v407_v33 = vpop.xlane.xlu1 %406 }
  0xc8   : > { %v448_v34 = vmul.f32 0.015625, %v401_v32  ;;  %v450_v35 = vmul.f32 0.015625, %v407_v33 }
  0xca   : > { %v7846_v36 = vsub.f32 %v382_v0, %v448_v34  ;;  %v7848_v37 = vsub.f32 %v384_v1, %v450_v35 }
  0xcb   : > { %v404_v38 = vpop.xlane.xlu0 %403  ;;  %v410_v39 = vpop.xlane.xlu1 %409 }
  0xcc   : > { %v449_v40 = vmul.f32 0.015625, %v404_v38  ;;  %v451_v41 = vmul.f32 0.015625, %v410_v39  ;;  %v480_v42 = vmul.f32 %v7846_v36, %v7846_v36  ;;  %v482_v43 = vmul.f32 %v7848_v37, %v7848_v37 }
  0xce   : > { %v7854_v44 = vsub.f32 %v383_v2, %v449_v40  ;;  %v7856_v45 = vsub.f32 %v385_v5, %v451_v41  ;;  %v496_v46 = vsel %vm398_vm0, %v480_v42, 0.0  ;;  %v502_v49 = vsel %vm398_vm0, %v482_v43, 0.0  ;;  %v7115_v42 = vld [vmem:[%s9787_s2 + $0x4] ss:$8 sps:$4 sm:$0xff]  }
  0xcf   : > { %497 = vadd.xlane.f32.xlu0 %v496_v46  ;;  %v413_v47 = vpop.xlane.xlu0 %412  ;;  %v416_v48 = vpop.xlane.xlu1 %415  ;;  %700 = vmatprep.subr.bf16.mxu0 %v7115_v42 }
  0xd0   : > { %v452_v50 = vmul.f32 0.015625, %v413_v47  ;;  %v453_v51 = vmul.f32 0.015625, %v416_v48  ;;  %v481_v52 = vmul.f32 %v7854_v44, %v7854_v44  ;;  %v483_v53 = vmul.f32 %v7856_v45, %v7856_v45  ;;  %v7117_v47 = vld [vmem:[%s9787_s2] ss:$8 sps:$4 sm:$0xff]  }
  0xd1   : > { %701 = vmatpush1.bf16.msra.mxu0 %v7117_v47 }
  0xd2   : > { %v7864_v54 = vsub.f32 %v386_v8, %v452_v50  ;;  %v7866_v55 = vsub.f32 %v387_v9, %v453_v51  ;;  %v499_v56 = vsel %vm398_vm0, %v481_v52, 0.0  ;;  %v505_v59 = vsel %vm398_vm0, %v483_v53, 0.0  ;;  %v7118_v51 = vld [vmem:[%s9787_s2 + $0x14] ss:$8 sps:$4 sm:$0xff]  }
  0xd3   : > { %503 = vadd.xlane.f32.xlu0 %v502_v49  ;;  %500 = vadd.xlane.f32.xlu1 %v499_v56  ;;  %v419_v57 = vpop.xlane.xlu0 %418  ;;  %v422_v58 = vpop.xlane.xlu1 %421 }
  0xd4   : > { %v454_v60 = vmul.f32 0.015625, %v419_v57  ;;  %v455_v61 = vmul.f32 0.015625, %v422_v58  ;;  %v484_v62 = vmul.f32 %v7864_v54, %v7864_v54  ;;  %v485_v63 = vmul.f32 %v7866_v55, %v7866_v55  ;;  %702 = vmatprep.subr.bf16.mxu0 %v7118_v51  ;;  %v7121_v57 = vld [vmem:[%s9787_s2 + $0x24] ss:$8 sps:$4 sm:$0xff]  }
  0xd6   : > { %v7875_v0 = vsub.f32 %v7795_v10, %v454_v60  ;;  %v7878_v1 = vsub.f32 %v7798_v11, %v455_v61  ;;  %v508_v2 = vsel %vm398_vm0, %v484_v62, 0.0  ;;  %v511_v5 = vsel %vm398_vm0, %v485_v63, 0.0  ;;  %v7124_v60 = vld [vmem:[%s9787_s2 + $0x34] ss:$8 sps:$4 sm:$0xff]   ;;  %v7126_v61 = vld [vmem:[%s9787_s2 + $0x30] ss:$8 sps:$4 sm:$0xff]  }
  0xd7   : > { %506 = vadd.xlane.f32.xlu1 %v505_v59  ;;  %509 = vadd.xlane.f32.xlu0 %v508_v2  ;;  %v425_v3 = vpop.xlane.xlu0 %424  ;;  %v428_v4 = vpop.xlane.xlu1 %427  ;;  %v7123_v59 = vld [vmem:[%s9787_s2 + $0x20] ss:$8 sps:$4 sm:$0xff]   ;;  %v7600_v62 = vmov 0  }
  0xd8   : > { %v456_v6 = vmul.f32 0.015625, %v425_v3  ;;  %v457_v7 = vmul.f32 0.015625, %v428_v4  ;;  %v486_v8 = vmul.f32 %v7875_v0, %v7875_v0  ;;  %v487_v9 = vmul.f32 %v7878_v1, %v7878_v1  ;;  %732 = vmatprep.mubr.bf16.mxu0 %v7600_v62 }
  0xda   : > { %v7887_v10 = vsub.f32 %v7801_v12, %v456_v6  ;;  %v7890_v11 = vsub.f32 %v7804_v13, %v457_v7  ;;  %v514_v14 = vsel %vm398_vm0, %v486_v8, 0.0  ;;  %v517_v21 = vsel %vm398_vm0, %v487_v9, 0.0 }
  0xdb   : > { %512 = vadd.xlane.f32.xlu1 %v511_v5  ;;  %515 = vadd.xlane.f32.xlu0 %v514_v14  ;;  %v431_v15 = vpop.xlane.xlu0 %430  ;;  %v434_v20 = vpop.xlane.xlu1 %433 }
  0xdc   : > { %v458_v22 = vmul.f32 0.015625, %v431_v15  ;;  %v459_v23 = vmul.f32 0.015625, %v434_v20  ;;  %v488_v24 = vmul.f32 %v7887_v10, %v7887_v10  ;;  %v489_v12 = vmul.f32 %v7890_v11, %v7890_v11 }
  0xde   : > { %v7899_v25 = vsub.f32 %v7809_v16, %v458_v22  ;;  %v7902_v13 = vsub.f32 %v7812_v17, %v459_v23  ;;  %v520_v26 = vsel %vm398_vm0, %v488_v24, 0.0  ;;  %v523_v31 = vsel %vm398_vm0, %v489_v12, 0.0 }
  0xdf   : > { %518 = vadd.xlane.f32.xlu1 %v517_v21  ;;  %521 = vadd.xlane.f32.xlu0 %v520_v26  ;;  %v437_v27 = vpop.xlane.xlu0 %436  ;;  %v440_v30 = vpop.xlane.xlu1 %439 }
  0xe0   : > { %v460_v32 = vmul.f32 0.015625, %v437_v27  ;;  %v461_v33 = vmul.f32 0.015625, %v440_v30  ;;  %v490_v34 = vmul.f32 %v7899_v25, %v7899_v25  ;;  %v491_v16 = vmul.f32 %v7902_v13, %v7902_v13 }
  0xe2   : > { %v7911_v35 = vsub.f32 %v7815_v18, %v460_v32  ;;  %v7914_v17 = vsub.f32 %v7818_v19, %v461_v33  ;;  %v526_v38 = vsel %vm398_vm0, %v490_v34, 0.0  ;;  %v529_v41 = vsel %vm398_vm0, %v491_v16, 0.0 }
  0xe3   : > { %524 = vadd.xlane.f32.xlu1 %v523_v31  ;;  %527 = vadd.xlane.f32.xlu0 %v526_v38  ;;  %v443_v39 = vpop.xlane.xlu0 %442  ;;  %v446_v40 = vpop.xlane.xlu1 %445 }
  0xe4   : > { %v462_v43 = vmul.f32 0.015625, %v443_v39  ;;  %v463_v46 = vmul.f32 0.015625, %v446_v40  ;;  %v492_v18 = vmul.f32 %v7911_v35, %v7911_v35  ;;  %v493_v19 = vmul.f32 %v7914_v17, %v7914_v17 }
  0xe6   : > { %v7929_v48 = vsub.f32 %v7837_v28, %v462_v43  ;;  %v7932_v49 = vsub.f32 %v7840_v29, %v463_v46  ;;  %v532_v50 = vsel %vm398_vm0, %v492_v18, 0.0  ;;  %v535_v52 = vsel %vm398_vm0, %v493_v19, 0.0  ;;  %v7120_v29 = vld [vmem:[%s9787_s2 + $0x10] ss:$8 sps:$4 sm:$0xff]  }
  0xe7   : > { %530 = vadd.xlane.f32.xlu1 %v529_v41  ;;  %533 = vadd.xlane.f32.xlu0 %v532_v50 }
  0xe8   : > { %v494_v53 = vmul.f32 %v7929_v48, %v7929_v48  ;;  %v495_v28 = vmul.f32 %v7932_v49, %v7932_v49  ;;  %703 = vmatpush1.bf16.msra.mxu0 %v7120_v29 }
  0xe9   : > { %704 = vmatprep.subr.bf16.mxu0 %v7121_v57 }
  0xea   : > { %v538_v56 = vsel %vm398_vm0, %v494_v53, 0.0  ;;  %v541_v58 = vsel %vm398_vm0, %v495_v28, 0.0 }
  0xeb   : > { %536 = vadd.xlane.f32.xlu1 %v535_v52  ;;  %539 = vadd.xlane.f32.xlu0 %v538_v56 }
  0xec   : > { %705 = vmatpush1.bf16.msra.mxu0 %v7123_v59 }
  0xed   : > { %706 = vmatprep.subr.bf16.mxu0 %v7124_v60 }
  0xef   : > { %542 = vadd.xlane.f32.xlu1 %v541_v58 }
  0xf0   : > { %707 = vmatpush1.bf16.msra.mxu0 %v7126_v61 }
 0x15c   : > { %v498_v63 = vpop.xlane.xlu0 %497 }
 0x15d   : > { %v544_v2 = vmul.f32 0.015625, %v498_v63 }
 0x15f   : > { %v560_v3 = vadd.f32 1e-05, %v544_v2 }
 0x160   : > { %v501_v4 = vpop.xlane.xlu1 %500  ;;  %v504_v5 = vpop.xlane.xlu0 %503 }
 0x161   : > { %v545_v6 = vmul.f32 0.015625, %v501_v4  ;;  %7159 = vrsqrt.f32 %v560_v3  ;;  %v546_v8 = vmul.f32 0.015625, %v504_v5 }
 0x163   : > { %v561_v7 = vadd.f32 1e-05, %v545_v6  ;;  %v562_v15 = vadd.f32 1e-05, %v546_v8 }
 0x164   : > { %v507_v9 = vpop.xlane.xlu1 %506  ;;  %v510_v21 = vpop.xlane.xlu0 %509 }
 0x165   : > { %7161 = vrsqrt.f32 %v561_v7  ;;  %v547_v14 = vmul.f32 0.015625, %v507_v9  ;;  %v548_v24 = vmul.f32 0.015625, %v510_v21 }
 0x167   : > { %v563_v20 = vadd.f32 1e-05, %v547_v14  ;;  %v564_v31 = vadd.f32 1e-05, %v548_v24 }
 0x168   : > { %v513_v22 = vpop.xlane.xlu1 %512  ;;  %v516_v32 = vpop.xlane.xlu0 %515 }
 0x169   : > { %7163 = vrsqrt.f32 %v563_v20  ;;  %v549_v23 = vmul.f32 0.015625, %v513_v22  ;;  %v550_v40 = vmul.f32 0.015625, %v516_v32 }
 0x16a   : > { %7165 = vrsqrt.f32 %v562_v15 }
 0x16b   : > { %v7160_v12 = vpop.eup %7159  ;;  %v565_v26 = vadd.f32 1e-05, %v549_v23  ;;  %v566_v18 = vadd.f32 1e-05, %v550_v40 }
 0x16c   : > { %v519_v27 = vpop.xlane.xlu1 %518  ;;  %v592_v33 = vmul.f32 %v7160_v12, %v7846_v36  ;;  %v522_v19 = vpop.xlane.xlu0 %521 }
 0x16d   : > { %7167 = vrsqrt.f32 %v565_v26  ;;  %v551_v16 = vmul.f32 0.015625, %v519_v27  ;;  %v552_v51 = vmul.f32 0.015625, %v522_v19 }
 0x16e   : > { %7169 = vrsqrt.f32 %v564_v31 }
 0x16f   : > { %v7162_v30 = vpop.eup %7161  ;;  %v567_v42 = vadd.f32 1e-05, %v551_v16 }
 0x170   : > { %v593_v34 = vmul.f32 %v7162_v30, %v7854_v44  ;;  %v525_v43 = vpop.xlane.xlu1 %524  ;;  %v528_v56 = vpop.xlane.xlu0 %527 }
 0x171   : > { %7171 = vrsqrt.f32 %v567_v42  ;;  %v553_v44 = vmul.f32 0.015625, %v525_v43  ;;  %v554_v60 = vmul.f32 0.015625, %v528_v56  ;;  %v626_v42 = vlaneseq }
 0x172   : > { %v608_v38 = vpack.c.bf16 %v593_v34, %v592_v33  ;;  %7173 = vrsqrt.f32 %v566_v18 }
 0x173   : > { %v7164_v39 = vpop.eup %7163  ;;  %v569_v53 = vadd.f32 1e-05, %v553_v44  ;;  %v7992_v43 = vshrl.u32 %v626_v42, 7  ;;  %v7601_v44 = vmov 0.0  }
 0x174   : > { %6149 = vmatmul.mubr.msk.bf16.vlgmr.msra.gmra.mrb[0].mxu0 %vm398_vm0, %v608_v38  ;;  %v7166_v41 = vpop.eup %7165  ;;  %v595_v46 = vmul.f32 %v7164_v39, %v7856_v45  ;;  %v531_v28 = vpop.xlane.xlu1 %530  ;;  %v568_v45 = vadd.f32 1e-05, %v552_v51  ;;  %6541 = vmatprep.subr.bf16.mxu1 %v7601_v44 }
 0x175   : > { %742 = vmatprep.mubr.bf16.mxu0 %v7600_v62  ;;  %v594_v36 = vmul.f32 %v7166_v41, %v7848_v37  ;;  %7175 = vrsqrt.f32 %v569_v53  ;;  %v555_v37 = vmul.f32 0.015625, %v531_v28  ;;  %v534_v4 = vpop.xlane.xlu0 %533  ;;  %6535 = vmatprep.subr.bf16.mxu0 %v7601_v44 }
 0x176   : > { %7177 = vrsqrt.f32 %v568_v45  ;;  %v556_v8 = vmul.f32 0.015625, %v534_v4  ;;  %6543 = vmatprep.mubr.msk.bf16.mxu1 %vm7602_vm1, %v7601_v44 }
 0x177   : > { %v609_v47 = vpack.c.bf16 %v595_v46, %v594_v36  ;;  %v7168_v50 = vpop.eup %7167  ;;  %v571_v63 = vadd.f32 1e-05, %v555_v37  ;;  %v632_v46 = vsub.s32 1, %v7992_v43 }
 0x178   : > { %v7170_v52 = vpop.eup %7169  ;;  %v597_v29 = vmul.f32 %v7168_v50, %v7866_v55  ;;  %v537_v2 = vpop.xlane.xlu1 %536  ;;  %v570_v55 = vadd.f32 1e-05, %v554_v60 }
 0x179   : > { %v596_v57 = vmul.f32 %v7170_v52, %v7864_v54  ;;  %7179 = vrsqrt.f32 %v571_v63  ;;  %v557_v54 = vmul.f32 0.015625, %v537_v2  ;;  %v540_v21 = vpop.xlane.xlu0 %539 }
 0x17a   : > { %7181 = vrsqrt.f32 %v570_v55  ;;  %v558_v12 = vmul.f32 0.015625, %v540_v21 }
 0x17b   : > { %v610_v58 = vpack.c.bf16 %v597_v29, %v596_v57  ;;  %v7172_v59 = vpop.eup %7171  ;;  %v573_v14 = vadd.f32 1e-05, %v557_v54 }
 0x17c   : > { %6150 = vmatmul.mubr.msk.bf16.gmra.mrb[4].mxu0 %vm398_vm0, %v609_v47  ;;  %v7174_v61 = vpop.eup %7173  ;;  %v599_v3 = vmul.f32 %v7172_v59, %v7878_v1  ;;  %v543_v15 = vpop.xlane.xlu1 %542  ;;  %v572_v1 = vadd.f32 1e-05, %v556_v8  ;;  %v574_v31 = vadd.f32 1e-05, %v558_v12 }
 0x17d   : > { %752 = vmatprep.mubr.bf16.mxu0 %v7600_v62  ;;  %v598_v5 = vmul.f32 %v7174_v61, %v7875_v0  ;;  %7183 = vrsqrt.f32 %v573_v14  ;;  %v559_v0 = vmul.f32 0.015625, %v543_v15 }
 0x17e   : > { %7185 = vrsqrt.f32 %v572_v1 }
 0x17f   : > { %v611_v6 = vpack.c.bf16 %v599_v3, %v598_v5  ;;  %v7176_v7 = vpop.eup %7175  ;;  %v575_v27 = vadd.f32 1e-05, %v559_v0 }
 0x180   : > { %v7178_v9 = vpop.eup %7177  ;;  %v601_v20 = vmul.f32 %v7176_v7, %v7890_v11 }
 0x181   : > { %v600_v22 = vmul.f32 %v7178_v9, %v7887_v10  ;;  %7187 = vrsqrt.f32 %v575_v27 }
 0x182   : > { %7189 = vrsqrt.f32 %v574_v31 }
 0x183   : > { %v612_v23 = vpack.c.bf16 %v601_v20, %v600_v22  ;;  %v7180_v24 = vpop.eup %7179 }
 0x184   : > { %6151 = vmatmul.mubr.msk.bf16.gmra.mrb[8].mxu0 %vm398_vm0, %v610_v58  ;;  %v7182_v26 = vpop.eup %7181  ;;  %v603_v30 = vmul.f32 %v7180_v24, %v7902_v13 }
 0x185   : > { %762 = vmatprep.mubr.bf16.mxu0 %v7600_v62  ;;  %v602_v11 = vmul.f32 %v7182_v26, %v7899_v25 }
 0x187   : > { %v613_v32 = vpack.c.bf16 %v603_v30, %v602_v11  ;;  %v7184_v10 = vpop.eup %7183 }
 0x188   : > { %v7186_v33 = vpop.eup %7185  ;;  %v605_v34 = vmul.f32 %v7184_v10, %v7914_v17  ;;  %v628_v17 = vsub.s32 0, %v7992_v43 }
 0x189   : > { %v604_v16 = vmul.f32 %v7186_v33, %v7911_v35  ;;  %v624_v35 = vld [vmem:[%s9788_s3] sm:$0x3] }
 0x18a   : > { %v8001_v18 = vrot.slane %v624_v35, %v628_v17 }
 0x18b   : > { %v614_v38 = vpack.c.bf16 %v605_v34, %v604_v16  ;;  %v7188_v39 = vpop.eup %7187 }
 0x18c   : > { %6152 = vmatmul.mubr.msk.bf16.gmra.mrb[12].mxu0 %vm398_vm0, %v611_v6  ;;  %v7190_v13 = vpop.eup %7189  ;;  %v607_v25 = vmul.f32 %v7188_v39, %v7932_v49 }
 0x18d   : > { %772 = vmatprep.mubr.bf16.mxu0 %v7600_v62  ;;  %v606_v40 = vmul.f32 %v7190_v13, %v7929_v48  ;;  %v8005_v48 = vrot.slane %v624_v35, %v632_v46 }
 0x18f   : > { %v615_v41 = vpack.c.bf16 %v607_v25, %v606_v40 }
 0x194   : > { %6153 = vmatmul.mubr.msk.bf16.gmra.mrb[16].mxu0 %vm398_vm0, %v612_v23 }
 0x195   : > { %782 = vmatprep.mubr.bf16.mxu0 %v7600_v62 }
 0x19c   : > { %6154 = vmatmul.mubr.msk.bf16.gmra.mrb[20].mxu0 %vm398_vm0, %v613_v32 }
 0x19d   : > { %792 = vmatprep.mubr.bf16.mxu0 %v7600_v62 }
 0x1a4   : > { %6155 = vmatmul.mubr.msk.bf16.gmra.mrb[24].mxu0 %vm398_vm0, %v614_v38 }
 0x1a5   : > { %802 = vmatprep.mubr.bf16.mxu0 %v7600_v62 }
 0x1ac   : > { %6156 = vmatmul.mubr.msk.bf16.gmra.mrb[28].mxu0 %vm398_vm0, %v615_v41 }
 0x1ad   : > { %6537 = vmatprep.mubr.msk.bf16.mxu0 %vm7602_vm1, %v7601_v44 }
 0x247   : > { %v734_v49 = vpop.f32.mrb[0].mxu0 }
 0x248   : > { %v736_v19 = vpop.f32.mrb[1].mxu0  ;;  %v735_v47 = vadd.f32 %v734_v49, %v8001_v18 }
 0x249   : > { %v738_v36 = vpop.f32.mrb[2].mxu0  ;;  %v737_v52 = vadd.f32 %v736_v19, %v8005_v48 }
 0x24a   : > { %v739_v50 = vadd.f32 %v738_v36, %v8001_v18  ;;  %v740_v51 = vpop.f32.mrb[3].mxu0 }
 0x24b   : > { %v741_v53 = vadd.f32 %v740_v51, %v8005_v48 }
 0x24c   : > { %v8017_v28 = vpack.c.bf16 %v739_v50, %v735_v47 }
 0x24d   : > { %v8019_v29 = vpack.c.bf16 %v741_v53, %v737_v52 }
 0x24f   : > { %v744_v45 = vpop.f32.mrb[4].mxu0 }
 0x250   : > { %v746_v56 = vpop.f32.mrb[5].mxu0  ;;  %v745_v37 = vadd.f32 %v744_v45, %v8001_v18 }
 0x251   : > { %v748_v57 = vpop.f32.mrb[6].mxu0  ;;  %v747_v60 = vadd.f32 %v746_v56, %v8005_v48 }
 0x252   : > { %v749_v58 = vadd.f32 %v748_v57, %v8001_v18  ;;  %v750_v59 = vpop.f32.mrb[7].mxu0 }
 0x253   : > { %v751_v61 = vadd.f32 %v750_v59, %v8005_v48 }
 0x254   : > { %v8025_v63 = vpack.c.bf16 %v749_v58, %v745_v37 }
 0x255   : > { %v8027_v2 = vpack.c.bf16 %v751_v61, %v747_v60 }
 0x256   : > { %890 = vrot.lane.b32.xlu0 %v8025_v63, %s7603_s22 }
 0x257   : > { %v754_v3 = vpop.f32.mrb[8].mxu0 }
 0x258   : > { %v756_v55 = vpop.f32.mrb[9].mxu0  ;;  %v755_v54 = vadd.f32 %v754_v3, %v8001_v18 }
 0x259   : > { %v757_v4 = vadd.f32 %v756_v55, %v8005_v48  ;;  %v758_v5 = vpop.f32.mrb[10].mxu0 }
 0x25a   : > { %v759_v6 = vadd.f32 %v758_v5, %v8001_v18  ;;  %v760_v7 = vpop.f32.mrb[11].mxu0 }
 0x25b   : > { %v761_v8 = vadd.f32 %v760_v7, %v8005_v48 }
 0x25c   : > { %v8035_v9 = vpack.c.bf16 %v759_v6, %v755_v54 }
 0x25d   : > { %v8037_v14 = vpack.c.bf16 %v761_v8, %v757_v4 }
 0x25e   : > { %940 = vrot.lane.b32.xlu1 %v8035_v9, %s7603_s22 }
 0x25f   : > { %v764_v15 = vpop.f32.mrb[12].mxu0 }
 0x260   : > { %v766_v20 = vpop.f32.mrb[13].mxu0  ;;  %v765_v22 = vadd.f32 %v764_v15, %v8001_v18 }
 0x261   : > { %v767_v1 = vadd.f32 %v766_v20, %v8005_v48  ;;  %v768_v21 = vpop.f32.mrb[14].mxu0 }
 0x262   : > { %v769_v0 = vadd.f32 %v768_v21, %v8001_v18  ;;  %v770_v23 = vpop.f32.mrb[15].mxu0 }
 0x263   : > { %v771_v24 = vadd.f32 %v770_v23, %v8005_v48 }
 0x264   : > { %v8045_v12 = vpack.c.bf16 %v769_v0, %v765_v22 }
 0x265   : > { %v8047_v26 = vpack.c.bf16 %v771_v24, %v767_v1 }
 0x266   : > { %990 = vrot.lane.b32.xlu1 %v8045_v12, %s7603_s22 }
 0x267   : > { %v774_v27 = vpop.f32.mrb[16].mxu0 }
 0x268   : > { %v776_v30 = vpop.f32.mrb[17].mxu0  ;;  %v775_v32 = vadd.f32 %v774_v27, %v8001_v18 }
 0x269   : > { %v777_v31 = vadd.f32 %v776_v30, %v8005_v48  ;;  %v778_v11 = vpop.f32.mrb[18].mxu0 }
 0x26a   : > { %v779_v10 = vadd.f32 %v778_v11, %v8001_v18  ;;  %839 = vrot.lane.b32.xlu1 %v8017_v28, %s7603_s22  ;;  %v780_v33 = vpop.f32.mrb[19].mxu0 }
 0x26b   : > { %v781_v34 = vadd.f32 %v780_v33, %v8005_v48 }
 0x26c   : > { %v8057_v16 = vpack.c.bf16 %v779_v10, %v775_v32 }
 0x26d   : > { %v8059_v38 = vpack.c.bf16 %v781_v34, %v777_v31 }
 0x26e   : > { %1040 = vrot.lane.b32.xlu0 %v8057_v16, %s7603_s22 }
 0x26f   : > { %v784_v39 = vpop.f32.mrb[20].mxu0 }
 0x270   : > { %v786_v13 = vpop.f32.mrb[21].mxu0  ;;  %v785_v41 = vadd.f32 %v784_v39, %v8001_v18 }
 0x271   : > { %v787_v25 = vadd.f32 %v786_v13, %v8005_v48  ;;  %v788_v40 = vpop.f32.mrb[22].mxu0 }
 0x272   : > { %v789_v42 = vadd.f32 %v788_v40, %v8001_v18  ;;  %v790_v35 = vpop.f32.mrb[23].mxu0 }
 0x273   : > { %v791_v49 = vadd.f32 %v790_v35, %v8005_v48 }
 0x274   : > { %v8067_v19 = vpack.c.bf16 %v789_v42, %v785_v41 }
 0x275   : > { %v8069_v36 = vpack.c.bf16 %v791_v49, %v787_v25 }
 0x276   : > { %1090 = vrot.lane.b32.xlu1 %v8067_v19, %s7603_s22 }
 0x277   : > { %v794_v47 = vpop.f32.mrb[24].mxu0 }
 0x278   : > { %v796_v50 = vpop.f32.mrb[25].mxu0  ;;  %v795_v53 = vadd.f32 %v794_v47, %v8001_v18 }
 0x279   : > { %v797_v51 = vadd.f32 %v796_v50, %v8005_v48  ;;  %v798_v52 = vpop.f32.mrb[26].mxu0  ;;  %v8148_v50 = vld [vmem:[%s9786_s1] sm:$0xff] }
 0x27a   : > { %v799_v45 = vadd.f32 %v798_v52, %v8001_v18  ;;  %v800_v56 = vpop.f32.mrb[27].mxu0 }
 0x27b   : > { %v801_v57 = vadd.f32 %v800_v56, %v8005_v48 }
 0x27c   : > { %v8077_v37 = vpack.c.bf16 %v799_v45, %v795_v53  ;;  %v8156_v45 = vld [vmem:[%s9786_s1 + $0x8] sm:$0xff] }
 0x27d   : > { %v8079_v58 = vpack.c.bf16 %v801_v57, %v797_v51 }
 0x27e   : > { %1140 = vrot.lane.b32.xlu0 %v8077_v37, %s7603_s22 }
 0x27f   : > { %v804_v59 = vpop.f32.mrb[28].mxu0 }
 0x280   : > { %v806_v60 = vpop.f32.mrb[29].mxu0  ;;  %v805_v55 = vadd.f32 %v804_v59, %v8001_v18 }
 0x281   : > { %v807_v61 = vadd.f32 %v806_v60, %v8005_v48  ;;  %v808_v3 = vpop.f32.mrb[30].mxu0 }
 0x282   : > { %v809_v4 = vadd.f32 %v808_v3, %v8001_v18  ;;  %v810_v5 = vpop.f32.mrb[31].mxu0 }
 0x283   : > { %v811_v54 = vadd.f32 %v810_v5, %v8005_v48 }
 0x284   : > { %v8087_v6 = vpack.c.bf16 %v809_v4, %v805_v55 }
 0x285   : > { %v8089_v7 = vpack.c.bf16 %v811_v54, %v807_v61 }
 0x286   : > { %1190 = vrot.lane.b32.xlu1 %v8087_v6, %s7603_s22  ;;  %s7609_s22 = smov 16  }
 0x2c8   : > { %v891_v8 = vpop.permute.xlu0 %890 }
 0x2c9   : > { %v896_v15 = vsel %vm841_vm2, %v891_v8, 0 }
 0x2ca   : > { %6542 = vmatpush3.bf16.xpose.msra.mxu1 %v896_v15 }
 0x2cb   : > { %6547 = vmatprep.subr.bf16.mxu1 %v7601_v44 }
 0x2d0   : > { %v941_v20 = vpop.permute.xlu1 %940 }
 0x2d1   : > { %v946_v18 = vsel %vm841_vm2, %v941_v20, 0  ;;  %6544 = vmatmul.mubr.msk.bf16.vlgmr.msra.gmra.mrb[0].mxu1 %vm841_vm2, %v8025_v63 }
 0x2d2   : > { %6548 = vmatpush3.bf16.xpose.msra.mxu1 %v946_v18  ;;  %6549 = vmatprep.mubr.msk.bf16.mxu1 %vm7602_vm1, %v7601_v44 }
 0x2d3   : > { %6553 = vmatprep.subr.bf16.mxu1 %v7601_v44 }
 0x2d8   : > { %v991_v48 = vpop.permute.xlu1 %990 }
 0x2d9   : > { %v996_v1 = vsel %vm841_vm2, %v991_v48, 0  ;;  %6550 = vmatmul.mubr.msk.bf16.vlgmr.msra.gmra.mrb[4].mxu1 %vm841_vm2, %v8035_v9 }
 0x2da   : > { %6554 = vmatpush3.bf16.xpose.msra.mxu1 %v996_v1  ;;  %6555 = vmatprep.mubr.msk.bf16.mxu1 %vm7602_vm1, %v7601_v44 }
 0x2db   : > { %6559 = vmatprep.subr.bf16.mxu1 %v7601_v44 }
 0x2dc   : > { %v840_v21 = vpop.permute.xlu1 %839 }
 0x2dd   : > { %v846_v22 = vsel %vm841_vm2, %v840_v21, 0 }
 0x2de   : > { %6536 = vmatpush3.bf16.xpose.msra.mxu0 %v846_v22 }
 0x2df   : > { %6589 = vmatprep.subr.bf16.mxu0 %v7601_v44 }
 0x2e0   : > { %v1041_v0 = vpop.permute.xlu0 %1040 }
 0x2e1   : > { %v1046_v23 = vsel %vm841_vm2, %v1041_v0, 0  ;;  %6556 = vmatmul.mubr.msk.bf16.vlgmr.msra.gmra.mrb[8].mxu1 %vm841_vm2, %v8045_v12 }
 0x2e2   : > { %6560 = vmatpush3.bf16.xpose.msra.mxu1 %v1046_v23  ;;  %6561 = vmatprep.mubr.msk.bf16.mxu1 %vm7602_vm1, %v7601_v44 }
 0x2e3   : > { %6565 = vmatprep.subr.bf16.mxu1 %v7601_v44 }
 0x2e5   : > { %6538 = vmatmul.mubr.msk.bf16.vlgmr.msra.gmra.mrb[32].mxu0 %vm841_vm2, %v8017_v28 }
 0x2e6   : > { %6590 = vmatpush3.bf16.msra.mxu0 %v8027_v2  ;;  %6591 = vmatprep.mubr.msk.bf16.mxu0 %vm7602_vm1, %v7601_v44 }
 0x2e7   : > { %6601 = vmatprep.subr.bf16.mxu0 %v7601_v44 }
 0x2e8   : > { %v1091_v24 = vpop.permute.xlu1 %1090 }
 0x2e9   : > { %v1096_v27 = vsel %vm841_vm2, %v1091_v24, 0  ;;  %6562 = vmatmul.mubr.msk.bf16.vlgmr.msra.gmra.mrb[12].mxu1 %vm841_vm2, %v8057_v16 }
 0x2ea   : > { %6566 = vmatpush3.bf16.xpose.msra.mxu1 %v1096_v27  ;;  %6567 = vmatprep.mubr.msk.bf16.mxu1 %vm7602_vm1, %v7601_v44 }
 0x2eb   : > { %6571 = vmatprep.subr.bf16.mxu1 %v7601_v44 }
 0x2f0   : > { %v1141_v30 = vpop.permute.xlu0 %1140 }
 0x2f1   : > { %v1146_v31 = vsel %vm841_vm2, %v1141_v30, 0  ;;  %6568 = vmatmul.mubr.msk.bf16.vlgmr.msra.gmra.mrb[16].mxu1 %vm841_vm2, %v8067_v19 }
 0x2f2   : > { %6572 = vmatpush3.bf16.xpose.msra.mxu1 %v1146_v31  ;;  %6573 = vmatprep.mubr.msk.bf16.mxu1 %vm7602_vm1, %v7601_v44 }
 0x2f3   : > { %6577 = vmatprep.subr.bf16.mxu1 %v7601_v44 }
 0x2f8   : > { %v1191_v11 = vpop.permute.xlu1 %1190 }
 0x2f9   : > { %v1196_v32 = vsel %vm841_vm2, %v1191_v11, 0  ;;  %6574 = vmatmul.mubr.msk.bf16.vlgmr.msra.gmra.mrb[20].mxu1 %vm841_vm2, %v8077_v37 }
 0x2fa   : > { %6578 = vmatpush3.bf16.xpose.msra.mxu1 %v1196_v32  ;;  %6579 = vmatprep.mubr.msk.bf16.mxu1 %vm7602_vm1, %v7601_v44 }
 0x2fb   : > { %6583 = vmatprep.subr.bf16.mxu1 %v7601_v44 }
 0x301   : > { %6580 = vmatmul.mubr.msk.bf16.vlgmr.msra.gmra.mrb[24].mxu1 %vm841_vm2, %v8087_v6 }
 0x302   : > { %6584 = vmatpush3.bf16.msra.mxu1 %v8019_v29  ;;  %6585 = vmatprep.mubr.msk.bf16.mxu1 %vm7602_vm1, %v7601_v44 }
 0x303   : > { %6595 = vmatprep.subr.bf16.mxu1 %v7601_v44 }
 0x3a4   : > { %v932_v10 = vpop.f32.mrb[0].mxu1 }
 0x3a5   : > { %v6545_v33 = vpop.f32.mrb[1].mxu1  ;;  %v8159_v57 = vadd.f32 %v932_v10, %v8148_v50 }
 0x3a6   : > { %v935_v34 = vpop.f32.mrb[2].mxu1 }
 0x3a7   : > { %v6546_v39 = vpop.f32.mrb[3].mxu1  ;;  %v8172_v8 = vadd.f32 %v935_v34, %v8156_v45  ;;  %v1245_v20 = vsel %vm841_vm2, %v8159_v57, -inf }
 0x3a9   : > { %v1248_v21 = vsel %vm841_vm2, %v8172_v8, -inf }
 0x3ac   : > { %v982_v13 = vpop.f32.mrb[4].mxu1 }
 0x3ad   : > { %v6551_v25 = vpop.f32.mrb[5].mxu1  ;;  %v8182_v1 = vadd.f32 %v982_v13, %v8148_v50 }
 0x3ae   : > { %v985_v40 = vpop.f32.mrb[6].mxu1 }
 0x3af   : > { %v6552_v41 = vpop.f32.mrb[7].mxu1  ;;  %v8167_v55 = vadd.f32 %v985_v40, %v8156_v45  ;;  %v1251_v11 = vsel %vm841_vm2, %v8182_v1, -inf }
 0x3b1   : > { %v1254_v48 = vsel %vm841_vm2, %v8167_v55, -inf }
 0x3b4   : > { %v1032_v42 = vpop.f32.mrb[8].mxu1 }
 0x3b5   : > { %v6557_v35 = vpop.f32.mrb[9].mxu1  ;;  %v8192_v30 = vadd.f32 %v1032_v42, %v8148_v50 }
 0x3b6   : > { %v1035_v49 = vpop.f32.mrb[10].mxu1 }
 0x3b7   : > { %v6558_v47 = vpop.f32.mrb[11].mxu1  ;;  %v8177_v18 = vadd.f32 %v1035_v49, %v8156_v45  ;;  %v1257_v34 = vsel %vm841_vm2, %v8192_v30, -inf }
 0x3b8   : > { %v882_v51 = vpop.f32.mrb[32].mxu0 }
 0x3b9   : > { %v8151_v52 = vadd.f32 %v882_v51, %v8148_v50  ;;  %v6539_v53 = vpop.f32.mrb[33].mxu0  ;;  %v1260_v24 = vsel %vm841_vm2, %v8177_v18, -inf }
 0x3ba   : > { %v885_v56 = vpop.f32.mrb[34].mxu0 }
 0x3bb   : > { %v8162_v59 = vadd.f32 %v885_v56, %v8156_v45  ;;  %v6540_v60 = vpop.f32.mrb[35].mxu0  ;;  %v1239_v61 = vsel %vm841_vm2, %v8151_v52, -inf }
 0x3bc   : > { %1240 = vmax.xlane.f32.xlu0 %v1239_v61  ;;  %v1082_v3 = vpop.f32.mrb[12].mxu1 }
 0x3bd   : > { %v6563_v4 = vpop.f32.mrb[13].mxu1  ;;  %v1242_v5 = vsel %vm841_vm2, %v8162_v59, -inf  ;;  %v8202_v33 = vadd.f32 %v1082_v3, %v8148_v50 }
 0x3be   : > { %1243 = vmax.xlane.f32.xlu1 %v1242_v5  ;;  %v1085_v54 = vpop.f32.mrb[14].mxu1 }
 0x3bf   : > { %v6564_v15 = vpop.f32.mrb[15].mxu1  ;;  %v8187_v0 = vadd.f32 %v1085_v54, %v8156_v45  ;;  %v1263_v49 = vsel %vm841_vm2, %v8202_v33, -inf }
 0x3c0   : > { %1246 = vmax.xlane.f32.xlu0 %v1245_v20 }
 0x3c1   : > { %v1266_v10 = vsel %vm841_vm2, %v8187_v0, -inf }
 0x3c2   : > { %1255 = vmax.xlane.f32.xlu1 %v1254_v48 }
 0x3c4   : > { %1249 = vmax.xlane.f32.xlu0 %v1248_v21  ;;  %v1132_v22 = vpop.f32.mrb[16].mxu1 }
 0x3c5   : > { %v6569_v23 = vpop.f32.mrb[17].mxu1  ;;  %v8209_v41 = vadd.f32 %v1132_v22, %v8148_v50 }
 0x3c6   : > { %1261 = vmax.xlane.f32.xlu1 %v1260_v24  ;;  %v1135_v27 = vpop.f32.mrb[18].mxu1 }
 0x3c7   : > { %v6570_v31 = vpop.f32.mrb[19].mxu1  ;;  %v8197_v32 = vadd.f32 %v1135_v27, %v8156_v45  ;;  %v1269_v53 = vsel %vm841_vm2, %v8209_v41, -inf }
 0x3c8   : > { %1252 = vmax.xlane.f32.xlu0 %v1251_v11 }
 0x3c9   : > { %v1272_v25 = vsel %vm841_vm2, %v8197_v32, -inf }
 0x3ca   : > { %1267 = vmax.xlane.f32.xlu1 %v1266_v10 }
 0x3cc   : > { %1258 = vmax.xlane.f32.xlu0 %v1257_v34  ;;  %v1182_v39 = vpop.f32.mrb[20].mxu1 }
 0x3cd   : > { %v6575_v13 = vpop.f32.mrb[21].mxu1  ;;  %v8219_v51 = vadd.f32 %v1182_v39, %v8148_v50 }
 0x3ce   : > { %1273 = vmax.xlane.f32.xlu1 %v1272_v25  ;;  %v1185_v40 = vpop.f32.mrb[22].mxu1 }
 0x3cf   : > { %v8212_v42 = vadd.f32 %v1185_v40, %v8156_v45  ;;  %v6576_v35 = vpop.f32.mrb[23].mxu1  ;;  %v1275_v54 = vsel %vm841_vm2, %v8219_v51, -inf }
 0x3d0   : > { %1264 = vmax.xlane.f32.xlu0 %v1263_v49 }
 0x3d1   : > { %v1278_v47 = vsel %vm841_vm2, %v8212_v42, -inf }
 0x3d2   : > { %1279 = vmax.xlane.f32.xlu1 %v1278_v47 }
 0x3d4   : > { %1270 = vmax.xlane.f32.xlu0 %v1269_v53  ;;  %v1232_v56 = vpop.f32.mrb[24].mxu1 }
 0x3d5   : > { %v6581_v60 = vpop.f32.mrb[25].mxu1  ;;  %v8224_v3 = vadd.f32 %v1232_v56, %v8148_v50 }
 0x3d6   : > { %v1235_v61 = vpop.f32.mrb[26].mxu1 }
 0x3d7   : > { %v8227_v4 = vadd.f32 %v1235_v61, %v8156_v45  ;;  %v6582_v5 = vpop.f32.mrb[27].mxu1  ;;  %v1281_v20 = vsel %vm841_vm2, %v8224_v3, -inf }
 0x3d8   : > { %1276 = vmax.xlane.f32.xlu0 %v1275_v54 }
 0x3d9   : > { %v1284_v15 = vsel %vm841_vm2, %v8227_v4, -inf }
 0x3da   : > { %1285 = vmax.xlane.f32.xlu1 %v1284_v15 }
 0x3dc   : > { %1282 = vmax.xlane.f32.xlu0 %v1281_v20 }
 0x449   : > { %v1241_v48 = vpop.xlane.xlu0 %1240 }
 0x44a   : > { %v1287_v21 = vsub.f32 %v8151_v52, %v1241_v48 }
 0x44b   : > { %v1244_v22 = vpop.xlane.xlu1 %1243 }
 0x44c   : > { %v1303_v23 = vmul.f32 1.442695, %v1287_v21  ;;  %v1288_v24 = vsub.f32 %v8162_v59, %v1244_v22 }
 0x44d   : > { %v1247_v27 = vpop.xlane.xlu0 %1246 }
 0x44e   : > { %7191 = vpow2.f32 %v1303_v23  ;;  %v1305_v31 = vmul.f32 1.442695, %v1288_v24  ;;  %v1289_v11 = vsub.f32 %v8159_v57, %v1247_v27 }
 0x44f   : > { %v1256_v10 = vpop.xlane.xlu1 %1255 }
 0x450   : > { %7193 = vpow2.f32 %v1305_v31  ;;  %v1307_v34 = vmul.f32 1.442695, %v1289_v11  ;;  %v1292_v39 = vsub.f32 %v8167_v55, %v1256_v10 }
 0x451   : > { %v1250_v13 = vpop.xlane.xlu0 %1249 }
 0x452   : > { %7195 = vpow2.f32 %v1307_v34  ;;  %v1290_v25 = vsub.f32 %v8172_v8, %v1250_v13  ;;  %v1313_v52 = vmul.f32 1.442695, %v1292_v39 }
 0x453   : > { %v1262_v40 = vpop.xlane.xlu1 %1261 }
 0x454   : > { %v1309_v35 = vmul.f32 1.442695, %v1290_v25  ;;  %v1294_v49 = vsub.f32 %v8177_v18, %v1262_v40 }
 0x455   : > { %v1253_v59 = vpop.xlane.xlu0 %1252 }
 0x456   : > { %7197 = vpow2.f32 %v1309_v35  ;;  %v1291_v47 = vsub.f32 %v8182_v1, %v1253_v59  ;;  %v1317_v56 = vmul.f32 1.442695, %v1294_v49 }
 0x457   : > { %v1268_v53 = vpop.xlane.xlu1 %1267  ;;  %7199 = vpow2.f32 %v1313_v52 }
 0x458   : > { %v8242_v57 = vpop.eup %7191  ;;  %v1311_v60 = vmul.f32 1.442695, %v1291_v47  ;;  %v1296_v55 = vsub.f32 %v8187_v0, %v1268_v53 }
 0x459   : > { %v1259_v61 = vpop.xlane.xlu0 %1258  ;;  %v1335_v8 = vsel %vm841_vm2, %v8242_v57, 0.0 }
 0x45a   : > { %v8247_v5 = vpop.eup %7193  ;;  %7201 = vpow2.f32 %v1311_v60  ;;  %v1293_v18 = vsub.f32 %v8192_v30, %v1259_v61  ;;  %1336 = vadd.xlane.f32.xlu0 %v1335_v8  ;;  %v1321_v20 = vmul.f32 1.442695, %v1296_v55 }
 0x45b   : > { %v1274_v54 = vpop.xlane.xlu1 %1273  ;;  %v1338_v1 = vsel %vm841_vm2, %v8247_v5, 0.0  ;;  %7203 = vpow2.f32 %v1317_v56 }
 0x45c   : > { %v8252_v15 = vpop.eup %7195  ;;  %v1315_v48 = vmul.f32 1.442695, %v1293_v18  ;;  %v1298_v0 = vsub.f32 %v8197_v32, %v1274_v54  ;;  %1339 = vadd.xlane.f32.xlu1 %v1338_v1 }
 0x45d   : > { %v1265_v21 = vpop.xlane.xlu0 %1264  ;;  %v1341_v22 = vsel %vm841_vm2, %v8252_v15, 0.0 }
 0x45e   : > { %7205 = vpow2.f32 %v1315_v48  ;;  %v1295_v30 = vsub.f32 %v8202_v33, %v1265_v21  ;;  %1342 = vadd.xlane.f32.xlu0 %v1341_v22  ;;  %v1325_v27 = vmul.f32 1.442695, %v1298_v0 }
 0x45f   : > { %v1280_v23 = vpop.xlane.xlu1 %1279  ;;  %7207 = vpow2.f32 %v1321_v20 }
 0x460   : > { %v8258_v24 = vpop.eup %7197  ;;  %v1319_v31 = vmul.f32 1.442695, %v1295_v30  ;;  %v1300_v11 = vsub.f32 %v8212_v42, %v1280_v23 }
 0x461   : > { %v1271_v10 = vpop.xlane.xlu0 %1270  ;;  %v1344_v32 = vsel %vm841_vm2, %v8258_v24, 0.0  ;;  %v8263_v34 = vpop.eup %7199 }
 0x462   : > { %7209 = vpow2.f32 %v1319_v31  ;;  %v1297_v39 = vsub.f32 %v8209_v41, %v1271_v10  ;;  %1345 = vadd.xlane.f32.xlu1 %v1344_v32  ;;  %v1329_v13 = vmul.f32 1.442695, %v1300_v11  ;;  %v1350_v52 = vsel %vm841_vm2, %v8263_v34, 0.0 }
 0x463   : > { %7211 = vpow2.f32 %v1325_v27 }
 0x464   : > { %v8266_v33 = vpop.eup %7201  ;;  %v1323_v25 = vmul.f32 1.442695, %v1297_v39 }
 0x465   : > { %v1277_v40 = vpop.xlane.xlu0 %1276  ;;  %v1347_v42 = vsel %vm841_vm2, %v8266_v33, 0.0  ;;  %v8272_v35 = vpop.eup %7203 }
 0x466   : > { %7213 = vpow2.f32 %v1323_v25  ;;  %v1299_v49 = vsub.f32 %v8219_v51, %v1277_v40  ;;  %1351 = vadd.xlane.f32.xlu1 %v1350_v52  ;;  %1348 = vadd.xlane.f32.xlu0 %v1347_v42  ;;  %v1356_v60 = vsel %vm841_vm2, %v8272_v35, 0.0 }
 0x467   : > { %v1286_v41 = vpop.xlane.xlu1 %1285  ;;  %7215 = vpow2.f32 %v1329_v13 }
 0x468   : > { %v8275_v59 = vpop.eup %7205  ;;  %v1327_v47 = vmul.f32 1.442695, %v1299_v49  ;;  %v1302_v53 = vsub.f32 %v8227_v4, %v1286_v41 }
 0x469   : > { %v1283_v56 = vpop.xlane.xlu0 %1282  ;;  %v1353_v55 = vsel %vm841_vm2, %v8275_v59, 0.0  ;;  %v8282_v61 = vpop.eup %7207 }
 0x46a   : > { %7217 = vpow2.f32 %v1327_v47  ;;  %v1333_v51 = vmul.f32 1.442695, %v1302_v53  ;;  %v1301_v8 = vsub.f32 %v8224_v3, %v1283_v56  ;;  %1357 = vadd.xlane.f32.xlu1 %v1356_v60  ;;  %1354 = vadd.xlane.f32.xlu0 %v1353_v55  ;;  %v1362_v4 = vsel %vm841_vm2, %v8282_v61, 0.0 }
 0x46c   : > { %v8285_v18 = vpop.eup %7209  ;;  %7219 = vpow2.f32 %v1333_v51  ;;  %v1331_v54 = vmul.f32 1.442695, %v1301_v8 }
 0x46d   : > { %v1359_v1 = vsel %vm841_vm2, %v8285_v18, 0.0  ;;  %v8291_v20 = vpop.eup %7211 }
 0x46e   : > { %7221 = vpow2.f32 %v1331_v54  ;;  %1363 = vadd.xlane.f32.xlu1 %v1362_v4  ;;  %1360 = vadd.xlane.f32.xlu0 %v1359_v1  ;;  %v1368_v3 = vsel %vm841_vm2, %v8291_v20, 0.0 }
 0x470   : > { %v8293_v48 = vpop.eup %7213 }
 0x471   : > { %v1365_v0 = vsel %vm841_vm2, %v8293_v48, 0.0  ;;  %v8299_v21 = vpop.eup %7215 }
 0x472   : > { %1369 = vadd.xlane.f32.xlu1 %v1368_v3  ;;  %1366 = vadd.xlane.f32.xlu0 %v1365_v0  ;;  %v1374_v30 = vsel %vm841_vm2, %v8299_v21, 0.0 }
 0x474   : > { %v8301_v22 = vpop.eup %7217 }
 0x475   : > { %v1371_v23 = vsel %vm841_vm2, %v8301_v22, 0.0 }
 0x476   : > { %v8307_v27 = vpop.eup %7219  ;;  %1375 = vadd.xlane.f32.xlu1 %v1374_v30  ;;  %1372 = vadd.xlane.f32.xlu0 %v1371_v23 }
 0x477   : > { %v1380_v11 = vsel %vm841_vm2, %v8307_v27, 0.0 }
 0x478   : > { %v8309_v31 = vpop.eup %7221 }
 0x479   : > { %v1377_v10 = vsel %vm841_vm2, %v8309_v31, 0.0 }
 0x47a   : > { %1381 = vadd.xlane.f32.xlu1 %v1380_v11  ;;  %1378 = vadd.xlane.f32.xlu0 %v1377_v10 }
 0x48b   : > { %1928 = vrot.lane.b32.xlu1 %v8017_v28, %s7604_s11 }
 0x48f   : > { %1981 = vrot.lane.b32.xlu1 %v8025_v63, %s7605_s30 }
 0x490   : > { %1930 = vrot.lane.b32.xlu0 %v8017_v28, %s7605_s30 }
 0x493   : > { %1979 = vrot.lane.b32.xlu1 %v8025_v63, %s7604_s11 }
 0x494   : > { %2032 = vrot.lane.b32.xlu0 %v8035_v9, %s7605_s30 }
 0x497   : > { %2030 = vrot.lane.b32.xlu1 %v8035_v9, %s7604_s11 }
 0x498   : > { %2083 = vrot.lane.b32.xlu0 %v8045_v12, %s7605_s30 }
 0x49b   : > { %2134 = vrot.lane.b32.xlu1 %v8057_v16, %s7605_s30 }
 0x49c   : > { %2081 = vrot.lane.b32.xlu0 %v8045_v12, %s7604_s11 }
 0x49f   : > { %2185 = vrot.lane.b32.xlu1 %v8067_v19, %s7605_s30 }
 0x4a0   : > { %2132 = vrot.lane.b32.xlu0 %v8057_v16, %s7604_s11 }
 0x4a3   : > { %2236 = vrot.lane.b32.xlu1 %v8077_v37, %s7605_s30 }
 0x4a4   : > { %2183 = vrot.lane.b32.xlu0 %v8067_v19, %s7604_s11 }
 0x4a7   : > { %2287 = vrot.lane.b32.xlu1 %v8087_v6, %s7605_s30 }
 0x4a8   : > { %2234 = vrot.lane.b32.xlu0 %v8077_v37, %s7604_s11 }
 0x4ab   : > { %2285 = vrot.lane.b32.xlu1 %v8087_v6, %s7604_s11 }
 0x4e7   : > { %v1337_v32 = vpop.xlane.xlu0 %1336 }
 0x4e8   : > { %7223 = vrcp.f32 %v1337_v32 }
 0x4e9   : > { %v1340_v39 = vpop.xlane.xlu1 %1339 }
 0x4ea   : > { %7225 = vrcp.f32 %v1340_v39 }
 0x4eb   : > { %v1343_v13 = vpop.xlane.xlu0 %1342 }
 0x4ec   : > { %7227 = vrcp.f32 %v1343_v13 }
 0x4ef   : > { %v1346_v25 = vpop.xlane.xlu1 %1345 }
 0x4f0   : > { %7229 = vrcp.f32 %v1346_v25 }
 0x4f2   : > { %v7224_v40 = vpop.eup %7223 }
 0x4f3   : > { %v1352_v52 = vpop.xlane.xlu1 %1351  ;;  %v1349_v42 = vpop.xlane.xlu0 %1348  ;;  %v1399_v41 = vmul.f32 %v7224_v40, %v8242_v57 }
 0x4f4   : > { %v7226_v49 = vpop.eup %7225  ;;  %7231 = vrcp.f32 %v1352_v52 }
 0x4f5   : > { %v1400_v47 = vmul.f32 %v7226_v49, %v8247_v5  ;;  %7233 = vrcp.f32 %v1349_v42 }
 0x4f6   : > { %v7228_v55 = vpop.eup %7227 }
 0x4f7   : > { %v1358_v53 = vpop.xlane.xlu1 %1357  ;;  %v1355_v56 = vpop.xlane.xlu0 %1354  ;;  %v1415_v60 = vpack.c.bf16 %v1400_v47, %v1399_v41  ;;  %v1401_v8 = vmul.f32 %v7228_v55, %v8252_v15 }
 0x4f8   : > { %7235 = vrcp.f32 %v1358_v53 }
 0x4f9   : > { %7237 = vrcp.f32 %v1355_v56  ;;  %6586 = vmatmul.mubr.msk.bf16.vlgmr.msra.gmra.mrb[28].mxu1 %vm841_vm2, %v1415_v60 }
 0x4fa   : > { %v7230_v51 = vpop.eup %7229  ;;  %6596 = vmatpush3.bf16.msra.mxu1 %v8037_v14  ;;  %6597 = vmatprep.mubr.msk.bf16.mxu1 %vm7602_vm1, %v7601_v44 }
 0x4fb   : > { %v1402_v57 = vmul.f32 %v7230_v51, %v8258_v24  ;;  %v1364_v5 = vpop.xlane.xlu1 %1363  ;;  %v1361_v54 = vpop.xlane.xlu0 %1360  ;;  %6607 = vmatprep.subr.bf16.mxu1 %v7601_v44 }
 0x4fc   : > { %7239 = vrcp.f32 %v1364_v5 }
 0x4fd   : > { %7241 = vrcp.f32 %v1361_v54  ;;  %v1416_v4 = vpack.c.bf16 %v1402_v57, %v1401_v8 }
 0x4fe   : > { %v7232_v1 = vpop.eup %7231 }
 0x4ff   : > { %v7234_v3 = vpop.eup %7233  ;;  %v1404_v0 = vmul.f32 %v7232_v1, %v8263_v34  ;;  %v1370_v30 = vpop.xlane.xlu1 %1369  ;;  %6592 = vmatmul.mubr.msk.bf16.vlgmr.msra.gmra.mrb[36].mxu0 %vm841_vm2, %v1416_v4 }
 0x500   : > { %v1367_v23 = vpop.xlane.xlu0 %1366  ;;  %v1403_v11 = vmul.f32 %v7234_v3, %v8266_v33  ;;  %7243 = vrcp.f32 %v1370_v30  ;;  %6602 = vmatpush3.bf16.msra.mxu0 %v8047_v26  ;;  %6603 = vmatprep.mubr.msk.bf16.mxu0 %vm7602_vm1, %v7601_v44 }
 0x501   : > { %7245 = vrcp.f32 %v1367_v23  ;;  %6613 = vmatprep.subr.bf16.mxu0 %v7601_v44 }
 0x502   : > { %v7236_v15 = vpop.eup %7235  ;;  %v1417_v24 = vpack.c.bf16 %v1404_v0, %v1403_v11 }
 0x503   : > { %v7238_v10 = vpop.eup %7237  ;;  %v1406_v34 = vmul.f32 %v7236_v15, %v8272_v35  ;;  %v1376_v32 = vpop.xlane.xlu1 %1375 }
 0x504   : > { %v1373_v39 = vpop.xlane.xlu0 %1372  ;;  %v1405_v13 = vmul.f32 %v7238_v10, %v8275_v59  ;;  %7247 = vrcp.f32 %v1376_v32  ;;  %6598 = vmatmul.mubr.msk.bf16.vlgmr.msra.gmra.mrb[32].mxu1 %vm841_vm2, %v1417_v24 }
 0x505   : > { %6608 = vmatpush3.bf16.msra.mxu1 %v8059_v38  ;;  %7249 = vrcp.f32 %v1373_v39  ;;  %6609 = vmatprep.mubr.msk.bf16.mxu1 %vm7602_vm1, %v7601_v44 }
 0x506   : > { %v7240_v33 = vpop.eup %7239  ;;  %v1418_v25 = vpack.c.bf16 %v1406_v34, %v1405_v13  ;;  %6619 = vmatprep.subr.bf16.mxu1 %v7601_v44 }
 0x507   : > { %v7242_v40 = vpop.eup %7241  ;;  %v1408_v35 = vmul.f32 %v7240_v33, %v8282_v61  ;;  %v1382_v52 = vpop.xlane.xlu1 %1381 }
 0x508   : > { %v1379_v42 = vpop.xlane.xlu0 %1378  ;;  %v1407_v59 = vmul.f32 %v7242_v40, %v8285_v18  ;;  %7251 = vrcp.f32 %v1382_v52  ;;  %6604 = vmatmul.mubr.msk.bf16.vlgmr.msra.gmra.mrb[40].mxu0 %vm841_vm2, %v1418_v25 }
 0x509   : > { %6614 = vmatpush3.bf16.msra.mxu0 %v8069_v36  ;;  %7253 = vrcp.f32 %v1379_v42  ;;  %6615 = vmatprep.mubr.msk.bf16.mxu0 %vm7602_vm1, %v7601_v44 }
 0x50a   : > { %v7244_v49 = vpop.eup %7243  ;;  %v1419_v41 = vpack.c.bf16 %v1408_v35, %v1407_v59  ;;  %6625 = vmatprep.subr.bf16.mxu0 %v7601_v44  ;;  %v7127_v35 = vld [vmem:[%s9789_s4] sm:$0xff]  }
 0x50b   : > { %v7246_v47 = vpop.eup %7245  ;;  %v1410_v61 = vmul.f32 %v7244_v49, %v8291_v20  ;;  %v1929_v54 = vpop.permute.xlu1 %1928 }
 0x50c   : > { %v1409_v53 = vmul.f32 %v7246_v47, %v8293_v48  ;;  %6610 = vmatmul.mubr.msk.bf16.vlgmr.msra.gmra.mrb[36].mxu1 %vm841_vm2, %v1419_v41 }
 0x50d   : > { %6620 = vmatpush3.bf16.msra.mxu1 %v8079_v58  ;;  %6621 = vmatprep.mubr.msk.bf16.mxu1 %vm7602_vm1, %v7601_v44 }
 0x50e   : > { %v7248_v18 = vpop.eup %7247  ;;  %v1420_v56 = vpack.c.bf16 %v1410_v61, %v1409_v53  ;;  %6631 = vmatprep.subr.bf16.mxu1 %v7127_v35 }
 0x50f   : > { %v7250_v60 = vpop.eup %7249  ;;  %v1412_v55 = vmul.f32 %v7248_v18, %v8299_v21  ;;  %v1931_v21 = vpop.permute.xlu0 %1930 }
 0x510   : > { %v1411_v51 = vmul.f32 %v7250_v60, %v8301_v22  ;;  %6616 = vmatmul.mubr.msk.bf16.vlgmr.msra.gmra.mrb[44].mxu0 %vm841_vm2, %v1420_v56  ;;  %v1936_v4 = vsel %vm841_vm2, %v1931_v21, 0  ;;  %v1982_v1 = vpop.permute.xlu1 %1981 }
 0x511   : > { %6626 = vmatpush3.bf16.msra.mxu0 %v8089_v7  ;;  %6627 = vmatprep.mubr.msk.bf16.mxu0 %vm7602_vm1, %v7601_v44 }
 0x512   : > { %v7252_v20 = vpop.eup %7251  ;;  %v1421_v48 = vpack.c.bf16 %v1412_v55, %v1411_v51  ;;  %6649 = vmatprep.subr.bf16.mxu0 %v7601_v44 }
 0x513   : > { %v7254_v8 = vpop.eup %7253  ;;  %v1414_v57 = vmul.f32 %v7252_v20, %v8307_v27  ;;  %v1987_v27 = vsel %vm841_vm2, %v1982_v1, 0 }
 0x514   : > { %v1413_v5 = vmul.f32 %v7254_v8, %v8309_v31  ;;  %6622 = vmatmul.mubr.msk.bf16.vlgmr.msra.gmra.mrb[40].mxu1 %vm841_vm2, %v1421_v48  ;;  %v1980_v3 = vpop.permute.xlu1 %1979  ;;  %v2033_v31 = vpop.permute.xlu0 %2032 }
 0x515   : > { %v2038_v30 = vsel %vm841_vm2, %v2033_v31, 0  ;;  %6632 = vmatpush3.bf16.msra.mxu1 %v7127_v35 }
 0x516   : > { %v1422_v22 = vpack.c.bf16 %v1414_v57, %v1413_v5  ;;  %6673 = vmatprep.subr.bf16.mxu1 %v7601_v44 }
 0x518   : > { %6628 = vmatmul.mubr.msk.bf16.vlgmr.msra.gmra.mrb[48].mxu0 %vm841_vm2, %v1422_v22  ;;  %v2031_v0 = vpop.permute.xlu1 %2030  ;;  %v2084_v11 = vpop.permute.xlu0 %2083 }
 0x519   : > { %6651 = vmatprep.mubr.msk.bf16.mxu0 %vm7602_vm1, %v7601_v44  ;;  %v2089_v15 = vsel %vm841_vm2, %v2084_v11, 0 }
 0x51a   : > { %6650 = vmatpush3.bf16.xpose.msra.mxu0 %v1936_v4 }
 0x51b   : > { %6655 = vmatprep.subr.bf16.mxu0 %v7601_v44 }
 0x51c   : > { %v2135_v23 = vpop.permute.xlu1 %2134  ;;  %v2082_v10 = vpop.permute.xlu0 %2081 }
 0x51d   : > { %v2140_v60 = vsel %vm841_vm2, %v2135_v23, 0 }
 0x520   : > { %v2186_v24 = vpop.permute.xlu1 %2185  ;;  %v8409_v39 = vpop.permute.xlu0 %2132 }
 0x521   : > { %6652 = vmatmul.mubr.msk.bf16.vlgmr.msra.gmra.mrb[52].mxu0 %vm841_vm2, %v1929_v54  ;;  %v2191_v32 = vsel %vm841_vm2, %v2186_v24, 0 }
 0x522   : > { %6656 = vmatpush3.bf16.xpose.msra.mxu0 %v1987_v27  ;;  %6657 = vmatprep.mubr.msk.bf16.mxu0 %vm7602_vm1, %v7601_v44 }
 0x523   : > { %6661 = vmatprep.subr.bf16.mxu0 %v7601_v44 }
 0x524   : > { %v8405_v34 = vpop.permute.xlu1 %2236  ;;  %v2184_v33 = vpop.permute.xlu0 %2183 }
 0x528   : > { %v2288_v13 = vpop.permute.xlu1 %2287 }
 0x529   : > { %6658 = vmatmul.mubr.msk.bf16.vlgmr.msra.gmra.mrb[56].mxu0 %vm841_vm2, %v1980_v3  ;;  %v2293_v25 = vsel %vm841_vm2, %v2288_v13, 0 }
 0x52a   : > { %6662 = vmatpush3.bf16.xpose.msra.mxu0 %v2038_v30  ;;  %6663 = vmatprep.mubr.msk.bf16.mxu0 %vm7602_vm1, %v7601_v44 }
 0x52b   : > { %6667 = vmatprep.subr.bf16.mxu0 %v7601_v44 }
 0x52c   : > { %v2286_v40 = vpop.permute.xlu1 %2285 }
 0x531   : > { %6664 = vmatmul.mubr.msk.bf16.vlgmr.msra.gmra.mrb[60].mxu0 %vm841_vm2, %v2031_v0 }
 0x532   : > { %6668 = vmatpush3.bf16.xpose.msra.mxu0 %v2089_v15  ;;  %6669 = vmatprep.mubr.msk.bf16.mxu0 %vm7602_vm1, %v7601_v44 }
 0x533   : > { %6679 = vmatprep.subr.bf16.mxu0 %v7601_v44 }
 0x539   : > { %6670 = vmatmul.mubr.msk.bf16.vlgmr.msra.gmra.mrb[64].mxu0 %vm841_vm2, %v2082_v10 }
 0x53a   : > { %6680 = vmatpush3.bf16.xpose.msra.mxu0 %v2191_v32  ;;  %6681 = vmatprep.mubr.msk.bf16.mxu0 %vm7602_vm1, %v7601_v44 }
 0x53b   : > { %6691 = vmatprep.subr.bf16.mxu0 %v7601_v44 }
 0x541   : > { %6682 = vmatmul.mubr.msk.bf16.vlgmr.msra.gmra.mrb[68].mxu0 %vm841_vm2, %v2184_v33 }
 0x542   : > { %6692 = vmatpush3.bf16.xpose.msra.mxu0 %v2293_v25  ;;  %6693 = vmatprep.mubr.msk.bf16.mxu0 %vm7602_vm1, %v7601_v44 }
 0x543   : > { %6703 = vmatprep.subr.bf16.mxu0 %v7601_v44 }
 0x549   : > { %6694 = vmatmul.mubr.msk.bf16.vlgmr.msra.gmra.mrb[72].mxu0 %vm841_vm2, %v2286_v40 }
 0x54a   : > { %6705 = vmatprep.mubr.msk.bf16.mxu0 %vm7602_vm1, %v7601_v44 }
 0x5cc   : > { %v1460_v52 = vpop.f32.mrb[28].mxu1 }
 0x5cd   : > { %v6587_v42 = vpop.f32.mrb[29].mxu1 }
 0x5ce   : > { %v1463_v59 = vpop.f32.mrb[30].mxu1 }
 0x5cf   : > { %v1775_v49 = vpack.c.bf16 %v1463_v59, %v1460_v52  ;;  %v6588_v41 = vpop.f32.mrb[31].mxu1 }
 0x5d1   : > { %6633 = vmatprep.mubr.msk.bf16.mxu1 %vm841_vm2, %v1775_v49 }
 0x5d2   : > { %v1504_v47 = vpop.f32.mrb[36].mxu0 }
 0x5d3   : > { %v6593_v61 = vpop.f32.mrb[37].mxu0 }
 0x5d4   : > { %v1507_v53 = vpop.f32.mrb[38].mxu0 }
 0x5d5   : > { %v1776_v18 = vpack.c.bf16 %v1507_v53, %v1504_v47  ;;  %v6594_v56 = vpop.f32.mrb[39].mxu0 }
 0x5d6   : > { %v2242_v56 = vsel %vm841_vm2, %v8405_v34, 0 }
 0x5d7   : > { %v1548_v55 = vpop.f32.mrb[32].mxu1  ;;  %6634 = vmatmul.mubr.msk.bf16.vlgmr.msra.gmra.mrb[44].mxu1 %vm841_vm2, %v1776_v18 }
 0x5d8   : > { %v6599_v51 = vpop.f32.mrb[33].mxu1  ;;  %6674 = vmatpush3.bf16.xpose.msra.mxu1 %v2140_v60 }
 0x5d9   : > { %v1551_v20 = vpop.f32.mrb[34].mxu1  ;;  %6685 = vmatprep.subr.bf16.mxu1 %v7601_v44 }
 0x5da   : > { %v1777_v48 = vpack.c.bf16 %v1551_v20, %v1548_v55  ;;  %v6600_v8 = vpop.f32.mrb[35].mxu1 }
 0x5db   : > { %v1592_v57 = vpop.f32.mrb[40].mxu0 }
 0x5dc   : > { %v6605_v5 = vpop.f32.mrb[41].mxu0  ;;  %6637 = vmatprep.mubr.msk.bf16.mxu1 %vm841_vm2, %v1777_v48  ;;  %v2235_v48 = vpop.permute.xlu0 %2234 }
 0x5dd   : > { %v1595_v54 = vpop.f32.mrb[42].mxu0 }
 0x5de   : > { %v1778_v21 = vpack.c.bf16 %v1595_v54, %v1592_v57  ;;  %v6606_v22 = vpop.f32.mrb[43].mxu0 }
 0x5df   : > { %v1636_v4 = vpop.f32.mrb[36].mxu1 }
 0x5e0   : > { %v6611_v1 = vpop.f32.mrb[37].mxu1  ;;  %6638 = vmatmul.mubr.msk.bf16.gmra.mrb[48].mxu1 %vm841_vm2, %v1778_v21 }
 0x5e1   : > { %v1639_v3 = vpop.f32.mrb[38].mxu1 }
 0x5e2   : > { %v1779_v27 = vpack.c.bf16 %v1639_v3, %v1636_v4  ;;  %v6612_v31 = vpop.f32.mrb[39].mxu1 }
 0x5e3   : > { %v1680_v0 = vpop.f32.mrb[44].mxu0 }
 0x5e4   : > { %v6617_v30 = vpop.f32.mrb[45].mxu0  ;;  %6641 = vmatprep.mubr.msk.bf16.mxu1 %vm841_vm2, %v1779_v27 }
 0x5e5   : > { %v1683_v23 = vpop.f32.mrb[46].mxu0 }
 0x5e6   : > { %v1780_v11 = vpack.c.bf16 %v1683_v23, %v1680_v0  ;;  %v6618_v15 = vpop.f32.mrb[47].mxu0 }
 0x5e7   : > { %v1724_v24 = vpop.f32.mrb[40].mxu1 }
 0x5e8   : > { %v6623_v10 = vpop.f32.mrb[41].mxu1  ;;  %6642 = vmatmul.mubr.msk.bf16.gmra.mrb[52].mxu1 %vm841_vm2, %v1780_v11 }
 0x5e9   : > { %v1727_v32 = vpop.f32.mrb[42].mxu1 }
 0x5ea   : > { %v1781_v13 = vpack.c.bf16 %v1727_v32, %v1724_v24  ;;  %v6624_v33 = vpop.f32.mrb[43].mxu1 }
 0x5eb   : > { %v1768_v25 = vpop.f32.mrb[48].mxu0 }
 0x5ec   : > { %v6629_v40 = vpop.f32.mrb[49].mxu0  ;;  %6645 = vmatprep.mubr.msk.bf16.mxu1 %vm841_vm2, %v1781_v13 }
 0x5ed   : > { %v1771_v35 = vpop.f32.mrb[50].mxu0 }
 0x5ee   : > { %v1782_v52 = vpack.c.bf16 %v1771_v35, %v1768_v25  ;;  %v6630_v42 = vpop.f32.mrb[51].mxu0 }
 0x5f0   : > { %6646 = vmatmul.mubr.msk.bf16.gmra.mrb[56].mxu1 %vm841_vm2, %v1782_v52 }
 0x5f1   : > { %6675 = vmatprep.mubr.msk.bf16.mxu1 %vm7602_vm1, %v7601_v44 }
 0x5f4   : > { %v1972_v59 = vpop.f32.mrb[52].mxu0 }
 0x5f5   : > { %v8439_v49 = vadd.f32 %v1972_v59, %v8148_v50  ;;  %v6653_v41 = vpop.f32.mrb[53].mxu0 }
 0x5f6   : > { %v1975_v47 = vpop.f32.mrb[54].mxu0 }
 0x5f7   : > { %v8442_v61 = vadd.f32 %v1975_v47, %v8156_v45  ;;  %v6654_v53 = vpop.f32.mrb[55].mxu0  ;;  %v2336_v18 = vsel %vm841_vm2, %v8439_v49, -inf }
 0x5f8   : > { %2337 = vmax.xlane.f32.xlu0 %v2336_v18  ;;  %6676 = vmatmul.mubr.msk.bf16.vlgmr.msra.gmra.mrb[60].mxu1 %vm841_vm2, %v8409_v39 }
 0x5f9   : > { %6686 = vmatpush3.bf16.xpose.msra.mxu1 %v2242_v56  ;;  %v2339_v60 = vsel %vm841_vm2, %v8442_v61, -inf  ;;  %6687 = vmatprep.mubr.msk.bf16.mxu1 %vm7602_vm1, %v7601_v44 }
 0x5fa   : > { %2340 = vmax.xlane.f32.xlu1 %v2339_v60  ;;  %6697 = vmatprep.subr.bf16.mxu1 %v7601_v44 }
 0x5fc   : > { %v2023_v55 = vpop.f32.mrb[56].mxu0 }
 0x5fd   : > { %v8456_v51 = vadd.f32 %v2023_v55, %v8148_v50  ;;  %v6659_v20 = vpop.f32.mrb[57].mxu0 }
 0x5fe   : > { %v2026_v34 = vpop.f32.mrb[58].mxu0 }
 0x5ff   : > { %v2027_v8 = vadd.f32 %v2026_v34, %v8156_v45  ;;  %v6660_v39 = vpop.f32.mrb[59].mxu0  ;;  %v2342_v57 = vsel %vm841_vm2, %v8456_v51, -inf }
 0x600   : > { %2343 = vmax.xlane.f32.xlu0 %v2342_v57  ;;  %6688 = vmatmul.mubr.msk.bf16.vlgmr.msra.gmra.mrb[64].mxu1 %vm841_vm2, %v2235_v48 }
 0x601   : > { %6699 = vmatprep.mubr.msk.bf16.mxu1 %vm7602_vm1, %v7601_v44  ;;  %v2345_v5 = vsel %vm841_vm2, %v2027_v8, -inf }
 0x604   : > { %2346 = vmax.xlane.f32.xlu0 %v2345_v5  ;;  %v2074_v54 = vpop.f32.mrb[60].mxu0 }
 0x605   : > { %v8466_v21 = vadd.f32 %v2074_v54, %v8148_v50  ;;  %v6665_v22 = vpop.f32.mrb[61].mxu0 }
 0x606   : > { %v2077_v4 = vpop.f32.mrb[62].mxu0 }
 0x607   : > { %v2078_v1 = vadd.f32 %v2077_v4, %v8156_v45  ;;  %v6666_v3 = vpop.f32.mrb[63].mxu0  ;;  %v2348_v27 = vsel %vm841_vm2, %v8466_v21, -inf }
 0x608   : > { %2349 = vmax.xlane.f32.xlu0 %v2348_v27 }
 0x609   : > { %v2351_v31 = vsel %vm841_vm2, %v2078_v1, -inf }
 0x60a   : > { %2352 = vmax.xlane.f32.xlu1 %v2351_v31 }
 0x60c   : > { %v2125_v0 = vpop.f32.mrb[64].mxu0 }
 0x60d   : > { %v8473_v30 = vadd.f32 %v2125_v0, %v8148_v50  ;;  %v6671_v23 = vpop.f32.mrb[65].mxu0 }
 0x60e   : > { %v2128_v11 = vpop.f32.mrb[66].mxu0 }
 0x60f   : > { %v8476_v15 = vadd.f32 %v2128_v11, %v8156_v45  ;;  %v6672_v24 = vpop.f32.mrb[67].mxu0  ;;  %v2354_v10 = vsel %vm841_vm2, %v8473_v30, -inf }
 0x610   : > { %2355 = vmax.xlane.f32.xlu0 %v2354_v10 }
 0x611   : > { %v2357_v32 = vsel %vm841_vm2, %v8476_v15, -inf }
 0x612   : > { %2358 = vmax.xlane.f32.xlu1 %v2357_v32 }
 0x614   : > { %v2227_v13 = vpop.f32.mrb[68].mxu0 }
 0x615   : > { %v8483_v33 = vadd.f32 %v2227_v13, %v8148_v50  ;;  %v6683_v25 = vpop.f32.mrb[69].mxu0 }
 0x616   : > { %v2230_v40 = vpop.f32.mrb[70].mxu0 }
 0x617   : > { %v8486_v35 = vadd.f32 %v2230_v40, %v8156_v45  ;;  %v6684_v52 = vpop.f32.mrb[71].mxu0  ;;  %v2366_v42 = vsel %vm841_vm2, %v8483_v33, -inf }
 0x618   : > { %2367 = vmax.xlane.f32.xlu0 %v2366_v42 }
 0x619   : > { %v2369_v59 = vsel %vm841_vm2, %v8486_v35, -inf }
 0x61a   : > { %2370 = vmax.xlane.f32.xlu1 %v2369_v59 }
 0x61c   : > { %v2329_v41 = vpop.f32.mrb[72].mxu0 }
 0x61d   : > { %v6695_v47 = vpop.f32.mrb[73].mxu0  ;;  %v8505_v13 = vadd.f32 %v2329_v41, %v8148_v50 }
 0x61e   : > { %v2332_v53 = vpop.f32.mrb[74].mxu0 }
 0x61f   : > { %v8493_v18 = vadd.f32 %v2332_v53, %v8156_v45  ;;  %v6696_v56 = vpop.f32.mrb[75].mxu0  ;;  %v2378_v53 = vsel %vm841_vm2, %v8505_v13, -inf }
 0x621   : > { %v2381_v60 = vsel %vm841_vm2, %v8493_v18, -inf }
 0x622   : > { %2382 = vmax.xlane.f32.xlu1 %v2381_v60 }
 0x685   : > { %v2338_v55 = vpop.xlane.xlu0 %2337 }
 0x686   : > { %v2384_v22 = vsub.f32 %v8439_v49, %v2338_v55 }
 0x687   : > { %v2341_v34 = vpop.xlane.xlu1 %2340 }
 0x688   : > { %v2385_v48 = vsub.f32 %v8442_v61, %v2341_v34  ;;  %v2400_v27 = vmul.f32 1.442695, %v2384_v22 }
 0x68a   : > { %v2402_v57 = vmul.f32 1.442695, %v2385_v48 }
 0x68c   : > { %7255 = vpow2.f32 %v2402_v57 }
 0x68d   : > { %v2344_v20 = vpop.xlane.xlu0 %2343 }
 0x68e   : > { %v2386_v31 = vsub.f32 %v8456_v51, %v2344_v20 }
 0x691   : > { %v2347_v39 = vpop.xlane.xlu0 %2346 }
 0x692   : > { %v2387_v5 = vsub.f32 %v2027_v8, %v2347_v39  ;;  %v2404_v8 = vmul.f32 1.442695, %v2386_v31 }
 0x694   : > { %v2406_v4 = vmul.f32 1.442695, %v2387_v5 }
 0x695   : > { %v2350_v0 = vpop.xlane.xlu0 %2349 }
 0x696   : > { %7257 = vpow2.f32 %v2406_v4  ;;  %v2388_v32 = vsub.f32 %v8466_v21, %v2350_v0  ;;  %v8515_v59 = vpop.eup %7255 }
 0x697   : > { %v2353_v54 = vpop.xlane.xlu1 %2352  ;;  %7259 = vpow2.f32 %v2400_v27  ;;  %v2435_v48 = vsel %vm841_vm2, %v8515_v59, 0.0 }
 0x698   : > { %v2389_v3 = vsub.f32 %v2078_v1, %v2353_v54  ;;  %v2408_v41 = vmul.f32 1.442695, %v2388_v32 }
 0x69a   : > { %v2410_v23 = vmul.f32 1.442695, %v2389_v3 }
 0x69c   : > { %7261 = vpow2.f32 %v2410_v23 }
 0x69d   : > { %v2356_v1 = vpop.xlane.xlu0 %2355  ;;  %7263 = vpow2.f32 %v2404_v8 }
 0x69e   : > { %v2390_v47 = vsub.f32 %v8473_v30, %v2356_v1  ;;  %7265 = vpow2.f32 %v2408_v41 }
 0x69f   : > { %v2359_v24 = vpop.xlane.xlu1 %2358 }
 0x6a0   : > { %v2391_v52 = vsub.f32 %v8476_v15, %v2359_v24  ;;  %v8526_v39 = vpop.eup %7257  ;;  %v2412_v30 = vmul.f32 1.442695, %v2390_v47 }
 0x6a1   : > { %v8531_v22 = vpop.eup %7259  ;;  %v2441_v3 = vsel %vm841_vm2, %v8526_v39, 0.0 }
 0x6a2   : > { %v2414_v56 = vmul.f32 1.442695, %v2391_v52  ;;  %v2432_v31 = vsel %vm841_vm2, %v8531_v22, 0.0 }
 0x6a4   : > { %7267 = vpow2.f32 %v2414_v56 }
 0x6a5   : > { %7269 = vpow2.f32 %v2412_v30 }
 0x6a6   : > { %v8536_v27 = vpop.eup %7261 }
 0x6a7   : > { %v2371_v42 = vpop.xlane.xlu1 %2370  ;;  %v8540_v0 = vpop.eup %7263  ;;  %v2447_v24 = vsel %vm841_vm2, %v8536_v27, 0.0 }
 0x6a8   : > { %v2395_v60 = vsub.f32 %v8486_v35, %v2371_v42  ;;  %v8552_v8 = vpop.eup %7265 }
 0x6a9   : > { %v2444_v1 = vsel %vm841_vm2, %v8552_v8, 0.0 }
 0x6af   : > { %v2383_v55 = vpop.xlane.xlu1 %2382 }
 0x6b0   : > { %v2399_v4 = vsub.f32 %v8493_v18, %v2383_v55  ;;  %v8545_v18 = vld [vmem:[%s9786_s1 + $0x8] sm:$0xff] }
 0x6b2   : > { %v2430_v23 = vmul.f32 1.442695, %v2399_v4 }
 0x6cb   : > { %v2176_v11 = vpop.f32.mrb[60].mxu1 }
 0x6cc   : > { %v8501_v10 = vadd.f32 %v2176_v11, %v8148_v50  ;;  %v6677_v61 = vpop.f32.mrb[61].mxu1 }
 0x6cd   : > { %v2179_v49 = vpop.f32.mrb[62].mxu1  ;;  %v2438_v61 = vsel %vm841_vm2, %v8540_v0, 0.0 }
 0x6ce   : > { %v8508_v51 = vadd.f32 %v2179_v49, %v8156_v45  ;;  %v6678_v25 = vpop.f32.mrb[63].mxu1  ;;  %v2360_v40 = vsel %vm841_vm2, %v8501_v10, -inf  ;;  %v2368_v45 = vpop.xlane.xlu0 %2367 }
 0x6cf   : > { %2361 = vmax.xlane.f32.xlu0 %v2360_v40  ;;  %v2394_v57 = vsub.f32 %v8483_v33, %v2368_v45  ;;  %v8555_v49 = vpop.eup %7267 }
 0x6d0   : > { %v2363_v21 = vsel %vm841_vm2, %v8508_v51, -inf  ;;  %v8559_v25 = vpop.eup %7269  ;;  %v2453_v40 = vsel %vm841_vm2, %v8555_v49, 0.0 }
 0x6d1   : > { %2364 = vmax.xlane.f32.xlu1 %v2363_v21  ;;  %v2420_v33 = vmul.f32 1.442695, %v2394_v57  ;;  %v2450_v42 = vsel %vm841_vm2, %v8559_v25, 0.0 }
 0x6d3   : > { %2379 = vmax.xlane.f32.xlu0 %v2378_v53  ;;  %v2278_v15 = vpop.f32.mrb[64].mxu1 }
 0x6d4   : > { %v8522_v20 = vadd.f32 %v2278_v15, %v8148_v50  ;;  %v6689_v34 = vpop.f32.mrb[65].mxu1  ;;  %v2422_v50 = vmul.f32 1.442695, %v2395_v60 }
 0x6d5   : > { %2436 = vadd.xlane.f32.xlu1 %v2435_v48  ;;  %v2281_v5 = vpop.f32.mrb[66].mxu1 }
 0x6d6   : > { %v6690_v54 = vpop.f32.mrb[67].mxu1  ;;  %v2372_v35 = vsel %vm841_vm2, %v8522_v20, -inf  ;;  %7271 = vpow2.f32 %v2422_v50  ;;  %v2282_v11 = vadd.f32 %v8545_v18, %v2281_v5 }
 0x6d7   : > { %2373 = vmax.xlane.f32.xlu0 %v2372_v35  ;;  %7273 = vpow2.f32 %v2420_v33 }
 0x6d8   : > { %7275 = vpow2.f32 %v2430_v23  ;;  %v2375_v32 = vsel %vm841_vm2, %v2282_v11, -inf }
 0x6d9   : > { %2442 = vadd.xlane.f32.xlu1 %v2441_v3 }
 0x6db   : > { %2433 = vadd.xlane.f32.xlu0 %v2432_v31 }
 0x6dd   : > { %2448 = vadd.xlane.f32.xlu1 %v2447_v24 }
 0x6df   : > { %2439 = vadd.xlane.f32.xlu0 %v2438_v61 }
 0x6e0   : > { %v8563_v52 = vpop.eup %7271 }
 0x6e1   : > { %2376 = vmax.xlane.f32.xlu1 %v2375_v32  ;;  %v8567_v21 = vpop.eup %7273  ;;  %v2465_v41 = vsel %vm841_vm2, %v8563_v52, 0.0 }
 0x6e2   : > { %v8571_v47 = vpop.eup %7275  ;;  %v2462_v45 = vsel %vm841_vm2, %v8567_v21, 0.0 }
 0x6e3   : > { %2445 = vadd.xlane.f32.xlu0 %v2444_v1  ;;  %v2477_v53 = vsel %vm841_vm2, %v8571_v47, 0.0 }
 0x6e5   : > { %2454 = vadd.xlane.f32.xlu1 %v2453_v40 }
 0x6e7   : > { %2451 = vadd.xlane.f32.xlu0 %v2450_v42 }
 0x6e9   : > { %2466 = vadd.xlane.f32.xlu1 %v2465_v41 }
 0x6eb   : > { %2463 = vadd.xlane.f32.xlu0 %v2462_v45 }
 0x6ed   : > { %2478 = vadd.xlane.f32.xlu1 %v2477_v53 }
 0x6fe   : > { %2569 = vrot.lane.b32.xlu1 %v8027_v2, %s7604_s11 }
 0x702   : > { %2617 = vrot.lane.b32.xlu1 %v8037_v14, %s7604_s11 }
 0x706   : > { %2665 = vrot.lane.b32.xlu1 %v8047_v26, %s7604_s11 }
 0x70a   : > { %2761 = vrot.lane.b32.xlu1 %v8069_v36, %s7604_s11 }
 0x75c   : > { %v8585_v56 = vpop.xlane.xlu0 %2361 }
 0x75e   : > { %v2365_v60 = vpop.xlane.xlu1 %2364 }
 0x75f   : > { %v2393_v15 = vsub.f32 %v8508_v51, %v2365_v60 }
 0x760   : > { %v2380_v55 = vpop.xlane.xlu0 %2379 }
 0x761   : > { %v2418_v34 = vmul.f32 1.442695, %v2393_v15  ;;  %v2398_v48 = vsub.f32 %v8505_v13, %v2380_v55 }
 0x762   : > { %v8589_v30 = vpop.xlane.xlu1 %2436 }
 0x763   : > { %7277 = vpow2.f32 %v2418_v34  ;;  %v2428_v57 = vmul.f32 1.442695, %v2398_v48 }
 0x764   : > { %v8591_v5 = vpop.xlane.xlu0 %2373 }
 0x765   : > { %7279 = vpow2.f32 %v2428_v57 }
 0x766   : > { %v2443_v54 = vpop.xlane.xlu1 %2442 }
 0x768   : > { %v8593_v35 = vpop.xlane.xlu0 %2433 }
 0x76a   : > { %v8595_v50 = vpop.xlane.xlu1 %2448 }
 0x76c   : > { %v2440_v4 = vpop.xlane.xlu0 %2439 }
 0x76d   : > { %v8597_v3 = vpop.eup %7277  ;;  %7281 = vrcp.f32 %v2440_v4 }
 0x76e   : > { %v2377_v51 = vpop.xlane.xlu1 %2376  ;;  %v2459_v33 = vsel %vm841_vm2, %v8597_v3, 0.0  ;;  %7283 = vrcp.f32 %v2443_v54 }
 0x76f   : > { %v8601_v13 = vpop.eup %7279  ;;  %v2397_v31 = vsub.f32 %v2282_v11, %v2377_v51  ;;  %2460 = vadd.xlane.f32.xlu1 %v2459_v33 }
 0x770   : > { %v8603_v23 = vpop.xlane.xlu0 %2445  ;;  %v2474_v24 = vsel %vm841_vm2, %v8601_v13, 0.0 }
 0x771   : > { %v2426_v61 = vmul.f32 1.442695, %v2397_v31  ;;  %2475 = vadd.xlane.f32.xlu0 %v2474_v24 }
 0x772   : > { %v2455_v32 = vpop.xlane.xlu1 %2454 }
 0x773   : > { %7285 = vpow2.f32 %v2426_v61 }
 0x774   : > { %v2452_v1 = vpop.xlane.xlu0 %2451 }
 0x775   : > { %7287 = vrcp.f32 %v2452_v1  ;;  %v2392_v1 = vsub.f32 %v8501_v10, %v8585_v56 }
 0x776   : > { %v2467_v40 = vpop.xlane.xlu1 %2466  ;;  %7289 = vrcp.f32 %v2455_v32 }
 0x777   : > { %v7282_v42 = vpop.eup %7281 }
 0x778   : > { %v7284_v45 = vpop.eup %7283  ;;  %v2498_v11 = vmul.f32 %v7282_v42, %v8540_v0  ;;  %v2464_v53 = vpop.xlane.xlu0 %2463 }
 0x779   : > { %v2499_v15 = vmul.f32 %v7284_v45, %v8526_v39  ;;  %7291 = vrcp.f32 %v2464_v53 }
 0x77a   : > { %v8607_v41 = vpop.xlane.xlu1 %2478  ;;  %7293 = vrcp.f32 %v2467_v40 }
 0x77b   : > { %v2513_v48 = vpack.c.bf16 %v2499_v15, %v2498_v11 }
 0x77d   : > { %v8610_v60 = vpop.eup %7285 }
 0x77e   : > { %v2570_v55 = vpop.permute.xlu1 %2569  ;;  %v2471_v34 = vsel %vm841_vm2, %v8610_v60, 0.0 }
 0x77f   : > { %2472 = vadd.xlane.f32.xlu1 %v2471_v34  ;;  %6704 = vmatpush3.bf16.msra.mxu0 %v2570_v55  ;;  %v7288_v57 = vpop.eup %7287 }
 0x780   : > { %6715 = vmatprep.subr.bf16.mxu0 %v7601_v44  ;;  %v7290_v0 = vpop.eup %7289  ;;  %v2502_v39 = vmul.f32 %v7288_v57, %v8559_v25 }
 0x781   : > { %v2503_v4 = vmul.f32 %v7290_v0, %v8555_v49 }
 0x782   : > { %v8616_v54 = vpop.permute.xlu1 %2617  ;;  %6706 = vmatmul.mubr.msk.bf16.vlgmr.msra.gmra.mrb[76].mxu0 %vm841_vm2, %v2513_v48 }
 0x783   : > { %6717 = vmatprep.mubr.msk.bf16.mxu0 %vm7602_vm1, %v7601_v44  ;;  %v2515_v33 = vpack.c.bf16 %v2503_v4, %v2502_v39  ;;  %v7292_v31 = vpop.eup %7291 }
 0x784   : > { %v7294_v61 = vpop.eup %7293  ;;  %v2506_v25 = vmul.f32 %v7292_v31, %v8567_v21  ;;  %v2416_v21 = vmul.f32 1.442695, %v2392_v1  ;;  %v7128_v1 = vld [vmem:[%s9789_s4 + $0x8] sm:$0xff]  }
 0x785   : > { %v2507_v49 = vmul.f32 %v7294_v61, %v8563_v52  ;;  %v2396_v52 = vsub.f32 %v8522_v20, %v8591_v5 }
 0x786   : > { %v2666_v51 = vpop.permute.xlu1 %2665  ;;  %7295 = vpow2.f32 %v2416_v21 }
 0x787   : > { %2521 = vrot.lane.b32.xlu0 %v8019_v29, %s7604_s11  ;;  %6716 = vmatpush3.bf16.msra.mxu0 %v2666_v51  ;;  %v2517_v32 = vpack.c.bf16 %v2507_v49, %v2506_v25  ;;  %v2424_v40 = vmul.f32 1.442695, %v2396_v52 }
 0x788   : > { %6727 = vmatprep.subr.bf16.mxu0 %v7601_v44 }
 0x789   : > { %7297 = vpow2.f32 %v2424_v40 }
 0x78a   : > { %v2762_v24 = vpop.permute.xlu1 %2761  ;;  %6718 = vmatmul.mubr.msk.bf16.vlgmr.msra.gmra.mrb[80].mxu0 %vm841_vm2, %v2515_v33  ;;  %7299 = vrcp.f32 %v8593_v35 }
 0x78b   : > { %2713 = vrot.lane.b32.xlu0 %v8059_v38, %s7604_s11  ;;  %6728 = vmatpush3.bf16.msra.mxu0 %v2762_v24  ;;  %7301 = vrcp.f32 %v8589_v30 }
 0x78c   : > { %6729 = vmatprep.mubr.msk.bf16.mxu0 %vm7602_vm1, %v7601_v44  ;;  %6739 = vmatprep.subr.bf16.mxu0 %v7601_v44  ;;  %7303 = vrcp.f32 %v8603_v23 }
 0x78d   : > { %7305 = vrcp.f32 %v8595_v50 }
 0x790   : > { %2857 = vrot.lane.b32.xlu1 %v8089_v7, %s7604_s11  ;;  %v8651_v10 = vpop.eup %7295 }
 0x791   : > { %v2456_v20 = vsel %vm841_vm2, %v8651_v10, 0.0 }
 0x792   : > { %6730 = vmatmul.mubr.msk.bf16.vlgmr.msra.gmra.mrb[84].mxu0 %vm841_vm2, %v2517_v32 }
 0x793   : > { %6741 = vmatprep.mubr.msk.bf16.mxu0 %vm7602_vm1, %v7601_v44  ;;  %v8656_v56 = vpop.eup %7297 }
 0x794   : > { %3058 = vrot.lane.b32.xlu1 %v8017_v28, %s7606_s12  ;;  %v2468_v5 = vsel %vm841_vm2, %v8656_v56, 0.0  ;;  %v7300_v42 = vpop.eup %7299 }
 0x795   : > { %v7302_v11 = vpop.eup %7301  ;;  %v2496_v53 = vmul.f32 %v7300_v42, %v8531_v22 }
 0x796   : > { %v2497_v15 = vmul.f32 %v7302_v11, %v8515_v59  ;;  %v7304_v30 = vpop.eup %7303 }
 0x797   : > { %v7306_v35 = vpop.eup %7305  ;;  %v2500_v22 = vmul.f32 %v7304_v30, %v8552_v8 }
 0x798   : > { %3109 = vrot.lane.b32.xlu1 %v8025_v63, %s7606_s12  ;;  %v2512_v34 = vpack.c.bf16 %v2497_v15, %v2496_v53  ;;  %v2501_v59 = vmul.f32 %v7306_v35, %v8536_v27 }
 0x79a   : > { %v2514_v48 = vpack.c.bf16 %v2501_v59, %v2500_v22 }
 0x79c   : > { %3160 = vrot.lane.b32.xlu1 %v8035_v9, %s7606_s12 }
 0x7a0   : > { %3264 = vrot.lane.b32.xlu1 %v8057_v16, %s7607_s20 }
 0x7a4   : > { %3315 = vrot.lane.b32.xlu1 %v8067_v19, %s7607_s20 }
 0x7a8   : > { %3366 = vrot.lane.b32.xlu1 %v8077_v37, %s7607_s20 }
 0x7aa   : > { %2457 = vadd.xlane.f32.xlu0 %v2456_v20 }
 0x7ac   : > { %3417 = vrot.lane.b32.xlu1 %v8087_v6, %s7607_s20 }
 0x7ae   : > { %2469 = vadd.xlane.f32.xlu0 %v2468_v5 }
 0x7b0   : > { %3415 = vrot.lane.b32.xlu1 %v8087_v6, %s7606_s12 }
 0x7c4   : > { %2809 = vrot.lane.b32.xlu0 %v8079_v58, %s7604_s11 }
 0x7c8   : > { %3060 = vrot.lane.b32.xlu0 %v8017_v28, %s7607_s20 }
 0x7cc   : > { %3111 = vrot.lane.b32.xlu0 %v8025_v63, %s7607_s20 }
 0x7d0   : > { %3162 = vrot.lane.b32.xlu0 %v8035_v9, %s7607_s20 }
 0x7d4   : > { %3213 = vrot.lane.b32.xlu0 %v8045_v12, %s7607_s20  ;;  %s9671_s20 = scalar_lea.vmem [#allocation5], %s6139_s27  ;;  %s6306_s27 = sshll.u32 %s7689_s17, 11 }
 0x7d5   : > { %s6058_s21 = sshll.u32 %s9671_s20, 4  ;;  %s9734_s29 = scalar_lea.hbm %s9795_s10, %s6306_s27  ;;  %s9736_s21 = int_to_ptr.vmem [resolvable:$true] %s6058_s21 }
 0x7d6   : > { %s6044_s17 = scalar_lea.sflag [#allocation4], %s7772_s18 }
 0x7d8   : > { %3211 = vrot.lane.b32.xlu0 %v8045_v12, %s7606_s12 }
 0x7dc   : > { %3262 = vrot.lane.b32.xlu0 %v8057_v16, %s7606_s12 }
 0x7e0   : > { %3313 = vrot.lane.b32.xlu0 %v8067_v19, %s7606_s12 }
 0x7e4   : > { %3364 = vrot.lane.b32.xlu0 %v8077_v37, %s7606_s12 }
 0x7fc   : > { %v2461_v50 = vpop.xlane.xlu1 %2460 }
 0x7fe   : > { %v2476_v45 = vpop.xlane.xlu0 %2475 }
 0x7ff   : > { %7307 = vrcp.f32 %v2476_v45 }
 0x800   : > { %7309 = vrcp.f32 %v8607_v41 }
 0x801   : > { %7311 = vrcp.f32 %v2461_v50 }
 0x802   : > { %v2522_v55 = vpop.permute.xlu0 %2521 }
 0x803   : > { %6698 = vmatpush3.bf16.msra.mxu1 %v2522_v55 }
 0x804   : > { %6709 = vmatprep.subr.bf16.mxu1 %v7601_v44 }
 0x806   : > { %6700 = vmatmul.mubr.msk.bf16.vlgmr.msra.gmra.mrb[68].mxu1 %vm841_vm2, %v2512_v34  ;;  %v2714_v39 = vpop.permute.xlu0 %2713 }
 0x807   : > { %6710 = vmatpush3.bf16.msra.mxu1 %v8616_v54  ;;  %6711 = vmatprep.mubr.msk.bf16.mxu1 %vm7602_vm1, %v7601_v44 }
 0x808   : > { %6721 = vmatprep.subr.bf16.mxu1 %v7601_v44 }
 0x809   : > { %v7308_v23 = vpop.eup %7307 }
 0x80a   : > { %v7310_v57 = vpop.eup %7309  ;;  %v2510_v0 = vmul.f32 %v7308_v23, %v8601_v13 }
 0x80b   : > { %v2511_v8 = vmul.f32 %v7310_v57, %v8571_v47  ;;  %v7312_v47 = vpop.eup %7311 }
 0x80c   : > { %v2473_v41 = vpop.xlane.xlu1 %2472  ;;  %v2505_v31 = vmul.f32 %v7312_v47, %v8597_v3 }
 0x80d   : > { %v2519_v27 = vpack.c.bf16 %v2511_v8, %v2510_v0 }
 0x80e   : > { %6712 = vmatmul.mubr.msk.bf16.vlgmr.msra.gmra.mrb[72].mxu1 %vm841_vm2, %v2514_v48 }
 0x80f   : > { %6722 = vmatpush3.bf16.msra.mxu1 %v2714_v39  ;;  %6723 = vmatprep.mubr.msk.bf16.mxu1 %vm7602_vm1, %v7601_v44 }
 0x810   : > { %v2858_v54 = vpop.permute.xlu1 %2857  ;;  %6733 = vmatprep.subr.bf16.mxu1 %v7601_v44 }
 0x811   : > { %6740 = vmatpush3.bf16.msra.mxu0 %v2858_v54 }
 0x812   : > { %6763 = vmatprep.subr.bf16.mxu0 %v7601_v44 }
 0x814   : > { %6742 = vmatmul.mubr.msk.bf16.vlgmr.msra.gmra.mrb[88].mxu0 %vm841_vm2, %v2519_v27  ;;  %v3059_v49 = vpop.permute.xlu1 %3058 }
 0x815   : > { %6765 = vmatprep.mubr.msk.bf16.mxu0 %vm7602_vm1, %v7601_v44 }
 0x818   : > { %v3110_v20 = vpop.permute.xlu1 %3109 }
 0x837   : > { %v2458_v13 = vpop.xlane.xlu0 %2457 }
 0x838   : > { %7313 = vrcp.f32 %v2458_v13 }
 0x83b   : > { %v2470_v4 = vpop.xlane.xlu0 %2469 }
 0x83c   : > { %7315 = vrcp.f32 %v2470_v4 }
 0x83d   : > { %7317 = vrcp.f32 %v2473_v41 }
 0x83f   : > { %v2810_v51 = vpop.permute.xlu0 %2809 }
 0x842   : > { %v7314_v33 = vpop.eup %7313 }
 0x843   : > { %v2504_v24 = vmul.f32 %v7314_v33, %v8651_v10  ;;  %v3061_v61 = vpop.permute.xlu0 %3060 }
 0x844   : > { %v3066_v25 = vsel %vm841_vm2, %v3061_v61, 0 }
 0x845   : > { %6764 = vmatpush3.bf16.xpose.msra.mxu0 %v3066_v25  ;;  %v2516_v32 = vpack.c.bf16 %v2505_v31, %v2504_v24 }
 0x846   : > { %v7316_v21 = vpop.eup %7315  ;;  %6769 = vmatprep.subr.bf16.mxu0 %v7601_v44 }
 0x847   : > { %6724 = vmatmul.mubr.msk.bf16.vlgmr.msra.gmra.mrb[76].mxu1 %vm841_vm2, %v2516_v32  ;;  %v7318_v52 = vpop.eup %7317  ;;  %v2508_v3 = vmul.f32 %v7316_v21, %v8656_v56  ;;  %v3112_v40 = vpop.permute.xlu0 %3111 }
 0x848   : > { %6734 = vmatpush3.bf16.msra.mxu1 %v2810_v51  ;;  %6735 = vmatprep.mubr.msk.bf16.mxu1 %vm7602_vm1, %v7601_v44  ;;  %v2509_v10 = vmul.f32 %v7318_v52, %v8610_v60  ;;  %v3117_v5 = vsel %vm841_vm2, %v3112_v40, 0  ;;  %v3161_v56 = vpop.permute.xlu1 %3160 }
 0x849   : > { %6745 = vmatprep.subr.bf16.mxu1 %v7128_v1 }
 0x84a   : > { %v2518_v42 = vpack.c.bf16 %v2509_v10, %v2508_v3 }
 0x84b   : > { %v3163_v45 = vpop.permute.xlu0 %3162 }
 0x84c   : > { %6766 = vmatmul.mubr.msk.bf16.vlgmr.msra.gmra.mrb[92].mxu0 %vm841_vm2, %v3059_v49  ;;  %v3168_v60 = vsel %vm841_vm2, %v3163_v45, 0  ;;  %v3265_v15 = vpop.permute.xlu1 %3264 }
 0x84d   : > { %6770 = vmatpush3.bf16.xpose.msra.mxu0 %v3117_v5  ;;  %6771 = vmatprep.mubr.msk.bf16.mxu0 %vm7602_vm1, %v7601_v44  ;;  %v3270_v52 = vsel %vm841_vm2, %v3265_v15, 0 }
 0x84e   : > { %6775 = vmatprep.subr.bf16.mxu0 %v7601_v44 }
 0x84f   : > { %6736 = vmatmul.mubr.msk.bf16.vlgmr.msra.gmra.mrb[80].mxu1 %vm841_vm2, %v2518_v42  ;;  %v3214_v35 = vpop.permute.xlu0 %3213 }
 0x850   : > { %6746 = vmatpush3.bf16.msra.mxu1 %v7128_v1  ;;  %v3219_v22 = vsel %vm841_vm2, %v3214_v35, 0  ;;  %v3316_v50 = vpop.permute.xlu1 %3315 }
 0x851   : > { %6787 = vmatprep.subr.bf16.mxu1 %v7601_v44  ;;  %v3321_v8 = vsel %vm841_vm2, %v3316_v50, 0 }
 0x853   : > { %v3212_v41 = vpop.permute.xlu0 %3211 }
 0x854   : > { %6772 = vmatmul.mubr.msk.bf16.vlgmr.msra.gmra.mrb[96].mxu0 %vm841_vm2, %v3110_v20  ;;  %v8731_v39 = vpop.permute.xlu1 %3366 }
 0x855   : > { %v2609_v11 = vpop.f32.mrb[76].mxu0  ;;  %6776 = vmatpush3.bf16.xpose.msra.mxu0 %v3168_v60  ;;  %6777 = vmatprep.mubr.msk.bf16.mxu0 %vm7602_vm1, %v7601_v44 }
 0x856   : > { %v6707_v53 = vpop.f32.mrb[77].mxu0  ;;  %6781 = vmatprep.subr.bf16.mxu0 %v7601_v44 }
 0x857   : > { %v2612_v55 = vpop.f32.mrb[78].mxu0  ;;  %v8735_v54 = vpop.permute.xlu0 %3262 }
 0x858   : > { %v2905_v34 = vpack.c.bf16 %v2612_v55, %v2609_v11  ;;  %v6708_v30 = vpop.f32.mrb[79].mxu0  ;;  %v3418_v33 = vpop.permute.xlu1 %3417 }
 0x859   : > { %v3423_v24 = vsel %vm841_vm2, %v3418_v33, 0 }
 0x85b   : > { %v3314_v31 = vpop.permute.xlu0 %3313 }
 0x85c   : > { %6778 = vmatmul.mubr.msk.bf16.vlgmr.msra.gmra.mrb[100].mxu0 %vm841_vm2, %v3161_v56  ;;  %v3416_v61 = vpop.permute.xlu1 %3415 }
 0x85d   : > { %v2705_v59 = vpop.f32.mrb[80].mxu0  ;;  %6782 = vmatpush3.bf16.xpose.msra.mxu0 %v3219_v22  ;;  %6783 = vmatprep.mubr.msk.bf16.mxu0 %vm7602_vm1, %v7601_v44  ;;  %v8758_v22 = vld [vmem:[%s9786_s1] sm:$0xff] }
 0x85e   : > { %v6719_v23 = vpop.f32.mrb[81].mxu0  ;;  %6793 = vmatprep.subr.bf16.mxu0 %v7601_v44 }
 0x85f   : > { %v2708_v48 = vpop.f32.mrb[82].mxu0 }
 0x860   : > { %v2907_v57 = vpack.c.bf16 %v2708_v48, %v2705_v59  ;;  %v6720_v0 = vpop.f32.mrb[83].mxu0 }
 0x864   : > { %6784 = vmatmul.mubr.msk.bf16.vlgmr.msra.gmra.mrb[104].mxu0 %vm841_vm2, %v3212_v41 }
 0x865   : > { %v2801_v27 = vpop.f32.mrb[84].mxu0  ;;  %6794 = vmatpush3.bf16.xpose.msra.mxu0 %v3321_v8  ;;  %6795 = vmatprep.mubr.msk.bf16.mxu0 %vm7602_vm1, %v7601_v44 }
 0x866   : > { %v6731_v13 = vpop.f32.mrb[85].mxu0  ;;  %6805 = vmatprep.subr.bf16.mxu0 %v7601_v44 }
 0x867   : > { %v2804_v4 = vpop.f32.mrb[86].mxu0 }
 0x868   : > { %v2909_v51 = vpack.c.bf16 %v2804_v4, %v2801_v27  ;;  %v6732_v47 = vpop.f32.mrb[87].mxu0 }
 0x86c   : > { %6796 = vmatmul.mubr.msk.bf16.vlgmr.msra.gmra.mrb[108].mxu0 %vm841_vm2, %v3314_v31 }
 0x86d   : > { %6806 = vmatpush3.bf16.xpose.msra.mxu0 %v3423_v24  ;;  %6807 = vmatprep.mubr.msk.bf16.mxu0 %vm7602_vm1, %v7601_v44 }
 0x86e   : > { %6817 = vmatprep.subr.bf16.mxu0 %v7601_v44 }
 0x874   : > { %6808 = vmatmul.mubr.msk.bf16.vlgmr.msra.gmra.mrb[112].mxu0 %vm841_vm2, %v3416_v61 }
 0x875   : > { %6819 = vmatprep.mubr.msk.bf16.mxu0 %vm7602_vm1, %v7601_v44 }
 0x8d9   : > { %v2561_v25 = vpop.f32.mrb[68].mxu1 }
 0x8da   : > { %v6701_v49 = vpop.f32.mrb[69].mxu1 }
 0x8db   : > { %v2564_v32 = vpop.f32.mrb[70].mxu1 }
 0x8dc   : > { %v2904_v1 = vpack.c.bf16 %v2564_v32, %v2561_v25  ;;  %v6702_v21 = vpop.f32.mrb[71].mxu1 }
 0x8dd   : > { %v3372_v21 = vsel %vm841_vm2, %v8731_v39, 0 }
 0x8de   : > { %6747 = vmatprep.mubr.msk.bf16.mxu1 %vm841_vm2, %v2904_v1 }
 0x8df   : > { %6748 = vmatmul.mubr.msk.bf16.vlgmr.msra.gmra.mrb[44].mxu1 %vm841_vm2, %v2905_v34 }
 0x8e0   : > { %6788 = vmatpush3.bf16.xpose.msra.mxu1 %v3270_v52 }
 0x8e1   : > { %v2657_v3 = vpop.f32.mrb[72].mxu1  ;;  %6799 = vmatprep.subr.bf16.mxu1 %v7601_v44 }
 0x8e2   : > { %v6713_v40 = vpop.f32.mrb[73].mxu1 }
 0x8e3   : > { %v2660_v10 = vpop.f32.mrb[74].mxu1 }
 0x8e4   : > { %v2906_v20 = vpack.c.bf16 %v2660_v10, %v2657_v3  ;;  %v6714_v5 = vpop.f32.mrb[75].mxu1 }
 0x8e6   : > { %6751 = vmatprep.mubr.msk.bf16.mxu1 %vm841_vm2, %v2906_v20 }
 0x8e7   : > { %v2897_v42 = vpop.f32.mrb[88].mxu0  ;;  %6752 = vmatmul.mubr.msk.bf16.gmra.mrb[48].mxu1 %vm841_vm2, %v2907_v57 }
 0x8e8   : > { %v6743_v56 = vpop.f32.mrb[89].mxu0 }
 0x8e9   : > { %v2900_v45 = vpop.f32.mrb[90].mxu0 }
 0x8ea   : > { %v2911_v60 = vpack.c.bf16 %v2900_v45, %v2897_v42  ;;  %v6744_v11 = vpop.f32.mrb[91].mxu0  ;;  %v3365_v42 = vpop.permute.xlu0 %3364 }
 0x91a   : > { %v2753_v53 = vpop.f32.mrb[76].mxu1 }
 0x91b   : > { %v6725_v15 = vpop.f32.mrb[77].mxu1 }
 0x91c   : > { %v2756_v55 = vpop.f32.mrb[78].mxu1 }
 0x91d   : > { %v2908_v34 = vpack.c.bf16 %v2756_v55, %v2753_v53  ;;  %v6726_v30 = vpop.f32.mrb[79].mxu1 }
 0x91f   : > { %6755 = vmatprep.mubr.msk.bf16.mxu1 %vm841_vm2, %v2908_v34  ;;  %v3102_v35 = vpop.f32.mrb[92].mxu0 }
 0x920   : > { %v8761_v50 = vadd.f32 %v8758_v22, %v3102_v35  ;;  %6756 = vmatmul.mubr.msk.bf16.gmra.mrb[52].mxu1 %vm841_vm2, %v2909_v51  ;;  %v6767_v59 = vpop.f32.mrb[93].mxu0 }
 0x921   : > { %v3105_v23 = vpop.f32.mrb[94].mxu0 }
 0x922   : > { %v8765_v41 = vadd.f32 %v8545_v18, %v3105_v23  ;;  %v2849_v48 = vpop.f32.mrb[80].mxu1  ;;  %v6768_v57 = vpop.f32.mrb[95].mxu0  ;;  %v3466_v0 = vsel %vm841_vm2, %v8761_v50, -inf }
 0x923   : > { %v6737_v8 = vpop.f32.mrb[81].mxu1  ;;  %3467 = vmax.xlane.f32.xlu0 %v3466_v0 }
 0x924   : > { %v2852_v27 = vpop.f32.mrb[82].mxu1  ;;  %v3469_v13 = vsel %vm841_vm2, %v8765_v41, -inf }
 0x925   : > { %v2910_v4 = vpack.c.bf16 %v2852_v27, %v2849_v48  ;;  %v6738_v47 = vpop.f32.mrb[83].mxu1  ;;  %3470 = vmax.xlane.f32.xlu1 %v3469_v13 }
 0x927   : > { %6759 = vmatprep.mubr.msk.bf16.mxu1 %vm841_vm2, %v2910_v4  ;;  %v3153_v51 = vpop.f32.mrb[96].mxu0 }
 0x928   : > { %v8773_v33 = vadd.f32 %v8758_v22, %v3153_v51  ;;  %6760 = vmatmul.mubr.msk.bf16.gmra.mrb[56].mxu1 %vm841_vm2, %v2911_v60  ;;  %v6773_v31 = vpop.f32.mrb[97].mxu0 }
 0x929   : > { %v3156_v24 = vpop.f32.mrb[98].mxu0  ;;  %6789 = vmatprep.mubr.msk.bf16.mxu1 %vm7602_vm1, %v7601_v44 }
 0x92a   : > { %v3157_v61 = vadd.f32 %v8545_v18, %v3156_v24  ;;  %v6774_v25 = vpop.f32.mrb[99].mxu0  ;;  %v3472_v49 = vsel %vm841_vm2, %v8773_v33, -inf }
 0x92b   : > { %3473 = vmax.xlane.f32.xlu0 %v3472_v49 }
 0x92c   : > { %v3475_v32 = vsel %vm841_vm2, %v3157_v61, -inf }
 0x92f   : > { %3476 = vmax.xlane.f32.xlu0 %v3475_v32  ;;  %v3204_v1 = vpop.f32.mrb[100].mxu0 }
 0x930   : > { %v8785_v52 = vadd.f32 %v8758_v22, %v3204_v1  ;;  %v6779_v3 = vpop.f32.mrb[101].mxu0  ;;  %6790 = vmatmul.mubr.msk.bf16.vlgmr.msra.gmra.mrb[84].mxu1 %vm841_vm2, %v8735_v54 }
 0x931   : > { %6800 = vmatpush3.bf16.xpose.msra.mxu1 %v3372_v21  ;;  %v3207_v40 = vpop.f32.mrb[102].mxu0  ;;  %6801 = vmatprep.mubr.msk.bf16.mxu1 %vm7602_vm1, %v7601_v44 }
 0x932   : > { %v3208_v10 = vadd.f32 %v8545_v18, %v3207_v40  ;;  %v6780_v20 = vpop.f32.mrb[103].mxu0  ;;  %v3478_v5 = vsel %vm841_vm2, %v8785_v52, -inf  ;;  %6811 = vmatprep.subr.bf16.mxu1 %v7601_v44 }
 0x933   : > { %3479 = vmax.xlane.f32.xlu0 %v3478_v5 }
 0x934   : > { %v3481_v39 = vsel %vm841_vm2, %v3208_v10, -inf }
 0x935   : > { %3482 = vmax.xlane.f32.xlu1 %v3481_v39 }
 0x937   : > { %v3255_v56 = vpop.f32.mrb[104].mxu0 }
 0x938   : > { %v8797_v54 = vadd.f32 %v8758_v22, %v3255_v56  ;;  %v6785_v45 = vpop.f32.mrb[105].mxu0  ;;  %6802 = vmatmul.mubr.msk.bf16.vlgmr.msra.gmra.mrb[88].mxu1 %vm841_vm2, %v3365_v42 }
 0x939   : > { %v3258_v60 = vpop.f32.mrb[106].mxu0  ;;  %6813 = vmatprep.mubr.msk.bf16.mxu1 %vm7602_vm1, %v7601_v44 }
 0x93a   : > { %v8803_v11 = vadd.f32 %v8545_v18, %v3258_v60  ;;  %v6786_v53 = vpop.f32.mrb[107].mxu0  ;;  %v3484_v15 = vsel %vm841_vm2, %v8797_v54, -inf }
 0x93b   : > { %3485 = vmax.xlane.f32.xlu0 %v3484_v15 }
 0x93c   : > { %v3487_v55 = vsel %vm841_vm2, %v8803_v11, -inf }
 0x93d   : > { %3488 = vmax.xlane.f32.xlu1 %v3487_v55 }
 0x93f   : > { %v3357_v34 = vpop.f32.mrb[108].mxu0 }
 0x940   : > { %v8810_v30 = vadd.f32 %v8758_v22, %v3357_v34  ;;  %v6797_v35 = vpop.f32.mrb[109].mxu0 }
 0x941   : > { %v3360_v59 = vpop.f32.mrb[110].mxu0 }
 0x942   : > { %v8813_v23 = vadd.f32 %v8545_v18, %v3360_v59  ;;  %v6798_v48 = vpop.f32.mrb[111].mxu0  ;;  %v3496_v57 = vsel %vm841_vm2, %v8810_v30, -inf }
 0x943   : > { %3497 = vmax.xlane.f32.xlu0 %v3496_v57 }
 0x944   : > { %v3499_v0 = vsel %vm841_vm2, %v8813_v23, -inf }
 0x945   : > { %3500 = vmax.xlane.f32.xlu1 %v3499_v0 }
 0x947   : > { %v3459_v8 = vpop.f32.mrb[112].mxu0 }
 0x948   : > { %v6809_v27 = vpop.f32.mrb[113].mxu0  ;;  %v8832_v34 = vadd.f32 %v8758_v22, %v3459_v8 }
 0x949   : > { %v3462_v13 = vpop.f32.mrb[114].mxu0 }
 0x94a   : > { %v8820_v4 = vadd.f32 %v8545_v18, %v3462_v13  ;;  %v6810_v47 = vpop.f32.mrb[115].mxu0 }
 0x94b   : > { %v3508_v47 = vsel %vm841_vm2, %v8832_v34, -inf }
 0x94c   : > { %v3511_v51 = vsel %vm841_vm2, %v8820_v4, -inf }
 0x94d   : > { %3512 = vmax.xlane.f32.xlu1 %v3511_v51 }
 0x9b0   : > { %v3468_v31 = vpop.xlane.xlu0 %3467 }
 0x9b1   : > { %v3514_v40 = vsub.f32 %v8761_v50, %v3468_v31 }
 0x9b2   : > { %v3471_v25 = vpop.xlane.xlu1 %3470 }
 0x9b3   : > { %v3515_v49 = vsub.f32 %v8765_v41, %v3471_v25  ;;  %v3530_v39 = vmul.f32 1.442695, %v3514_v40 }
 0x9b5   : > { %v3532_v1 = vmul.f32 1.442695, %v3515_v49 }
 0x9b7   : > { %7319 = vpow2.f32 %v3532_v1 }
 0x9b8   : > { %v3474_v24 = vpop.xlane.xlu0 %3473 }
 0x9b9   : > { %v3516_v42 = vsub.f32 %v8773_v33, %v3474_v24 }
 0x9bc   : > { %v3477_v32 = vpop.xlane.xlu0 %3476 }
 0x9bd   : > { %v3517_v21 = vsub.f32 %v3157_v61, %v3477_v32  ;;  %v3534_v61 = vmul.f32 1.442695, %v3516_v42 }
 0x9bf   : > { %v3536_v20 = vmul.f32 1.442695, %v3517_v21 }
 0x9c0   : > { %v3480_v56 = vpop.xlane.xlu0 %3479 }
 0x9c1   : > { %7321 = vpow2.f32 %v3536_v20  ;;  %v3518_v55 = vsub.f32 %v8785_v52, %v3480_v56  ;;  %v8842_v0 = vpop.eup %7319 }
 0x9c2   : > { %v3483_v3 = vpop.xlane.xlu1 %3482  ;;  %7323 = vpow2.f32 %v3530_v39  ;;  %v3565_v32 = vsel %vm841_vm2, %v8842_v0, 0.0 }
 0x9c3   : > { %v3519_v5 = vsub.f32 %v3208_v10, %v3483_v3  ;;  %v3538_v8 = vmul.f32 1.442695, %v3518_v55 }
 0x9c5   : > { %v3540_v45 = vmul.f32 1.442695, %v3519_v5 }
 0x9c7   : > { %7325 = vpow2.f32 %v3540_v45 }
 0x9c8   : > { %v3486_v10 = vpop.xlane.xlu0 %3485  ;;  %7327 = vpow2.f32 %v3534_v61 }
 0x9c9   : > { %v3520_v27 = vsub.f32 %v8797_v54, %v3486_v10  ;;  %7329 = vpow2.f32 %v3538_v8 }
 0x9ca   : > { %v3489_v53 = vpop.xlane.xlu1 %3488 }
 0x9cb   : > { %v3521_v48 = vsub.f32 %v8803_v11, %v3489_v53  ;;  %v8853_v1 = vpop.eup %7321  ;;  %v3542_v54 = vmul.f32 1.442695, %v3520_v27 }
 0x9cc   : > { %v8858_v20 = vpop.eup %7323  ;;  %v3571_v42 = vsel %vm841_vm2, %v8853_v1, 0.0 }
 0x9cd   : > { %v3544_v51 = vmul.f32 1.442695, %v3521_v48  ;;  %v3562_v45 = vsel %vm841_vm2, %v8858_v20, 0.0 }
 0x9cf   : > { %7331 = vpow2.f32 %v3544_v51 }
 0x9d0   : > { %v3498_v13 = vpop.xlane.xlu0 %3497  ;;  %7333 = vpow2.f32 %v3542_v54 }
 0x9d1   : > { %v3524_v21 = vsub.f32 %v8810_v30, %v3498_v13  ;;  %v8863_v56 = vpop.eup %7325 }
 0x9d2   : > { %v3501_v57 = vpop.xlane.xlu1 %3500 }
 0x9d3   : > { %v3525_v31 = vsub.f32 %v8813_v23, %v3501_v57  ;;  %v3550_v30 = vmul.f32 1.442695, %v3524_v21 }
 0x9d5   : > { %v3552_v5 = vmul.f32 1.442695, %v3525_v31 }
 0x9d7   : > { %7335 = vpow2.f32 %v3552_v5 }
 0x9d8   : > { %7337 = vpow2.f32 %v3550_v30 }
 0x9da   : > { %v3513_v24 = vpop.xlane.xlu1 %3512 }
 0x9db   : > { %v3529_v39 = vsub.f32 %v8820_v4, %v3513_v24  ;;  %v3577_v4 = vsel %vm841_vm2, %v8863_v56, 0.0 }
 0x9dd   : > { %v3560_v53 = vmul.f32 1.442695, %v3529_v39 }
 0x9df   : > { %7339 = vpow2.f32 %v3560_v53 }
 0xa03   : > { %v3306_v60 = vpop.f32.mrb[84].mxu1 }
 0xa04   : > { %v8828_v15 = vadd.f32 %v8758_v22, %v3306_v60  ;;  %v6791_v41 = vpop.f32.mrb[85].mxu1  ;;  %v8867_v60 = vpop.eup %7327 }
 0xa05   : > { %v3309_v50 = vpop.f32.mrb[86].mxu1  ;;  %v3568_v61 = vsel %vm841_vm2, %v8867_v60, 0.0  ;;  %v8874_v55 = vpop.eup %7329 }
 0xa06   : > { %v8835_v33 = vadd.f32 %v8545_v18, %v3309_v50  ;;  %v6792_v35 = vpop.f32.mrb[87].mxu1  ;;  %v3490_v59 = vsel %vm841_vm2, %v8828_v15, -inf  ;;  %v8877_v10 = vpop.eup %7331 }
 0xa07   : > { %3491 = vmax.xlane.f32.xlu0 %v3490_v59  ;;  %v8881_v35 = vpop.eup %7333  ;;  %v3583_v59 = vsel %vm841_vm2, %v8877_v10, 0.0 }
 0xa08   : > { %v3493_v52 = vsel %vm841_vm2, %v8835_v33, -inf  ;;  %v8885_v48 = vpop.eup %7335  ;;  %v3580_v57 = vsel %vm841_vm2, %v8881_v35, 0.0 }
 0xa09   : > { %3494 = vmax.xlane.f32.xlu1 %v3493_v52  ;;  %v8889_v52 = vpop.eup %7337  ;;  %v3595_v8 = vsel %vm841_vm2, %v8885_v48, 0.0 }
 0xa0a   : > { %v8893_v27 = vpop.eup %7339  ;;  %v3592_v13 = vsel %vm841_vm2, %v8889_v52, 0.0 }
 0xa0b   : > { %3509 = vmax.xlane.f32.xlu0 %v3508_v47  ;;  %v3408_v11 = vpop.f32.mrb[88].mxu1  ;;  %v3607_v47 = vsel %vm841_vm2, %v8893_v27, 0.0 }
 0xa0c   : > { %v8849_v25 = vadd.f32 %v8758_v22, %v3408_v11  ;;  %v6803_v49 = vpop.f32.mrb[89].mxu1 }
 0xa0d   : > { %3566 = vadd.xlane.f32.xlu1 %v3565_v32  ;;  %v3411_v3 = vpop.f32.mrb[90].mxu1 }
 0xa0e   : > { %v6804_v40 = vpop.f32.mrb[91].mxu1  ;;  %v3502_v23 = vsel %vm841_vm2, %v8849_v25, -inf  ;;  %v3412_v41 = vadd.f32 %v8545_v18, %v3411_v3  ;;  %v3574_v18 = vsel %vm841_vm2, %v8874_v55, 0.0 }
 0xa0f   : > { %3503 = vmax.xlane.f32.xlu0 %v3502_v23 }
 0xa10   : > { %v3505_v50 = vsel %vm841_vm2, %v3412_v41, -inf }
 0xa11   : > { %3572 = vadd.xlane.f32.xlu1 %v3571_v42 }
 0xa13   : > { %3563 = vadd.xlane.f32.xlu0 %v3562_v45 }
 0xa15   : > { %3578 = vadd.xlane.f32.xlu1 %v3577_v4 }
 0xa17   : > { %3569 = vadd.xlane.f32.xlu0 %v3568_v61 }
 0xa19   : > { %3506 = vmax.xlane.f32.xlu1 %v3505_v50 }
 0xa1b   : > { %3575 = vadd.xlane.f32.xlu0 %v3574_v18 }
 0xa1d   : > { %3584 = vadd.xlane.f32.xlu1 %v3583_v59 }
 0xa1f   : > { %3581 = vadd.xlane.f32.xlu0 %v3580_v57 }
 0xa21   : > { %3596 = vadd.xlane.f32.xlu1 %v3595_v8 }
 0xa23   : > { %3593 = vadd.xlane.f32.xlu0 %v3592_v13 }
 0xa25   : > { %3608 = vadd.xlane.f32.xlu1 %v3607_v47 }
 0xa36   : > { %3697 = vrot.lane.b32.xlu1 %v8027_v2, %s7606_s12 }
 0xa3a   : > { %3744 = vrot.lane.b32.xlu1 %v8037_v14, %s7606_s12 }
 0xa3e   : > { %3791 = vrot.lane.b32.xlu1 %v8047_v26, %s7606_s12 }
 0xa42   : > { %3885 = vrot.lane.b32.xlu1 %v8069_v36, %s7606_s12 }
 0xa94   : > { %v8907_v51 = vpop.xlane.xlu0 %3491 }
 0xa96   : > { %v3495_v31 = vpop.xlane.xlu1 %3494 }
 0xa97   : > { %v3523_v11 = vsub.f32 %v8835_v33, %v3495_v31 }
 0xa98   : > { %v3510_v24 = vpop.xlane.xlu0 %3509 }
 0xa99   : > { %v3548_v49 = vmul.f32 1.442695, %v3523_v11  ;;  %v3528_v32 = vsub.f32 %v8832_v34, %v3510_v24 }
 0xa9a   : > { %v8911_v54 = vpop.xlane.xlu1 %3566 }
 0xa9b   : > { %7341 = vpow2.f32 %v3548_v49  ;;  %v3558_v21 = vmul.f32 1.442695, %v3528_v32 }
 0xa9c   : > { %v8913_v3 = vpop.xlane.xlu0 %3503 }
 0xa9d   : > { %7343 = vpow2.f32 %v3558_v21 }
 0xa9e   : > { %v3573_v40 = vpop.xlane.xlu1 %3572 }
 0xaa0   : > { %v8915_v23 = vpop.xlane.xlu0 %3563 }
 0xaa2   : > { %v8917_v5 = vpop.xlane.xlu1 %3578 }
 0xaa4   : > { %v3570_v39 = vpop.xlane.xlu0 %3569 }
 0xaa5   : > { %v8919_v42 = vpop.eup %7341  ;;  %7345 = vrcp.f32 %v3570_v39 }
 0xaa6   : > { %v3507_v33 = vpop.xlane.xlu1 %3506  ;;  %v3589_v30 = vsel %vm841_vm2, %v8919_v42, 0.0  ;;  %7347 = vrcp.f32 %v3573_v40 }
 0xaa7   : > { %v8923_v34 = vpop.eup %7343  ;;  %v3527_v45 = vsub.f32 %v3412_v41, %v3507_v33  ;;  %3590 = vadd.xlane.f32.xlu1 %v3589_v30 }
 0xaa8   : > { %v8925_v53 = vpop.xlane.xlu0 %3575  ;;  %v3604_v4 = vsel %vm841_vm2, %v8923_v34, 0.0 }
 0xaa9   : > { %v3556_v61 = vmul.f32 1.442695, %v3527_v45  ;;  %3605 = vadd.xlane.f32.xlu0 %v3604_v4 }
 0xaaa   : > { %v3585_v50 = vpop.xlane.xlu1 %3584 }
 0xaab   : > { %7349 = vpow2.f32 %v3556_v61 }
 0xaac   : > { %v3582_v18 = vpop.xlane.xlu0 %3581 }
 0xaad   : > { %7351 = vrcp.f32 %v3582_v18  ;;  %v3522_v18 = vsub.f32 %v8828_v15, %v8907_v51 }
 0xaae   : > { %v3597_v59 = vpop.xlane.xlu1 %3596  ;;  %7353 = vrcp.f32 %v3585_v50 }
 0xaaf   : > { %v7346_v57 = vpop.eup %7345 }
 0xab0   : > { %v7348_v13 = vpop.eup %7347  ;;  %v3628_v41 = vmul.f32 %v7346_v57, %v8867_v60  ;;  %v3594_v47 = vpop.xlane.xlu0 %3593 }
 0xab1   : > { %v3629_v11 = vmul.f32 %v7348_v13, %v8853_v1  ;;  %7355 = vrcp.f32 %v3594_v47 }
 0xab2   : > { %v8929_v8 = vpop.xlane.xlu1 %3608  ;;  %7357 = vrcp.f32 %v3597_v59 }
 0xab3   : > { %v3643_v32 = vpack.c.bf16 %v3629_v11, %v3628_v41 }
 0xab5   : > { %v8932_v31 = vpop.eup %7349 }
 0xab6   : > { %v3698_v24 = vpop.permute.xlu1 %3697  ;;  %v3601_v49 = vsel %vm841_vm2, %v8932_v31, 0.0 }
 0xab7   : > { %3602 = vadd.xlane.f32.xlu1 %v3601_v49  ;;  %6818 = vmatpush3.bf16.msra.mxu0 %v3698_v24  ;;  %v7352_v21 = vpop.eup %7351 }
 0xab8   : > { %6829 = vmatprep.subr.bf16.mxu0 %v7601_v44  ;;  %v7354_v60 = vpop.eup %7353  ;;  %v3632_v1 = vmul.f32 %v7352_v21, %v8881_v35 }
 0xab9   : > { %v3633_v39 = vmul.f32 %v7354_v60, %v8877_v10 }
 0xaba   : > { %v8938_v40 = vpop.permute.xlu1 %3744  ;;  %6820 = vmatmul.mubr.msk.bf16.vlgmr.msra.gmra.mrb[116].mxu0 %vm841_vm2, %v3643_v32 }
 0xabb   : > { %6831 = vmatprep.mubr.msk.bf16.mxu0 %vm7602_vm1, %v7601_v44  ;;  %v3645_v30 = vpack.c.bf16 %v3633_v39, %v3632_v1  ;;  %v7356_v45 = vpop.eup %7355 }
 0xabc   : > { %v7358_v61 = vpop.eup %7357  ;;  %v3636_v35 = vmul.f32 %v7356_v45, %v8889_v52  ;;  %v3546_v52 = vmul.f32 1.442695, %v3522_v18 }
 0xabd   : > { %v3637_v10 = vmul.f32 %v7358_v61, %v8885_v48  ;;  %v3526_v48 = vsub.f32 %v8849_v25, %v8913_v3 }
 0xabe   : > { %v3792_v33 = vpop.permute.xlu1 %3791  ;;  %7359 = vpow2.f32 %v3546_v52 }
 0xabf   : > { %3650 = vrot.lane.b32.xlu0 %v8019_v29, %s7606_s12  ;;  %6830 = vmatpush3.bf16.msra.mxu0 %v3792_v33  ;;  %v3647_v50 = vpack.c.bf16 %v3637_v10, %v3636_v35  ;;  %v3554_v59 = vmul.f32 1.442695, %v3526_v48  ;;  %v7129_v33 = vld [vmem:[%s9789_s4 + $0x10] sm:$0xff]  }
 0xac0   : > { %6841 = vmatprep.subr.bf16.mxu0 %v7601_v44 }
 0xac1   : > { %7361 = vpow2.f32 %v3554_v59 }
 0xac2   : > { %v3886_v4 = vpop.permute.xlu1 %3885  ;;  %6832 = vmatmul.mubr.msk.bf16.vlgmr.msra.gmra.mrb[120].mxu0 %vm841_vm2, %v3645_v30  ;;  %7363 = vrcp.f32 %v8915_v23 }
 0xac3   : > { %3838 = vrot.lane.b32.xlu0 %v8059_v38, %s7606_s12  ;;  %6842 = vmatpush3.bf16.msra.mxu0 %v3886_v4  ;;  %7365 = vrcp.f32 %v8911_v54 }
 0xac4   : > { %6843 = vmatprep.mubr.msk.bf16.mxu0 %vm7602_vm1, %v7601_v44  ;;  %6853 = vmatprep.subr.bf16.mxu0 %v7601_v44  ;;  %7367 = vrcp.f32 %v8925_v53 }
 0xac5   : > { %7369 = vrcp.f32 %v8917_v5 }
 0xac8   : > { %3979 = vrot.lane.b32.xlu1 %v8089_v7, %s7606_s12  ;;  %v8974_v15 = vpop.eup %7359 }
 0xac9   : > { %v3586_v25 = vsel %vm841_vm2, %v8974_v15, 0.0 }
 0xaca   : > { %6844 = vmatmul.mubr.msk.bf16.vlgmr.msra.gmra.mrb[124].mxu0 %vm841_vm2, %v3647_v50 }
 0xacb   : > { %6855 = vmatprep.mubr.msk.bf16.mxu0 %vm7602_vm1, %v7601_v44  ;;  %v8980_v51 = vpop.eup %7361 }
 0xacc   : > { %4180 = vrot.lane.b32.xlu1 %v8017_v28, %s7608_s28  ;;  %v3598_v3 = vsel %vm841_vm2, %v8980_v51, 0.0 }
 0xad0   : > { %4231 = vrot.lane.b32.xlu1 %v8025_v63, %s7608_s28 }
 0xad4   : > { %4282 = vrot.lane.b32.xlu1 %v8035_v9, %s7608_s28 }
 0xad8   : > { %4333 = vrot.lane.b32.xlu1 %v8045_v12, %s7608_s28 }
 0xadc   : > { %4437 = vrot.lane.b32.xlu1 %v8067_v19, %s7609_s22 }
 0xae0   : > { %4435 = vrot.lane.b32.xlu1 %v8067_v19, %s7608_s28 }
 0xae2   : > { %3587 = vadd.xlane.f32.xlu0 %v3586_v25 }
 0xae4   : > { %4539 = vrot.lane.b32.xlu1 %v8087_v6, %s7609_s22 }
 0xae6   : > { %3599 = vadd.xlane.f32.xlu0 %v3598_v3 }
 0xae8   : > { %4537 = vrot.lane.b32.xlu1 %v8087_v6, %s7608_s28 }
 0xafc   : > { %3932 = vrot.lane.b32.xlu0 %v8079_v58, %s7606_s12 }
 0xb00   : > { %4182 = vrot.lane.b32.xlu0 %v8017_v28, %s7609_s22  ;;  %v7364_v28 = vpop.eup %7363 }
 0xb04   : > { %4233 = vrot.lane.b32.xlu0 %v8025_v63, %s7609_s22 }
 0xb08   : > { %4284 = vrot.lane.b32.xlu0 %v8035_v9, %s7609_s22  ;;  %v7366_v9 = vpop.eup %7365 }
 0xb09   : > { %v7368_v6 = vpop.eup %7367 }
 0xb0a   : > { %v7370_v54 = vpop.eup %7369 }
 0xb0c   : > { %4335 = vrot.lane.b32.xlu0 %v8045_v12, %s7609_s22  ;;  %v3626_v12 = vmul.f32 %v7364_v28, %v8858_v20  ;;  %v3630_v20 = vmul.f32 %v7368_v6, %v8874_v55 }
 0xb10   : > { %4386 = vrot.lane.b32.xlu0 %v8057_v16, %s7609_s22 }
 0xb14   : > { %4384 = vrot.lane.b32.xlu0 %v8057_v16, %s7608_s28  ;;  %v3627_v16 = vmul.f32 %v7366_v9, %v8842_v0  ;;  %v3631_v0 = vmul.f32 %v7370_v54, %v8863_v56 }
 0xb16   : > { %v3644_v57 = vpack.c.bf16 %v3631_v0, %v3630_v20 }
 0xb18   : > { %4488 = vrot.lane.b32.xlu0 %v8077_v37, %s7609_s22  ;;  %s7610_s22 = smov [#allocation5]  }
 0xb19   : > { %s7533_s24 = sshll.u32 %s7610_s22, 4  ;;  %s7534_s24 = int_to_ptr.vmem [resolvable:$false] %s7533_s24 }
 0xb1a   : > { %p7536_p8 = scmp.lt.s32.totalorder %s9736_s21, %s7534_s24 }
 0xb1c   : > { %4486 = vrot.lane.b32.xlu0 %v8077_v37, %s7608_s28  ;;  %v3642_v37 = vpack.c.bf16 %v3627_v16, %v3626_v12 }
 0xb34   : > { %v3591_v23 = vpop.xlane.xlu1 %3590 }
 0xb36   : > { %v3606_v63 = vpop.xlane.xlu0 %3605 }
 0xb37   : > { %7371 = vrcp.f32 %v3606_v63 }
 0xb38   : > { %7373 = vrcp.f32 %v8929_v8 }
 0xb39   : > { %7375 = vrcp.f32 %v3591_v23 }
 0xb3a   : > { %v3651_v19 = vpop.permute.xlu0 %3650 }
 0xb3b   : > { %6812 = vmatpush3.bf16.msra.mxu1 %v3651_v19 }
 0xb3c   : > { %6823 = vmatprep.subr.bf16.mxu1 %v7601_v44 }
 0xb3e   : > { %6814 = vmatmul.mubr.msk.bf16.vlgmr.msra.gmra.mrb[92].mxu1 %vm841_vm2, %v3642_v37  ;;  %v3839_v41 = vpop.permute.xlu0 %3838 }
 0xb3f   : > { %6824 = vmatpush3.bf16.msra.mxu1 %v8938_v40  ;;  %6825 = vmatprep.mubr.msk.bf16.mxu1 %vm7602_vm1, %v7601_v44 }
 0xb40   : > { %6835 = vmatprep.subr.bf16.mxu1 %v7601_v44 }
 0xb41   : > { %v7372_v5 = vpop.eup %7371 }
 0xb42   : > { %v7374_v8 = vpop.eup %7373  ;;  %v3640_v13 = vmul.f32 %v7372_v5, %v8923_v34 }
 0xb43   : > { %v3641_v55 = vmul.f32 %v7374_v8, %v8893_v27  ;;  %v7376_v27 = vpop.eup %7375 }
 0xb44   : > { %v3603_v53 = vpop.xlane.xlu1 %3602  ;;  %v3635_v32 = vmul.f32 %v7376_v27, %v8919_v42 }
 0xb45   : > { %v3649_v56 = vpack.c.bf16 %v3641_v55, %v3640_v13 }
 0xb46   : > { %6826 = vmatmul.mubr.msk.bf16.vlgmr.msra.gmra.mrb[96].mxu1 %vm841_vm2, %v3644_v57 }
 0xb47   : > { %6836 = vmatpush3.bf16.msra.mxu1 %v3839_v41  ;;  %6837 = vmatprep.mubr.msk.bf16.mxu1 %vm7602_vm1, %v7601_v44 }
 0xb48   : > { %v3980_v47 = vpop.permute.xlu1 %3979  ;;  %6847 = vmatprep.subr.bf16.mxu1 %v7601_v44 }
 0xb49   : > { %6854 = vmatpush3.bf16.msra.mxu0 %v3980_v47 }
 0xb4a   : > { %6877 = vmatprep.subr.bf16.mxu0 %v7601_v44 }
 0xb4c   : > { %6856 = vmatmul.mubr.msk.bf16.vlgmr.msra.gmra.mrb[128].mxu0 %vm841_vm2, %v3649_v56  ;;  %v4181_v1 = vpop.permute.xlu1 %4180 }
 0xb4d   : > { %6879 = vmatprep.mubr.msk.bf16.mxu0 %vm7602_vm1, %v7601_v44 }
 0xb50   : > { %v4232_v35 = vpop.permute.xlu1 %4231 }
 0xb54   : > { %v4283_v18 = vpop.permute.xlu1 %4282 }
 0xb6f   : > { %v3588_v34 = vpop.xlane.xlu0 %3587 }
 0xb70   : > { %7377 = vrcp.f32 %v3588_v34 }
 0xb73   : > { %v3600_v11 = vpop.xlane.xlu0 %3599 }
 0xb74   : > { %7379 = vrcp.f32 %v3600_v11 }
 0xb75   : > { %7381 = vrcp.f32 %v3603_v53 }
 0xb77   : > { %v3933_v24 = vpop.permute.xlu0 %3932 }
 0xb7a   : > { %v7378_v49 = vpop.eup %7377 }
 0xb7b   : > { %v3634_v21 = vmul.f32 %v7378_v49, %v8974_v15  ;;  %v4183_v40 = vpop.permute.xlu0 %4182  ;;  %v4334_v15 = vpop.permute.xlu1 %4333 }
 0xb7c   : > { %v4188_v60 = vsel %vm841_vm2, %v4183_v40, 0 }
 0xb7d   : > { %6878 = vmatpush3.bf16.xpose.msra.mxu0 %v4188_v60  ;;  %v3646_v39 = vpack.c.bf16 %v3635_v32, %v3634_v21 }
 0xb7e   : > { %v7380_v30 = vpop.eup %7379  ;;  %6883 = vmatprep.subr.bf16.mxu0 %v7601_v44 }
 0xb7f   : > { %6838 = vmatmul.mubr.msk.bf16.vlgmr.msra.gmra.mrb[100].mxu1 %vm841_vm2, %v3646_v39  ;;  %v7382_v45 = vpop.eup %7381  ;;  %v3638_v42 = vmul.f32 %v7380_v30, %v8980_v51  ;;  %v4234_v4 = vpop.permute.xlu0 %4233 }
 0xb80   : > { %6848 = vmatpush3.bf16.msra.mxu1 %v3933_v24  ;;  %6849 = vmatprep.mubr.msk.bf16.mxu1 %vm7602_vm1, %v7601_v44  ;;  %v3639_v61 = vmul.f32 %v7382_v45, %v8932_v31  ;;  %v4239_v10 = vsel %vm841_vm2, %v4234_v4, 0  ;;  %v4438_v9 = vpop.permute.xlu1 %4437 }
 0xb81   : > { %6859 = vmatprep.subr.bf16.mxu1 %v7129_v33  ;;  %v4443_v20 = vsel %vm841_vm2, %v4438_v9, 0 }
 0xb82   : > { %v3648_v50 = vpack.c.bf16 %v3639_v61, %v3638_v42 }
 0xb83   : > { %v4285_v52 = vpop.permute.xlu0 %4284 }
 0xb84   : > { %6880 = vmatmul.mubr.msk.bf16.vlgmr.msra.gmra.mrb[132].mxu0 %vm841_vm2, %v4181_v1  ;;  %v4290_v31 = vsel %vm841_vm2, %v4285_v52, 0  ;;  %v4436_v54 = vpop.permute.xlu1 %4435 }
 0xb85   : > { %6884 = vmatpush3.bf16.xpose.msra.mxu0 %v4239_v10  ;;  %6885 = vmatprep.mubr.msk.bf16.mxu0 %vm7602_vm1, %v7601_v44 }
 0xb86   : > { %6889 = vmatprep.subr.bf16.mxu0 %v7601_v44 }
 0xb87   : > { %6850 = vmatmul.mubr.msk.bf16.vlgmr.msra.gmra.mrb[104].mxu1 %vm841_vm2, %v3648_v50  ;;  %v4336_v28 = vpop.permute.xlu0 %4335 }
 0xb88   : > { %6860 = vmatpush3.bf16.msra.mxu1 %v7129_v33  ;;  %v4341_v63 = vsel %vm841_vm2, %v4336_v28, 0  ;;  %v4540_v8 = vpop.permute.xlu1 %4539 }
 0xb89   : > { %6901 = vmatprep.subr.bf16.mxu1 %v7601_v44  ;;  %v4545_v13 = vsel %vm841_vm2, %v4540_v8, 0 }
 0xb8b   : > { %v4387_v34 = vpop.permute.xlu0 %4386 }
 0xb8c   : > { %6886 = vmatmul.mubr.msk.bf16.vlgmr.msra.gmra.mrb[136].mxu0 %vm841_vm2, %v4232_v35  ;;  %v4538_v41 = vpop.permute.xlu1 %4537  ;;  %v4392_v27 = vsel %vm841_vm2, %v4387_v34, 0 }
 0xb8d   : > { %v3737_v48 = vpop.f32.mrb[116].mxu0  ;;  %6890 = vmatpush3.bf16.xpose.msra.mxu0 %v4290_v31  ;;  %6891 = vmatprep.mubr.msk.bf16.mxu0 %vm7602_vm1, %v7601_v44 }
 0xb8e   : > { %v6821_v59 = vpop.f32.mrb[117].mxu0  ;;  %6895 = vmatprep.subr.bf16.mxu0 %v7601_v44 }
 0xb8f   : > { %v3740_v25 = vpop.f32.mrb[118].mxu0 }
 0xb90   : > { %v4027_v51 = vpack.c.bf16 %v3740_v25, %v3737_v48  ;;  %v6822_v3 = vpop.f32.mrb[119].mxu0  ;;  %v9080_v48 = vld [vmem:[%s9786_s1 + $0x8] sm:$0xff] }
 0xb94   : > { %6892 = vmatmul.mubr.msk.bf16.vlgmr.msra.gmra.mrb[140].mxu0 %vm841_vm2, %v4283_v18 }
 0xb95   : > { %v3831_v12 = vpop.f32.mrb[120].mxu0  ;;  %6896 = vmatpush3.bf16.xpose.msra.mxu0 %v4341_v63  ;;  %6897 = vmatprep.mubr.msk.bf16.mxu0 %vm7602_vm1, %v7601_v44 }
 0xb96   : > { %v6833_v16 = vpop.f32.mrb[121].mxu0  ;;  %6907 = vmatprep.subr.bf16.mxu0 %v7601_v44 }
 0xb97   : > { %v3834_v19 = vpop.f32.mrb[122].mxu0  ;;  %v4385_v16 = vpop.permute.xlu0 %4384 }
 0xb98   : > { %v4029_v37 = vpack.c.bf16 %v3834_v19, %v3831_v12  ;;  %v6834_v6 = vpop.f32.mrb[123].mxu0 }
 0xb9c   : > { %6898 = vmatmul.mubr.msk.bf16.vlgmr.msra.gmra.mrb[144].mxu0 %vm841_vm2, %v4334_v15 }
 0xb9d   : > { %v3925_v23 = vpop.f32.mrb[124].mxu0  ;;  %6908 = vmatpush3.bf16.xpose.msra.mxu0 %v4443_v20  ;;  %6909 = vmatprep.mubr.msk.bf16.mxu0 %vm7602_vm1, %v7601_v44 }
 0xb9e   : > { %v6845_v0 = vpop.f32.mrb[125].mxu0  ;;  %6919 = vmatprep.subr.bf16.mxu0 %v7601_v44 }
 0xb9f   : > { %v3928_v5 = vpop.f32.mrb[126].mxu0 }
 0xba0   : > { %v4031_v53 = vpack.c.bf16 %v3928_v5, %v3925_v23  ;;  %v6846_v57 = vpop.f32.mrb[127].mxu0  ;;  %v4489_v5 = vpop.permute.xlu0 %4488 }
 0xba1   : > { %v4494_v8 = vsel %vm841_vm2, %v4489_v5, 0 }
 0xba4   : > { %6910 = vmatmul.mubr.msk.bf16.vlgmr.msra.gmra.mrb[148].mxu0 %vm841_vm2, %v4436_v54 }
 0xba5   : > { %6920 = vmatpush3.bf16.xpose.msra.mxu0 %v4545_v13  ;;  %6921 = vmatprep.mubr.msk.bf16.mxu0 %vm7602_vm1, %v7601_v44 }
 0xba6   : > { %6931 = vmatprep.subr.bf16.mxu0 %v7601_v44 }
 0xbac   : > { %6922 = vmatmul.mubr.msk.bf16.vlgmr.msra.gmra.mrb[152].mxu0 %vm841_vm2, %v4538_v41 }
 0xbad   : > { %6933 = vmatprep.mubr.msk.bf16.mxu0 %vm7602_vm1, %v7601_v44 }
 0xc11   : > { %v3690_v55 = vpop.f32.mrb[92].mxu1 }
 0xc12   : > { %v6815_v47 = vpop.f32.mrb[93].mxu1 }
 0xc13   : > { %v3693_v56 = vpop.f32.mrb[94].mxu1 }
 0xc14   : > { %v4026_v11 = vpack.c.bf16 %v3693_v56, %v3690_v55  ;;  %v6816_v24 = vpop.f32.mrb[95].mxu1 }
 0xc15   : > { %v4487_v24 = vpop.permute.xlu0 %4486 }
 0xc16   : > { %6861 = vmatprep.mubr.msk.bf16.mxu1 %vm841_vm2, %v4026_v11 }
 0xc17   : > { %6862 = vmatmul.mubr.msk.bf16.vlgmr.msra.gmra.mrb[44].mxu1 %vm841_vm2, %v4027_v51 }
 0xc18   : > { %6902 = vmatpush3.bf16.xpose.msra.mxu1 %v4392_v27 }
 0xc19   : > { %v3784_v49 = vpop.f32.mrb[96].mxu1  ;;  %6913 = vmatprep.subr.bf16.mxu1 %v7601_v44 }
 0xc1a   : > { %v6827_v32 = vpop.f32.mrb[97].mxu1 }
 0xc1b   : > { %v3787_v21 = vpop.f32.mrb[98].mxu1 }
 0xc1c   : > { %v4028_v40 = vpack.c.bf16 %v3787_v21, %v3784_v49  ;;  %v6828_v60 = vpop.f32.mrb[99].mxu1 }
 0xc1e   : > { %6865 = vmatprep.mubr.msk.bf16.mxu1 %vm841_vm2, %v4028_v40 }
 0xc1f   : > { %v4019_v1 = vpop.f32.mrb[128].mxu0  ;;  %6866 = vmatmul.mubr.msk.bf16.gmra.mrb[48].mxu1 %vm841_vm2, %v4029_v37 }
 0xc20   : > { %v6857_v39 = vpop.f32.mrb[129].mxu0 }
 0xc21   : > { %v4022_v33 = vpop.f32.mrb[130].mxu0 }
 0xc22   : > { %v4033_v30 = vpack.c.bf16 %v4022_v33, %v4019_v1  ;;  %v6858_v45 = vpop.f32.mrb[131].mxu0 }
 0xc52   : > { %v3878_v42 = vpop.f32.mrb[100].mxu1 }
 0xc53   : > { %v6839_v4 = vpop.f32.mrb[101].mxu1 }
 0xc54   : > { %v3881_v61 = vpop.f32.mrb[102].mxu1 }
 0xc55   : > { %v4030_v35 = vpack.c.bf16 %v3881_v61, %v3878_v42  ;;  %v6840_v10 = vpop.f32.mrb[103].mxu1 }
 0xc57   : > { %6869 = vmatprep.mubr.msk.bf16.mxu1 %vm841_vm2, %v4030_v35  ;;  %v4224_v50 = vpop.f32.mrb[132].mxu0 }
 0xc58   : > { %v9074_v18 = vadd.f32 %v8758_v22, %v4224_v50  ;;  %6870 = vmatmul.mubr.msk.bf16.gmra.mrb[52].mxu1 %vm841_vm2, %v4031_v53  ;;  %v6881_v52 = vpop.f32.mrb[133].mxu0 }
 0xc59   : > { %v4227_v31 = vpop.f32.mrb[134].mxu0 }
 0xc5a   : > { %v9083_v59 = vadd.f32 %v9080_v48, %v4227_v31  ;;  %v3972_v15 = vpop.f32.mrb[104].mxu1  ;;  %v6882_v25 = vpop.f32.mrb[135].mxu0  ;;  %v4588_v51 = vsel %vm841_vm2, %v9074_v18, -inf }
 0xc5b   : > { %v6851_v3 = vpop.f32.mrb[105].mxu1  ;;  %4589 = vmax.xlane.f32.xlu0 %v4588_v51 }
 0xc5c   : > { %v3975_v28 = vpop.f32.mrb[106].mxu1  ;;  %v4591_v63 = vsel %vm841_vm2, %v9083_v59, -inf }
 0xc5d   : > { %v4032_v9 = vpack.c.bf16 %v3975_v28, %v3972_v15  ;;  %v6852_v12 = vpop.f32.mrb[107].mxu1  ;;  %4592 = vmax.xlane.f32.xlu1 %v4591_v63 }
 0xc5f   : > { %6873 = vmatprep.mubr.msk.bf16.mxu1 %vm841_vm2, %v4032_v9  ;;  %v4275_v19 = vpop.f32.mrb[136].mxu0 }
 0xc60   : > { %v9091_v37 = vadd.f32 %v8758_v22, %v4275_v19  ;;  %6874 = vmatmul.mubr.msk.bf16.gmra.mrb[56].mxu1 %vm841_vm2, %v4033_v30  ;;  %v6887_v6 = vpop.f32.mrb[137].mxu0 }
 0xc61   : > { %v4278_v54 = vpop.f32.mrb[138].mxu0  ;;  %6903 = vmatprep.mubr.msk.bf16.mxu1 %vm7602_vm1, %v7601_v44 }
 0xc62   : > { %v9097_v20 = vadd.f32 %v9080_v48, %v4278_v54  ;;  %v6888_v23 = vpop.f32.mrb[139].mxu0  ;;  %v4594_v0 = vsel %vm841_vm2, %v9091_v37, -inf }
 0xc63   : > { %4595 = vmax.xlane.f32.xlu0 %v4594_v0 }
 0xc64   : > { %v4597_v53 = vsel %vm841_vm2, %v9097_v20, -inf }
 0xc67   : > { %4598 = vmax.xlane.f32.xlu0 %v4597_v53  ;;  %v4326_v57 = vpop.f32.mrb[140].mxu0 }
 0xc68   : > { %v9105_v13 = vadd.f32 %v8758_v22, %v4326_v57  ;;  %v6893_v41 = vpop.f32.mrb[141].mxu0  ;;  %6904 = vmatmul.mubr.msk.bf16.vlgmr.msra.gmra.mrb[108].mxu1 %vm841_vm2, %v4385_v16 }
 0xc69   : > { %6914 = vmatpush3.bf16.xpose.msra.mxu1 %v4494_v8  ;;  %v4329_v55 = vpop.f32.mrb[142].mxu0  ;;  %6915 = vmatprep.mubr.msk.bf16.mxu1 %vm7602_vm1, %v7601_v44 }
 0xc6a   : > { %v9111_v47 = vadd.f32 %v9080_v48, %v4329_v55  ;;  %v6894_v56 = vpop.f32.mrb[143].mxu0  ;;  %v4600_v34 = vsel %vm841_vm2, %v9105_v13, -inf  ;;  %6925 = vmatprep.subr.bf16.mxu1 %v7601_v44 }
 0xc6b   : > { %4601 = vmax.xlane.f32.xlu0 %v4600_v34 }
 0xc6c   : > { %v4603_v11 = vsel %vm841_vm2, %v9111_v47, -inf }
 0xc6d   : > { %4604 = vmax.xlane.f32.xlu1 %v4603_v11 }
 0xc6f   : > { %v4377_v27 = vpop.f32.mrb[144].mxu0 }
 0xc70   : > { %v9119_v49 = vadd.f32 %v8758_v22, %v4377_v27  ;;  %v6899_v32 = vpop.f32.mrb[145].mxu0  ;;  %6916 = vmatmul.mubr.msk.bf16.vlgmr.msra.gmra.mrb[112].mxu1 %vm841_vm2, %v4487_v24 }
 0xc71   : > { %v4380_v21 = vpop.f32.mrb[146].mxu0  ;;  %6927 = vmatprep.mubr.msk.bf16.mxu1 %vm7602_vm1, %v7601_v44 }
 0xc72   : > { %v9125_v40 = vadd.f32 %v9080_v48, %v4380_v21  ;;  %v6900_v60 = vpop.f32.mrb[147].mxu0  ;;  %v4606_v1 = vsel %vm841_vm2, %v9119_v49, -inf }
 0xc73   : > { %4607 = vmax.xlane.f32.xlu0 %v4606_v1 }
 0xc74   : > { %v4609_v39 = vsel %vm841_vm2, %v9125_v40, -inf }
 0xc75   : > { %4610 = vmax.xlane.f32.xlu1 %v4609_v39 }
 0xc77   : > { %v4479_v33 = vpop.f32.mrb[148].mxu0 }
 0xc78   : > { %v9132_v30 = vadd.f32 %v8758_v22, %v4479_v33  ;;  %v6911_v45 = vpop.f32.mrb[149].mxu0 }
 0xc79   : > { %v4482_v42 = vpop.f32.mrb[150].mxu0 }
 0xc7a   : > { %v9135_v4 = vadd.f32 %v9080_v48, %v4482_v42  ;;  %v6912_v61 = vpop.f32.mrb[151].mxu0  ;;  %v4618_v35 = vsel %vm841_vm2, %v9132_v30, -inf }
 0xc7b   : > { %4619 = vmax.xlane.f32.xlu0 %v4618_v35 }
 0xc7c   : > { %v4621_v10 = vsel %vm841_vm2, %v9135_v4, -inf }
 0xc7d   : > { %4622 = vmax.xlane.f32.xlu1 %v4621_v10 }
 0xc7f   : > { %v4581_v50 = vpop.f32.mrb[152].mxu0 }
 0xc80   : > { %v9142_v52 = vadd.f32 %v8758_v22, %v4581_v50  ;;  %v6923_v31 = vpop.f32.mrb[153].mxu0 }
 0xc81   : > { %v4584_v15 = vpop.f32.mrb[154].mxu0  ;;  %v7482_v31 = vld [vmem:[%s9786_s1] sm:$0xff] }
 0xc82   : > { %v9145_v25 = vadd.f32 %v9080_v48, %v4584_v15  ;;  %v6924_v51 = vpop.f32.mrb[155].mxu0  ;;  %v4630_v3 = vsel %vm841_vm2, %v9142_v52, -inf }
 0xc83   : > { %4631 = vmax.xlane.f32.xlu0 %v4630_v3 }
 0xc84   : > { %v4633_v28 = vsel %vm841_vm2, %v9145_v25, -inf }
 0xc85   : > { %4634 = vmax.xlane.f32.xlu1 %v4633_v28 }
 0xce8   : > { %v4590_v63 = vpop.xlane.xlu0 %4589 }
 0xce9   : > { %v4636_v9 = vsub.f32 %v9074_v18, %v4590_v63 }
 0xcea   : > { %v4593_v12 = vpop.xlane.xlu1 %4592 }
 0xceb   : > { %v4652_v22 = vmul.f32 1.442695, %v4636_v9  ;;  %v4637_v16 = vsub.f32 %v9083_v59, %v4593_v12 }
 0xced   : > { %7383 = vpow2.f32 %v4652_v22  ;;  %v4654_v19 = vmul.f32 1.442695, %v4637_v16 }
 0xcef   : > { %7385 = vpow2.f32 %v4654_v19 }
 0xcf0   : > { %v4596_v6 = vpop.xlane.xlu0 %4595 }
 0xcf1   : > { %v4638_v54 = vsub.f32 %v9091_v37, %v4596_v6 }
 0xcf3   : > { %v4656_v23 = vmul.f32 1.442695, %v4638_v54 }
 0xcf4   : > { %v4599_v0 = vpop.xlane.xlu0 %4598 }
 0xcf5   : > { %7387 = vpow2.f32 %v4656_v23  ;;  %v4639_v5 = vsub.f32 %v9097_v20, %v4599_v0 }
 0xcf7   : > { %v9155_v53 = vpop.eup %7383  ;;  %v4658_v57 = vmul.f32 1.442695, %v4639_v5 }
 0xcf8   : > { %v4602_v8 = vpop.xlane.xlu0 %4601  ;;  %v4684_v18 = vsel %vm841_vm2, %v9155_v53, 0.0 }
 0xcf9   : > { %v9159_v41 = vpop.eup %7385  ;;  %7389 = vpow2.f32 %v4658_v57  ;;  %v4640_v59 = vsub.f32 %v9105_v13, %v4602_v8  ;;  %4685 = vadd.xlane.f32.xlu0 %v4684_v18 }
 0xcfa   : > { %v4605_v55 = vpop.xlane.xlu1 %4604  ;;  %v4687_v37 = vsel %vm841_vm2, %v9159_v41, 0.0 }
 0xcfb   : > { %v4660_v56 = vmul.f32 1.442695, %v4640_v59  ;;  %v4641_v20 = vsub.f32 %v9111_v47, %v4605_v55  ;;  %4688 = vadd.xlane.f32.xlu1 %v4687_v37 }
 0xcfd   : > { %7391 = vpow2.f32 %v4660_v56  ;;  %v4662_v34 = vmul.f32 1.442695, %v4641_v20 }
 0xcff   : > { %v9165_v11 = vpop.eup %7387  ;;  %7393 = vpow2.f32 %v4662_v34 }
 0xd00   : > { %v4608_v24 = vpop.xlane.xlu0 %4607  ;;  %v4690_v27 = vsel %vm841_vm2, %v9165_v11, 0.0 }
 0xd01   : > { %v4642_v13 = vsub.f32 %v9119_v49, %v4608_v24  ;;  %4691 = vadd.xlane.f32.xlu0 %v4690_v27 }
 0xd02   : > { %v4611_v32 = vpop.xlane.xlu1 %4610 }
 0xd03   : > { %v9170_v21 = vpop.eup %7389  ;;  %v4664_v60 = vmul.f32 1.442695, %v4642_v13  ;;  %v4643_v1 = vsub.f32 %v9125_v40, %v4611_v32 }
 0xd04   : > { %v4693_v47 = vsel %vm841_vm2, %v9170_v21, 0.0 }
 0xd05   : > { %7395 = vpow2.f32 %v4664_v60  ;;  %v4666_v39 = vmul.f32 1.442695, %v4643_v1  ;;  %4694 = vadd.xlane.f32.xlu1 %v4693_v47 }
 0xd07   : > { %v9175_v33 = vpop.eup %7391  ;;  %7397 = vpow2.f32 %v4666_v39 }
 0xd08   : > { %v4696_v45 = vsel %vm841_vm2, %v9175_v33, 0.0  ;;  %v4620_v5 = vpop.xlane.xlu0 %4619 }
 0xd09   : > { %v9179_v49 = vpop.eup %7393  ;;  %4697 = vadd.xlane.f32.xlu0 %v4696_v45  ;;  %v4646_v8 = vsub.f32 %v9132_v30, %v4620_v5 }
 0xd0a   : > { %v4699_v42 = vsel %vm841_vm2, %v9179_v49, 0.0  ;;  %v4623_v0 = vpop.xlane.xlu1 %4622 }
 0xd0b   : > { %4700 = vadd.xlane.f32.xlu1 %v4699_v42  ;;  %v4647_v57 = vsub.f32 %v9135_v4, %v4623_v0  ;;  %v4672_v59 = vmul.f32 1.442695, %v4646_v8 }
 0xd0d   : > { %v4674_v18 = vmul.f32 1.442695, %v4647_v57 }
 0xd0f   : > { %v9183_v40 = vpop.eup %7395  ;;  %7399 = vpow2.f32 %v4674_v18 }
 0xd10   : > { %v4702_v61 = vsel %vm841_vm2, %v9183_v40, 0.0  ;;  %7401 = vpow2.f32 %v4672_v59  ;;  %v4632_v56 = vpop.xlane.xlu0 %4631 }
 0xd11   : > { %v9187_v35 = vpop.eup %7397  ;;  %4703 = vadd.xlane.f32.xlu0 %v4702_v61  ;;  %v4650_v34 = vsub.f32 %v9142_v52, %v4632_v56 }
 0xd12   : > { %v4705_v10 = vsel %vm841_vm2, %v9187_v35, 0.0 }
 0xd13   : > { %4706 = vadd.xlane.f32.xlu1 %v4705_v10  ;;  %v4680_v27 = vmul.f32 1.442695, %v4650_v34 }
 0xd3b   : > { %v4428_v50 = vpop.f32.mrb[108].mxu1 }
 0xd3c   : > { %v9194_v15 = vadd.f32 %v7482_v31, %v4428_v50  ;;  %v6905_v51 = vpop.f32.mrb[109].mxu1 }
 0xd3d   : > { %v4431_v3 = vpop.f32.mrb[110].mxu1 }
 0xd3e   : > { %v9197_v28 = vadd.f32 %v9080_v48, %v4431_v3  ;;  %v6906_v63 = vpop.f32.mrb[111].mxu1  ;;  %v4612_v9 = vsel %vm841_vm2, %v9194_v15, -inf }
 0xd3f   : > { %4613 = vmax.xlane.f32.xlu0 %v4612_v9 }
 0xd40   : > { %v4615_v12 = vsel %vm841_vm2, %v9197_v28, -inf }
 0xd41   : > { %4616 = vmax.xlane.f32.xlu1 %v4615_v12 }
 0xd43   : > { %v4530_v22 = vpop.f32.mrb[112].mxu1 }
 0xd44   : > { %v9203_v16 = vadd.f32 %v7482_v31, %v4530_v22  ;;  %v6917_v19 = vpop.f32.mrb[113].mxu1 }
 0xd45   : > { %v4533_v6 = vpop.f32.mrb[114].mxu1 }
 0xd46   : > { %v6918_v54 = vpop.f32.mrb[115].mxu1  ;;  %v4624_v23 = vsel %vm841_vm2, %v9203_v16, -inf  ;;  %v9214_v55 = vadd.f32 %v9080_v48, %v4533_v6  ;;  %v4635_v48 = vpop.xlane.xlu1 %4634 }
 0xd47   : > { %4625 = vmax.xlane.f32.xlu0 %v4624_v23  ;;  %v4651_v20 = vsub.f32 %v9145_v25, %v4635_v48 }
 0xd48   : > { %v4627_v37 = vsel %vm841_vm2, %v9214_v55, -inf }
 0xd49   : > { %v4682_v24 = vmul.f32 1.442695, %v4651_v20 }
 0xd4b   : > { %7403 = vpow2.f32 %v4682_v24 }
 0xd4c   : > { %7405 = vpow2.f32 %v4680_v27 }
 0xd52   : > { %4819 = vrot.lane.b32.xlu1 %v8027_v2, %s7608_s28  ;;  %v9218_v2 = vpop.eup %7399 }
 0xd53   : > { %v4717_v4 = vsel %vm841_vm2, %v9218_v2, 0.0 }
 0xd5d   : > { %4772 = vrot.lane.b32.xlu0 %v8019_v29, %s7608_s28  ;;  %v9220_v29 = vpop.eup %7401 }
 0xd5e   : > { %v4714_v30 = vsel %vm841_vm2, %v9220_v29, 0.0  ;;  %v9232_v13 = vpop.eup %7403 }
 0xd5f   : > { %v9234_v32 = vpop.eup %7405 }
 0xd76   : > { %4628 = vmax.xlane.f32.xlu1 %v4627_v37 }
 0xd7a   : > { %4718 = vadd.xlane.f32.xlu1 %v4717_v4 }
 0xd7c   : > { %4715 = vadd.xlane.f32.xlu0 %v4714_v30 }
 0xd86   : > { %v4686_v60 = vpop.xlane.xlu0 %4685 }
 0xd88   : > { %v4689_v25 = vpop.xlane.xlu1 %4688 }
 0xd8b   : > { %4913 = vrot.lane.b32.xlu1 %v8047_v26, %s7608_s28  ;;  %v4729_v26 = vsel %vm841_vm2, %v9232_v13, 0.0 }
 0xd8e   : > { %v4692_v1 = vpop.xlane.xlu0 %4691 }
 0xd92   : > { %4866 = vrot.lane.b32.xlu0 %v8037_v14, %s7608_s28  ;;  %v4726_v14 = vsel %vm841_vm2, %v9234_v32, 0.0  ;;  %v4695_v52 = vpop.xlane.xlu1 %4694 }
 0xd93   : > { %7407 = vrcp.f32 %v4695_v52 }
 0xd94   : > { %7409 = vrcp.f32 %v4692_v1 }
 0xd95   : > { %7411 = vrcp.f32 %v4689_v25 }
 0xd96   : > { %v4698_v47 = vpop.xlane.xlu0 %4697  ;;  %7413 = vrcp.f32 %v4686_v60 }
 0xd98   : > { %v4701_v39 = vpop.xlane.xlu1 %4700 }
 0xd9d   : > { %v7408_v10 = vpop.eup %7407 }
 0xd9e   : > { %v4704_v45 = vpop.xlane.xlu0 %4703  ;;  %v7410_v51 = vpop.eup %7409  ;;  %v4751_v9 = vmul.f32 %v7408_v10, %v9170_v21 }
 0xd9f   : > { %v4750_v22 = vmul.f32 %v7410_v51, %v9165_v11  ;;  %v7412_v6 = vpop.eup %7411 }
 0xda0   : > { %v4707_v42 = vpop.xlane.xlu1 %4706  ;;  %v4749_v5 = vmul.f32 %v7412_v6, %v9159_v41 }
 0xda1   : > { %v4765_v23 = vpack.c.bf16 %v4751_v9, %v4750_v22 }
 0xdaf   : > { %4730 = vadd.xlane.f32.xlu1 %v4729_v26 }
 0xdb1   : > { %4727 = vadd.xlane.f32.xlu0 %v4726_v14 }
 0xdcc   : > { %v4614_v61 = vpop.xlane.xlu0 %4613 }
 0xdcd   : > { %v4644_v50 = vsub.f32 %v9194_v15, %v4614_v61  ;;  %v7414_v15 = vpop.eup %7413 }
 0xdce   : > { %v4617_v31 = vpop.xlane.xlu1 %4616  ;;  %v4748_v11 = vmul.f32 %v7414_v15, %v9155_v53 }
 0xdcf   : > { %v4668_v3 = vmul.f32 1.442695, %v4644_v50  ;;  %v4645_v63 = vsub.f32 %v9197_v28, %v4617_v31 }
 0xdd0   : > { %v4764_v57 = vpack.c.bf16 %v4749_v5, %v4748_v11 }
 0xdd1   : > { %7415 = vpow2.f32 %v4668_v3  ;;  %v4670_v12 = vmul.f32 1.442695, %v4645_v63 }
 0xdd2   : > { %v4820_v19 = vpop.permute.xlu1 %4819 }
 0xdd3   : > { %7417 = vpow2.f32 %v4670_v12  ;;  %6932 = vmatpush3.bf16.msra.mxu0 %v4820_v19 }
 0xdd4   : > { %v4626_v54 = vpop.xlane.xlu0 %4625  ;;  %6943 = vmatprep.subr.bf16.mxu0 %v7601_v44 }
 0xdd5   : > { %v4648_v0 = vsub.f32 %v9203_v16, %v4626_v54  ;;  %v7130_v54 = vld [vmem:[%s9789_s4 + $0x18] sm:$0xff]  }
 0xdd6   : > { %6934 = vmatmul.mubr.msk.bf16.vlgmr.msra.gmra.mrb[156].mxu0 %vm841_vm2, %v4765_v23 }
 0xdd7   : > { %v4676_v21 = vmul.f32 1.442695, %v4648_v0  ;;  %6945 = vmatprep.mubr.msk.bf16.mxu0 %vm7602_vm1, %v7601_v44 }
 0xdd8   : > { %v4773_v28 = vpop.permute.xlu0 %4772 }
 0xdd9   : > { %7419 = vpow2.f32 %v4676_v21  ;;  %6926 = vmatpush3.bf16.msra.mxu1 %v4773_v28 }
 0xdda   : > { %6937 = vmatprep.subr.bf16.mxu1 %v7601_v44  ;;  %7421 = vrcp.f32 %v4707_v42 }
 0xddb   : > { %v9252_v8 = vpop.eup %7415  ;;  %7423 = vrcp.f32 %v4701_v39 }
 0xddc   : > { %6928 = vmatmul.mubr.msk.bf16.vlgmr.msra.gmra.mrb[116].mxu1 %vm841_vm2, %v4764_v57  ;;  %v4708_v41 = vsel %vm841_vm2, %v9252_v8, 0.0  ;;  %7425 = vrcp.f32 %v4704_v45 }
 0xddd   : > { %v9257_v16 = vpop.eup %7417  ;;  %4709 = vadd.xlane.f32.xlu1 %v4708_v41  ;;  %6939 = vmatprep.mubr.msk.bf16.mxu1 %vm7602_vm1, %v7601_v44  ;;  %7427 = vrcp.f32 %v4698_v47 }
 0xdde   : > { %v4711_v53 = vsel %vm841_vm2, %v9257_v16, 0.0 }
 0xddf   : > { %4712 = vadd.xlane.f32.xlu0 %v4711_v53 }
 0xde3   : > { %v9263_v18 = vpop.eup %7419 }
 0xde4   : > { %v4720_v59 = vsel %vm841_vm2, %v9263_v18, 0.0  ;;  %v7422_v30 = vpop.eup %7421 }
 0xde5   : > { %4721 = vadd.xlane.f32.xlu1 %v4720_v59  ;;  %v7424_v56 = vpop.eup %7423 }
 0xde6   : > { %v7426_v34 = vpop.eup %7425  ;;  %v4753_v27 = vmul.f32 %v7424_v56, %v9179_v49 }
 0xde7   : > { %v7428_v24 = vpop.eup %7427 }
 0xdf6   : > { %5007 = vrot.lane.b32.xlu1 %v8069_v36, %s7608_s28  ;;  %v4755_v36 = vmul.f32 %v7422_v30, %v9187_v35 }
 0xdfa   : > { %5054 = vrot.lane.b32.xlu1 %v8079_v58, %s7608_s28 }
 0xdfe   : > { %5101 = vrot.lane.b32.xlu1 %v8089_v7, %s7608_s28  ;;  %v4754_v7 = vmul.f32 %v7426_v34, %v9183_v40 }
 0xe00   : > { %v4767_v60 = vpack.c.bf16 %v4755_v36, %v4754_v7 }
 0xe03   : > { %v4629_v37 = vpop.xlane.xlu1 %4628 }
 0xe04   : > { %v4649_v4 = vsub.f32 %v9214_v55, %v4629_v37  ;;  %v4752_v55 = vmul.f32 %v7428_v24, %v9175_v33 }
 0xe06   : > { %v4678_v48 = vmul.f32 1.442695, %v4649_v4  ;;  %v4766_v35 = vpack.c.bf16 %v4753_v27, %v4752_v55 }
 0xe07   : > { %v4719_v20 = vpop.xlane.xlu1 %4718 }
 0xe08   : > { %7429 = vpow2.f32 %v4678_v48 }
 0xe09   : > { %7431 = vrcp.f32 %v4719_v20  ;;  %v4716_v58 = vpop.xlane.xlu0 %4715 }
 0xe0a   : > { %7433 = vrcp.f32 %v4716_v58 }
 0xe0b   : > { %v4914_v26 = vpop.permute.xlu1 %4913 }
 0xe0c   : > { %6944 = vmatpush3.bf16.msra.mxu0 %v4914_v26 }
 0xe0d   : > { %v4867_v14 = vpop.permute.xlu0 %4866  ;;  %6955 = vmatprep.subr.bf16.mxu0 %v7601_v44 }
 0xe0e   : > { %6938 = vmatpush3.bf16.msra.mxu1 %v4867_v14 }
 0xe0f   : > { %6946 = vmatmul.mubr.msk.bf16.vlgmr.msra.gmra.mrb[160].mxu0 %vm841_vm2, %v4767_v60  ;;  %6949 = vmatprep.subr.bf16.mxu1 %v7601_v44 }
 0xe10   : > { %6957 = vmatprep.mubr.msk.bf16.mxu0 %vm7602_vm1, %v7601_v44 }
 0xe11   : > { %6940 = vmatmul.mubr.msk.bf16.vlgmr.msra.gmra.mrb[120].mxu1 %vm841_vm2, %v4766_v35 }
 0xe12   : > { %v7430_v49 = vpop.eup %7429  ;;  %6951 = vmatprep.mubr.msk.bf16.mxu1 %vm7602_vm1, %v7601_v44 }
 0xe13   : > { %v7432_v33 = vpop.eup %7431  ;;  %v4723_v40 = vsel %vm841_vm2, %v7430_v49, 0.0 }
 0xe14   : > { %v7434_v25 = vpop.eup %7433  ;;  %4724 = vadd.xlane.f32.xlu0 %v4723_v40  ;;  %v4759_v1 = vmul.f32 %v7432_v33, %v9218_v2 }
 0xe15   : > { %v4758_v52 = vmul.f32 %v7434_v25, %v9220_v29 }
 0xe17   : > { %v4769_v47 = vpack.c.bf16 %v4759_v1, %v4758_v52 }
 0xe2a   : > { %4960 = vrot.lane.b32.xlu0 %v8059_v38, %s7608_s28  ;;  %s7529_s28 = scalar_lea.vmem %s9736_s21, 2048 }
 0xe2b   : > { %p7530_p6 = scmp.ne.s32.totalorder %s9736_s21, %s7529_s28 }
 0xe2d   : > { %p7531_p12 = pnand %p7530_p6, %p9803_p11 }
 0xe2f   : > { %p7532_p13 = pneg %p7531_p12 }
 0xe3c   : > { %v4731_v39 = vpop.xlane.xlu1 %4730 }
 0xe3e   : > { %v4728_v45 = vpop.xlane.xlu0 %4727 }
 0xe3f   : > { %7435 = vrcp.f32 %v4728_v45 }
 0xe40   : > { %7437 = vrcp.f32 %v4731_v39 }
 0xe49   : > { %v7436_v50 = vpop.eup %7435 }
 0xe4a   : > { %v7438_v2 = vpop.eup %7437  ;;  %v4762_v38 = vmul.f32 %v7436_v50, %v9234_v32 }
 0xe4b   : > { %v4763_v29 = vmul.f32 %v7438_v2, %v9232_v13 }
 0xe4d   : > { %v4771_v3 = vpack.c.bf16 %v4763_v29, %v4762_v38 }
 0xe6a   : > { %v4710_v42 = vpop.xlane.xlu1 %4709 }
 0xe6c   : > { %v4713_v63 = vpop.xlane.xlu0 %4712 }
 0xe6d   : > { %7439 = vrcp.f32 %v4713_v63 }
 0xe6e   : > { %7441 = vrcp.f32 %v4710_v42 }
 0xe72   : > { %v4722_v61 = vpop.xlane.xlu1 %4721 }
 0xe73   : > { %7443 = vrcp.f32 %v4722_v61 }
 0xe76   : > { %v5008_v10 = vpop.permute.xlu1 %5007 }
 0xe77   : > { %6956 = vmatpush3.bf16.msra.mxu0 %v5008_v10  ;;  %v7440_v9 = vpop.eup %7439 }
 0xe78   : > { %6967 = vmatprep.subr.bf16.mxu0 %v7601_v44  ;;  %v7442_v22 = vpop.eup %7441  ;;  %v4757_v19 = vmul.f32 %v7440_v9, %v9257_v16  ;;  %v7483_v9 = vld [vmem:[%s7778_s23] sm:$0xff] }
 0xe79   : > { %v4756_v32 = vmul.f32 %v7442_v22, %v9252_v8 }
 0xe7a   : > { %v5055_v31 = vpop.permute.xlu1 %5054  ;;  %6958 = vmatmul.mubr.msk.bf16.vlgmr.msra.gmra.mrb[164].mxu0 %vm841_vm2, %v4769_v47 }
 0xe7b   : > { %6969 = vmatprep.mubr.msk.bf16.mxu0 %vm7602_vm1, %v7601_v44  ;;  %v4768_v6 = vpack.c.bf16 %v4757_v19, %v4756_v32  ;;  %v7484_v19 = vld [vmem:[%s7778_s23 + $0x10] sm:$0xff] }
 0xe7d   : > { %v7444_v15 = vpop.eup %7443 }
 0xe7e   : > { %v5102_v51 = vpop.permute.xlu1 %5101  ;;  %v4760_v57 = vmul.f32 %v7444_v15, %v9263_v18 }
 0xe7f   : > { %6968 = vmatpush3.bf16.msra.mxu0 %v5102_v51 }
 0xe82   : > { %6970 = vmatmul.mubr.msk.bf16.vlgmr.msra.gmra.mrb[168].mxu0 %vm841_vm2, %v4771_v3 }
 0xe83   : > { %5650 = vmatprep.mubr.bf16.mxu0 %v7600_v62 }
 0xea1   : > { %v4725_v12 = vpop.xlane.xlu0 %4724 }
 0xea2   : > { %7445 = vrcp.f32 %v4725_v12 }
 0xea5   : > { %v4961_v13 = vpop.permute.xlu0 %4960 }
 0xea6   : > { %6950 = vmatpush3.bf16.msra.mxu1 %v4961_v13 }
 0xea7   : > { %6961 = vmatprep.subr.bf16.mxu1 %v7601_v44 }
 0xea9   : > { %v4859_v23 = vpop.f32.mrb[156].mxu0  ;;  %6952 = vmatmul.mubr.msk.bf16.vlgmr.msra.gmra.mrb[124].mxu1 %vm841_vm2, %v4768_v6  ;;  %v7485_v6 = vld [vmem:[%s7778_s23 + $0x8] sm:$0xff] }
 0xeaa   : > { %v6935_v0 = vpop.f32.mrb[157].mxu0  ;;  %6962 = vmatpush3.bf16.msra.mxu1 %v5055_v31  ;;  %6963 = vmatprep.mubr.msk.bf16.mxu1 %vm7602_vm1, %v7601_v44  ;;  %v9321_v31 = vld [vmem:[%s9790_s5] ss:$0 sm:$0xff] }
 0xeab   : > { %v4862_v5 = vpop.f32.mrb[158].mxu0  ;;  %6973 = vmatprep.subr.bf16.mxu1 %v7130_v54  ;;  %v7486_v0 = vld [vmem:[%s7778_s23 + $0x18] sm:$0xff] }
 0xeac   : > { %v7446_v21 = vpop.eup %7445  ;;  %v5149_v11 = vpack.c.bf16 %v4862_v5, %v4859_v23  ;;  %v6936_v28 = vpop.f32.mrb[159].mxu0 }
 0xead   : > { %v4761_v8 = vmul.f32 %v7446_v21, %v7430_v49 }
 0xeaf   : > { %v4812_v41 = vpop.f32.mrb[116].mxu1  ;;  %v4770_v16 = vpack.c.bf16 %v4761_v8, %v4760_v57 }
 0xeb0   : > { %v6929_v53 = vpop.f32.mrb[117].mxu1 }
 0xeb1   : > { %v4815_v59 = vpop.f32.mrb[118].mxu1  ;;  %6964 = vmatmul.mubr.msk.bf16.vlgmr.msra.gmra.mrb[128].mxu1 %vm841_vm2, %v4770_v16 }
 0xeb2   : > { %v5148_v37 = vpack.c.bf16 %v4815_v59, %v4812_v41  ;;  %v6930_v4 = vpop.f32.mrb[119].mxu1  ;;  %6974 = vmatpush3.bf16.msra.mxu1 %v7130_v54  ;;  %v7487_v59 = vld [vmem:[%s7778_s23 + $0x20] sm:$0xff] }
 0xeb4   : > { %6975 = vmatprep.mubr.msk.bf16.mxu1 %vm841_vm2, %v5148_v37 }
 0xeb9   : > { %6976 = vmatmul.mubr.msk.bf16.vlgmr.msra.gmra.mrb[44].mxu1 %vm841_vm2, %v5149_v11 }
 0xee2   : > { %v4953_v44 = vpop.f32.mrb[160].mxu0 }
 0xee3   : > { %v6947_v30 = vpop.f32.mrb[161].mxu0 }
 0xee4   : > { %v4906_v48 = vpop.f32.mrb[120].mxu1  ;;  %v4956_v56 = vpop.f32.mrb[162].mxu0  ;;  %v7488_v30 = vld [vmem:[%s7778_s23 + $0x30] sm:$0xff] }
 0xee5   : > { %v5151_v20 = vpack.c.bf16 %v4956_v56, %v4953_v44  ;;  %v6941_v18 = vpop.f32.mrb[121].mxu1  ;;  %v6948_v34 = vpop.f32.mrb[163].mxu0  ;;  %v7489_v56 = vld [vmem:[%s7778_s23 + $0x28] sm:$0xff] }
 0xee6   : > { %v4909_v36 = vpop.f32.mrb[122].mxu1  ;;  %v7490_v34 = vld [vmem:[%s7778_s23 + $0x38] sm:$0xff] }
 0xee7   : > { %v5150_v58 = vpack.c.bf16 %v4909_v36, %v4906_v48  ;;  %v6942_v24 = vpop.f32.mrb[123].mxu1 }
 0xee9   : > { %6979 = vmatprep.mubr.msk.bf16.mxu1 %vm841_vm2, %v5150_v58 }
 0xeea   : > { %6980 = vmatmul.mubr.msk.bf16.gmra.mrb[48].mxu1 %vm841_vm2, %v5151_v20 }
 0xf4d   : > { %v5047_v27 = vpop.f32.mrb[164].mxu0 }
 0xf4e   : > { %v6959_v7 = vpop.f32.mrb[165].mxu0 }
 0xf4f   : > { %v5050_v26 = vpop.f32.mrb[166].mxu0 }
 0xf50   : > { %v5153_v55 = vpack.c.bf16 %v5050_v26, %v5047_v27  ;;  %v6960_v14 = vpop.f32.mrb[167].mxu0 }
 0xf55   : > { %v5141_v60 = vpop.f32.mrb[168].mxu0 }
 0xf56   : > { %v6971_v35 = vpop.f32.mrb[169].mxu0 }
 0xf57   : > { %v5144_v49 = vpop.f32.mrb[170].mxu0 }
 0xf58   : > { %v5155_v33 = vpack.c.bf16 %v5144_v49, %v5141_v60  ;;  %v6972_v40 = vpop.f32.mrb[171].mxu0 }
 0xf59   : > { %v7491_v40 = vld [vmem:[%s7778_s23 + $0x40] sm:$0xff] }
 0xf7c   : > { %v5000_v25 = vpop.f32.mrb[124].mxu1 }
 0xf7d   : > { %v6953_v1 = vpop.f32.mrb[125].mxu1 }
 0xf7e   : > { %v5003_v52 = vpop.f32.mrb[126].mxu1 }
 0xf7f   : > { %v5152_v47 = vpack.c.bf16 %v5003_v52, %v5000_v25  ;;  %v6954_v39 = vpop.f32.mrb[127].mxu1 }
 0xf81   : > { %6983 = vmatprep.mubr.msk.bf16.mxu1 %vm841_vm2, %v5152_v47  ;;  %v7492_v47 = vld [vmem:[%s7778_s23 + $0x50] sm:$0xff] }
 0xf82   : > { %6984 = vmatmul.mubr.msk.bf16.gmra.mrb[52].mxu1 %vm841_vm2, %v5153_v55 }
 0xf84   : > { %v5094_v45 = vpop.f32.mrb[128].mxu1 }
 0xf85   : > { %v6965_v42 = vpop.f32.mrb[129].mxu1 }
 0xf86   : > { %v5097_v61 = vpop.f32.mrb[130].mxu1 }
 0xf87   : > { %v5154_v10 = vpack.c.bf16 %v5097_v61, %v5094_v45  ;;  %v6966_v50 = vpop.f32.mrb[131].mxu1  ;;  %v7493_v45 = vld [vmem:[%s7778_s23 + $0x48] sm:$0xff] }
 0xf88   : > { %v7494_v50 = vld [vmem:[%s7778_s23 + $0x58] sm:$0xff] }
 0xf89   : > { %6987 = vmatprep.mubr.msk.bf16.mxu1 %vm841_vm2, %v5154_v10 }
 0xf8a   : > { %6988 = vmatmul.mubr.msk.bf16.gmra.mrb[56].mxu1 %vm841_vm2, %v5155_v33 }
 0xf8c   : > { %v6977_v2 = vpop.f32.mrb[44].mxu1 }
 0xf8d   : > { %v5223_v38 = vpop.f32.mrb[45].mxu1  ;;  %v6991_v29 = vadd.f32 %v6977_v2, %v9321_v31 }
 0xf8e   : > { %v6992_v51 = vadd.f32 %v9321_v31, %v5223_v38  ;;  %v6978_v3 = vpop.f32.mrb[46].mxu1 }
 0xf8f   : > { %v5226_v63 = vpop.f32.mrb[47].mxu1  ;;  %v9330_v32 = vadd.f32 %v7484_v19, %v6991_v29  ;;  %v6993_v13 = vadd.f32 %v6978_v3, %v9321_v31 }
 0xf90   : > { %v9326_v12 = vadd.f32 %v7483_v9, %v6992_v51  ;;  %v6994_v22 = vadd.f32 %v9321_v31, %v5226_v63 }
 0xf91   : > { %v9341_v5 = vadd.f32 %v7486_v0, %v6993_v13  ;;  %v5324_v21 = vsel %vm398_vm0, %v9330_v32, 0.0 }
 0xf92   : > { %v9334_v54 = vadd.f32 %v7485_v6, %v6994_v22  ;;  %v5318_v23 = vsel %vm398_vm0, %v9326_v12, 0.0 }
 0xf93   : > { %5319 = vadd.xlane.f32.xlu0 %v5318_v23  ;;  %v5327_v11 = vsel %vm398_vm0, %v9341_v5, 0.0 }
 0xf94   : > { %v5321_v15 = vsel %vm398_vm0, %v9334_v54, 0.0 }
 0xf95   : > { %5322 = vadd.xlane.f32.xlu1 %v5321_v15  ;;  %v7495_v15 = vld [vmem:[%s7778_s23 + $0x60] sm:$0xff] }
 0xf97   : > { %5325 = vadd.xlane.f32.xlu0 %v5324_v21 }
 0xf9b   : > { %5328 = vadd.xlane.f32.xlu0 %v5327_v11 }
 0xfbd   : > { %v6981_v28 = vpop.f32.mrb[48].mxu1 }
 0xfbe   : > { %v5239_v57 = vpop.f32.mrb[49].mxu1  ;;  %v6995_v8 = vadd.f32 %v6981_v28, %v9321_v31 }
 0xfbf   : > { %v6996_v41 = vadd.f32 %v9321_v31, %v5239_v57  ;;  %v6982_v16 = vpop.f32.mrb[50].mxu1 }
 0xfc0   : > { %v5242_v53 = vpop.f32.mrb[51].mxu1  ;;  %v6997_v4 = vadd.f32 %v6982_v16, %v9321_v31  ;;  %v9355_v48 = vadd.f32 %v7488_v30, %v6995_v8  ;;  %v7496_v16 = vld [vmem:[%s7778_s23 + $0x70] sm:$0xff] }
 0xfc1   : > { %v9350_v37 = vadd.f32 %v7487_v59, %v6996_v41  ;;  %v6998_v44 = vadd.f32 %v9321_v31, %v5242_v53  ;;  %v7497_v59 = vld [vmem:[%s7778_s23 + $0x68] sm:$0xff] }
 0xfc2   : > { %v9363_v36 = vadd.f32 %v7490_v34, %v6997_v4  ;;  %v5336_v24 = vsel %vm398_vm0, %v9355_v48, 0.0 }
 0xfc3   : > { %v9358_v20 = vadd.f32 %v7489_v56, %v6998_v44  ;;  %v5330_v18 = vsel %vm398_vm0, %v9350_v37, 0.0 }
 0xfc4   : > { %5331 = vadd.xlane.f32.xlu0 %v5330_v18  ;;  %v5339_v27 = vsel %vm398_vm0, %v9363_v36, 0.0  ;;  %v7498_v18 = vld [vmem:[%s7778_s23 + $0x78] sm:$0xff]  ;;  %s7535_s23 = scalar_lea.vmem %s7534_s24, 4096 }
 0xfc5   : > { %v5333_v58 = vsel %vm398_vm0, %v9358_v20, 0.0  ;;  %p7537_p10 = scmp.lt.s32.totalorder %s7535_s23, %s7529_s28 }
 0xfc6   : > { %5334 = vadd.xlane.f32.xlu1 %v5333_v58 }
 0xfc7   : > { %p7538_p0 = por %p7537_p10, %p7536_p8 }
 0xfc8   : > { %5337 = vadd.xlane.f32.xlu0 %v5336_v24 }
 0xfc9   : > { %p7539_p2 = pnand %p7538_p0, %p7532_p13 }
 0xfca   : > { %5340 = vadd.xlane.f32.xlu1 %v5339_v27 }
0x1020   : > { %v5320_v7 = vpop.xlane.xlu0 %5319 }
0x1021   : > { %v5366_v51 = vmul.f32 0.015625, %v5320_v7 }
0x1022   : > { %v5323_v10 = vpop.xlane.xlu1 %5322 }
0x1023   : > { %v5367_v6 = vmul.f32 0.015625, %v5323_v10  ;;  %v9403_v57 = vsub.f32 %v9326_v12, %v5366_v51 }
0x1024   : > { %v5326_v49 = vpop.xlane.xlu0 %5325 }
0x1025   : > { %v5368_v41 = vmul.f32 0.015625, %v5326_v49 }
0x1027   : > { %v9422_v24 = vsub.f32 %v9330_v32, %v5368_v41  ;;  %v7139_v41 = vld [vmem:[%s9791_s6 + $0x24] ss:$8 sps:$4 sm:$0xff]  }
0x1028   : > { %v5329_v3 = vpop.xlane.xlu0 %5328 }
0x1029   : > { %v5369_v56 = vmul.f32 0.015625, %v5329_v3 }
0x1051   : > { %v5332_v8 = vpop.xlane.xlu0 %5331 }
0x1052   : > { %v5370_v27 = vmul.f32 0.015625, %v5332_v8  ;;  %v7134_v8 = vld [vmem:[%s9791_s6 + $0x10] ss:$8 sps:$4 sm:$0xff]  }
0x1053   : > { %v5335_v30 = vpop.xlane.xlu1 %5334 }
0x1055   : > { %v6985_v26 = vpop.f32.mrb[52].mxu1 }
0x1056   : > { %v5255_v55 = vpop.f32.mrb[53].mxu1  ;;  %v6999_v14 = vadd.f32 %v6985_v26, %v9321_v31  ;;  %v5398_v26 = vmul.f32 %v9403_v57, %v9403_v57 }
0x1057   : > { %v7000_v60 = vadd.f32 %v9321_v31, %v5255_v55  ;;  %v6986_v35 = vpop.f32.mrb[54].mxu1  ;;  %v5338_v55 = vpop.xlane.xlu0 %5337 }
0x1058   : > { %v5258_v33 = vpop.f32.mrb[55].mxu1  ;;  %v7001_v1 = vadd.f32 %v6986_v35, %v9321_v31  ;;  %v9379_v39 = vadd.f32 %v7492_v47, %v6999_v14  ;;  %v9429_v14 = vsub.f32 %v9341_v5, %v5369_v56  ;;  %v5400_v47 = vmul.f32 %v9422_v24, %v9422_v24 }
0x1059   : > { %v9374_v25 = vadd.f32 %v7491_v40, %v7000_v60  ;;  %v7002_v52 = vadd.f32 %v9321_v31, %v5258_v33  ;;  %v5371_v60 = vmul.f32 0.015625, %v5335_v30  ;;  %v5341_v33 = vpop.xlane.xlu1 %5340  ;;  %v9436_v40 = vsub.f32 %v9350_v37, %v5370_v27 }
0x105a   : > { %v9387_v2 = vadd.f32 %v7494_v50, %v7001_v1  ;;  %v5348_v13 = vsel %vm398_vm0, %v9379_v39, 0.0  ;;  %v5372_v1 = vmul.f32 0.015625, %v5338_v55  ;;  %v5401_v50 = vmul.f32 %v9429_v14, %v9429_v14 }
0x105b   : > { %v9382_v42 = vadd.f32 %v7493_v45, %v7002_v52  ;;  %v5342_v61 = vsel %vm398_vm0, %v9374_v25, 0.0  ;;  %v5414_v52 = vsel %vm398_vm0, %v5398_v26, 0.0  ;;  %v9442_v45 = vsub.f32 %v9358_v20, %v5371_v60 }
0x105c   : > { %5343 = vadd.xlane.f32.xlu0 %v5342_v61  ;;  %v5351_v28 = vsel %vm398_vm0, %v9387_v2, 0.0  ;;  %v5373_v61 = vmul.f32 0.015625, %v5341_v33  ;;  %v5402_v51 = vmul.f32 %v9436_v40, %v9436_v40 }
0x105d   : > { %v6989_v38 = vpop.f32.mrb[56].mxu1  ;;  %v5345_v29 = vsel %vm398_vm0, %v9382_v42, 0.0 }
0x105e   : > { %5346 = vadd.xlane.f32.xlu1 %v5345_v29  ;;  %v5271_v63 = vpop.f32.mrb[57].mxu1  ;;  %v7003_v9 = vadd.f32 %v6989_v38, %v9321_v31  ;;  %v9448_v38 = vsub.f32 %v9355_v48, %v5372_v1  ;;  %v5420_v29 = vsel %vm398_vm0, %v5400_v47, 0.0  ;;  %v9454_v3 = vsub.f32 %v9363_v36, %v5373_v61 }
0x105f   : > { %v7004_v22 = vadd.f32 %v9321_v31, %v5271_v63  ;;  %v6990_v19 = vpop.f32.mrb[58].mxu1  ;;  %v5423_v63 = vsel %vm398_vm0, %v5401_v50, 0.0 }
0x1060   : > { %5349 = vadd.xlane.f32.xlu0 %v5348_v13  ;;  %v5274_v23 = vpop.f32.mrb[59].mxu1  ;;  %v7005_v21 = vadd.f32 %v6990_v19, %v9321_v31  ;;  %v9406_v53 = vadd.f32 %v7496_v16, %v7003_v9  ;;  %v5403_v9 = vmul.f32 %v9442_v45, %v9442_v45  ;;  %v5404_v19 = vmul.f32 %v9448_v38, %v9448_v38  ;;  %v7137_v16 = vld [vmem:[%s9791_s6 + $0x20] ss:$8 sps:$4 sm:$0xff]  }
0x1061   : > { %v9396_v0 = vadd.f32 %v7495_v15, %v7004_v22  ;;  %v7006_v11 = vadd.f32 %v9321_v31, %v5274_v23  ;;  %v9414_v31 = vsub.f32 %v9334_v54, %v5367_v6  ;;  %v5426_v22 = vsel %vm398_vm0, %v5402_v51, 0.0 }
0x1062   : > { %5352 = vadd.xlane.f32.xlu1 %v5351_v28  ;;  %v9417_v34 = vadd.f32 %v7498_v18, %v7005_v21  ;;  %v5360_v7 = vsel %vm398_vm0, %v9406_v53, 0.0  ;;  %v5429_v13 = vsel %vm398_vm0, %v5403_v9, 0.0  ;;  %v5405_v6 = vmul.f32 %v9454_v3, %v9454_v3  ;;  %v7133_v21 = vld [vmem:[%s9791_s6 + $0x4] ss:$8 sps:$4 sm:$0xff]   ;;  %v7136_v28 = vld [vmem:[%s9791_s6 + $0x14] ss:$8 sps:$4 sm:$0xff]  }
0x1063   : > { %v9409_v4 = vadd.f32 %v7497_v59, %v7006_v11  ;;  %v5354_v44 = vsel %vm398_vm0, %v9396_v0, 0.0  ;;  %v5399_v49 = vmul.f32 %v9414_v31, %v9414_v31  ;;  %v5432_v23 = vsel %vm398_vm0, %v5404_v19, 0.0  ;;  %v7131_v11 = vld [vmem:[%s9791_s6] ss:$8 sps:$4 sm:$0xff]   ;;  %5618 = vmatprep.subr.bf16.mxu0 %v7133_v21  ;;  %v7142_v59 = vld [vmem:[%s9791_s6 + $0x34] ss:$8 sps:$4 sm:$0xff]  }
0x1064   : > { %5355 = vadd.xlane.f32.xlu0 %v5354_v44  ;;  %v5363_v35 = vsel %vm398_vm0, %v9417_v34, 0.0  ;;  %v5435_v15 = vsel %vm398_vm0, %v5405_v6, 0.0  ;;  %5619 = vmatpush1.bf16.msra.mxu0 %v7131_v11  ;;  %v7140_v44 = vld [vmem:[%s9791_s6 + $0x30] ss:$8 sps:$4 sm:$0xff]  }
0x1065   : > { %v5357_v58 = vsel %vm398_vm0, %v9409_v4, 0.0  ;;  %v5417_v10 = vsel %vm398_vm0, %v5399_v49, 0.0  ;;  %5620 = vmatprep.subr.bf16.mxu0 %v7136_v28 }
0x1066   : > { %5358 = vadd.xlane.f32.xlu1 %v5357_v58 }
0x1068   : > { %5361 = vadd.xlane.f32.xlu0 %v5360_v7  ;;  %5621 = vmatpush1.bf16.msra.mxu0 %v7134_v8 }
0x1069   : > { %5622 = vmatprep.subr.bf16.mxu0 %v7139_v41 }
0x106a   : > { %5364 = vadd.xlane.f32.xlu1 %v5363_v35 }
0x106c   : > { %5415 = vadd.xlane.f32.xlu0 %v5414_v52  ;;  %5623 = vmatpush1.bf16.msra.mxu0 %v7137_v16 }
0x106d   : > { %5624 = vmatprep.subr.bf16.mxu0 %v7142_v59 }
0x106e   : > { %5418 = vadd.xlane.f32.xlu1 %v5417_v10 }
0x1070   : > { %5421 = vadd.xlane.f32.xlu0 %v5420_v29  ;;  %5625 = vmatpush1.bf16.msra.mxu0 %v7140_v44 }
0x1072   : > { %5424 = vadd.xlane.f32.xlu1 %v5423_v63 }
0x1074   : > { %5427 = vadd.xlane.f32.xlu0 %v5426_v22 }
0x1076   : > { %5430 = vadd.xlane.f32.xlu1 %v5429_v13 }
0x1078   : > { %5433 = vadd.xlane.f32.xlu0 %v5432_v23 }
0x107a   : > { %5436 = vadd.xlane.f32.xlu1 %v5435_v15 }
0x10e9   : > { %v5344_v30 = vpop.xlane.xlu0 %5343 }
0x10ea   : > { %v5374_v56 = vmul.f32 0.015625, %v5344_v30 }
0x10eb   : > { %v5347_v18 = vpop.xlane.xlu1 %5346 }
0x10ec   : > { %v9492_v58 = vsub.f32 %v9374_v25, %v5374_v56  ;;  %v5375_v27 = vmul.f32 0.015625, %v5347_v18 }
0x10ed   : > { %v5350_v7 = vpop.xlane.xlu0 %5349 }
0x10ee   : > { %v9495_v26 = vsub.f32 %v9382_v42, %v5375_v27  ;;  %v5376_v55 = vmul.f32 0.015625, %v5350_v7  ;;  %v5406_v60 = vmul.f32 %v9492_v58, %v9492_v58 }
0x10ef   : > { %v5353_v35 = vpop.xlane.xlu1 %5352 }
0x10f0   : > { %v9500_v49 = vsub.f32 %v9379_v39, %v5376_v55  ;;  %v5377_v33 = vmul.f32 0.015625, %v5353_v35  ;;  %v5438_v1 = vsel %vm398_vm0, %v5406_v60, 0.0  ;;  %v5407_v52 = vmul.f32 %v9495_v26, %v9495_v26 }
0x10f1   : > { %5439 = vadd.xlane.f32.xlu0 %v5438_v1  ;;  %v5356_v47 = vpop.xlane.xlu0 %5355 }
0x10f2   : > { %v9506_v61 = vsub.f32 %v9387_v2, %v5377_v33  ;;  %v5378_v10 = vmul.f32 0.015625, %v5356_v47  ;;  %v5441_v50 = vsel %vm398_vm0, %v5407_v52, 0.0  ;;  %v5408_v29 = vmul.f32 %v9500_v49, %v9500_v49 }
0x10f3   : > { %5442 = vadd.xlane.f32.xlu1 %v5441_v50  ;;  %v5359_v51 = vpop.xlane.xlu1 %5358 }
0x10f4   : > { %v9512_v63 = vsub.f32 %v9396_v0, %v5378_v10  ;;  %v5379_v9 = vmul.f32 0.015625, %v5359_v51  ;;  %v5444_v22 = vsel %vm398_vm0, %v5408_v29, 0.0  ;;  %v5409_v19 = vmul.f32 %v9506_v61, %v9506_v61 }
0x10f5   : > { %5445 = vadd.xlane.f32.xlu0 %v5444_v22  ;;  %v5362_v13 = vpop.xlane.xlu0 %5361 }
0x10f6   : > { %v9518_v6 = vsub.f32 %v9409_v4, %v5379_v9  ;;  %v5380_v23 = vmul.f32 0.015625, %v5362_v13  ;;  %v5447_v15 = vsel %vm398_vm0, %v5409_v19, 0.0  ;;  %v5410_v21 = vmul.f32 %v9512_v63, %v9512_v63 }
0x10f7   : > { %5448 = vadd.xlane.f32.xlu1 %v5447_v15  ;;  %v5365_v11 = vpop.xlane.xlu1 %5364 }
0x10f8   : > { %v9524_v28 = vsub.f32 %v9406_v53, %v5380_v23  ;;  %v5381_v8 = vmul.f32 0.015625, %v5365_v11  ;;  %v5450_v41 = vsel %vm398_vm0, %v5410_v21, 0.0  ;;  %v5411_v16 = vmul.f32 %v9518_v6, %v9518_v6 }
0x10f9   : > { %5451 = vadd.xlane.f32.xlu0 %v5450_v41  ;;  %v5416_v59 = vpop.xlane.xlu0 %5415 }
0x10fa   : > { %v9530_v44 = vsub.f32 %v9417_v34, %v5381_v8  ;;  %v5462_v30 = vmul.f32 0.015625, %v5416_v59  ;;  %v5453_v56 = vsel %vm398_vm0, %v5411_v16, 0.0  ;;  %v5412_v18 = vmul.f32 %v9524_v28, %v9524_v28 }
0x10fb   : > { %5454 = vadd.xlane.f32.xlu1 %v5453_v56  ;;  %v5419_v27 = vpop.xlane.xlu1 %5418 }
0x10fc   : > { %v5478_v7 = vadd.f32 1e-05, %v5462_v30  ;;  %v5463_v55 = vmul.f32 0.015625, %v5419_v27  ;;  %v5456_v60 = vsel %vm398_vm0, %v5412_v18, 0.0  ;;  %v5413_v35 = vmul.f32 %v9530_v44, %v9530_v44 }
0x10fd   : > { %5457 = vadd.xlane.f32.xlu0 %v5456_v60  ;;  %v5422_v33 = vpop.xlane.xlu0 %5421 }
0x10fe   : > { %7447 = vrsqrt.f32 %v5478_v7  ;;  %v5479_v1 = vadd.f32 1e-05, %v5463_v55  ;;  %v5464_v52 = vmul.f32 0.015625, %v5422_v33  ;;  %v5459_v47 = vsel %vm398_vm0, %v5413_v35, 0.0 }
0x10ff   : > { %5460 = vadd.xlane.f32.xlu1 %v5459_v47  ;;  %v5425_v10 = vpop.xlane.xlu1 %5424 }
0x1100   : > { %7449 = vrsqrt.f32 %v5479_v1  ;;  %v5465_v50 = vmul.f32 0.015625, %v5425_v10  ;;  %v5480_v29 = vadd.f32 1e-05, %v5464_v52 }
0x1101   : > { %v5428_v9 = vpop.xlane.xlu0 %5427 }
0x1102   : > { %v5481_v51 = vadd.f32 1e-05, %v5465_v50  ;;  %v5466_v13 = vmul.f32 0.015625, %v5428_v9  ;;  %v7145_v9 = vld [vmem:[%s9793_s8 + $0x48] sm:$0xff]  }
0x1103   : > { %v5431_v22 = vpop.xlane.xlu1 %5430 }
0x1104   : > { %7451 = vrsqrt.f32 %v5481_v51  ;;  %v5467_v19 = vmul.f32 0.015625, %v5431_v22  ;;  %v5482_v8 = vadd.f32 1e-05, %v5466_v13  ;;  %v7148_v22 = vld [vmem:[%s9793_s8 + $0x10] sm:$0xff]   ;;  %v7150_v13 = vld [vmem:[%s9793_s8 + $0x18] sm:$0xff]  }
0x1105   : > { %7453 = vrsqrt.f32 %v5480_v29  ;;  %v5434_v59 = vpop.xlane.xlu0 %5433 }
0x1106   : > { %v5483_v15 = vadd.f32 1e-05, %v5467_v19  ;;  %v5468_v27 = vmul.f32 0.015625, %v5434_v59  ;;  %v7149_v19 = vld [vmem:[%s9793_s8 + $0x58] sm:$0xff]  }
0x1107   : > { %v5437_v21 = vpop.xlane.xlu1 %5436  ;;  %v7158_v59 = vld [vmem:[%s9793_s8 + $0x38] sm:$0xff]  }
0x1108   : > { %v7448_v23 = vpop.eup %7447  ;;  %7455 = vrsqrt.f32 %v5483_v15  ;;  %v5469_v30 = vmul.f32 0.015625, %v5437_v21  ;;  %v5484_v35 = vadd.f32 1e-05, %v5468_v27  ;;  %v7152_v15 = vld [vmem:[%s9793_s8 + $0x20] sm:$0xff]   ;;  %v7153_v21 = vld [vmem:[%s9793_s8 + $0x68] sm:$0xff]  }
0x1109   : > { %v5510_v41 = vmul.f32 %v7448_v23, %v9403_v57  ;;  %7457 = vrsqrt.f32 %v5482_v8  ;;  %v7151_v23 = vld [vmem:[%s9793_s8 + $0x60] sm:$0xff]   ;;  %v7155_v8 = vld [vmem:[%s9793_s8 + $0x70] sm:$0xff]  }
0x110a   : > { %v7450_v11 = vpop.eup %7449  ;;  %v5485_v55 = vadd.f32 1e-05, %v5469_v30 }
0x110b   : > { %v5511_v16 = vmul.f32 %v7450_v11, %v9414_v31  ;;  %v7154_v11 = vld [vmem:[%s9793_s8 + $0x28] sm:$0xff]  }
0x110c   : > { %7459 = vrsqrt.f32 %v5485_v55 }
0x110d   : > { %v5526_v56 = vpack.c.bf16 %v5511_v16, %v5510_v41  ;;  %7461 = vrsqrt.f32 %v5484_v35  ;;  %v7156_v41 = vld [vmem:[%s9793_s8 + $0x30] sm:$0xff]   ;;  %v7157_v16 = vld [vmem:[%s9793_s8 + $0x78] sm:$0xff]  }
0x110e   : > { %v7452_v18 = vpop.eup %7451 }
0x110f   : > { %6272 = vmatmul.mubr.msk.bf16.vlgmr.msra.gmra.mrb[172].mxu0 %vm398_vm0, %v5526_v56  ;;  %v7454_v7 = vpop.eup %7453  ;;  %v5513_v60 = vmul.f32 %v7452_v18, %v9429_v14 }
0x1110   : > { %5660 = vmatprep.mubr.bf16.mxu0 %v7600_v62  ;;  %v5512_v57 = vmul.f32 %v7454_v7, %v9422_v24 }
0x1112   : > { %v5527_v31 = vpack.c.bf16 %v5513_v60, %v5512_v57  ;;  %v7456_v33 = vpop.eup %7455 }
0x1113   : > { %v7458_v1 = vpop.eup %7457  ;;  %v5515_v52 = vmul.f32 %v7456_v33, %v9442_v45  ;;  %v7144_v45 = vld [vmem:[%s9793_s8] sm:$0xff]  }
0x1114   : > { %v5514_v47 = vmul.f32 %v7458_v1, %v9436_v40  ;;  %v7143_v40 = vld [vmem:[%s9793_s8 + $0x40] sm:$0xff]  }
0x1115   : > { %6471 = vmatprep.subr.bf16.mxu1 %v7143_v40 }
0x1116   : > { %v5528_v10 = vpack.c.bf16 %v5515_v52, %v5514_v47  ;;  %v7460_v50 = vpop.eup %7459  ;;  %6472 = vmatpush3.bf16.msra.mxu1 %v7144_v45 }
0x1117   : > { %6273 = vmatmul.mubr.msk.bf16.gmra.mrb[176].mxu0 %vm398_vm0, %v5527_v31  ;;  %v7462_v14 = vpop.eup %7461  ;;  %v5517_v24 = vmul.f32 %v7460_v50, %v9454_v3  ;;  %6473 = vmatprep.subr.bf16.mxu1 %v7145_v9  ;;  %v7147_v3 = vld [vmem:[%s9793_s8 + $0x50] sm:$0xff]  }
0x1118   : > { %5670 = vmatprep.mubr.bf16.mxu0 %v7600_v62  ;;  %v5516_v29 = vmul.f32 %v7462_v14, %v9448_v38  ;;  %v7146_v38 = vld [vmem:[%s9793_s8 + $0x8] sm:$0xff]  }
0x111a   : > { %v5529_v51 = vpack.c.bf16 %v5517_v24, %v5516_v29  ;;  %6474 = vmatpush3.bf16.msra.mxu1 %v7146_v38 }
0x111b   : > { %6475 = vmatprep.subr.bf16.mxu1 %v7147_v3 }
0x111e   : > { %6476 = vmatpush3.bf16.msra.mxu1 %v7148_v22 }
0x111f   : > { %6274 = vmatmul.mubr.msk.bf16.gmra.mrb[180].mxu0 %vm398_vm0, %v5528_v10  ;;  %6477 = vmatprep.subr.bf16.mxu1 %v7149_v19 }
0x1120   : > { %5680 = vmatprep.mubr.bf16.mxu0 %v7600_v62 }
0x1122   : > { %6478 = vmatpush3.bf16.msra.mxu1 %v7150_v13 }
0x1123   : > { %6479 = vmatprep.subr.bf16.mxu1 %v7151_v23 }
0x1126   : > { %6480 = vmatpush3.bf16.msra.mxu1 %v7152_v15 }
0x1127   : > { %6275 = vmatmul.mubr.msk.bf16.gmra.mrb[184].mxu0 %vm398_vm0, %v5529_v51  ;;  %6481 = vmatprep.subr.bf16.mxu1 %v7153_v21 }
0x1128   : > { %5690 = vmatprep.mubr.bf16.mxu0 %v7600_v62 }
0x112a   : > { %6482 = vmatpush3.bf16.msra.mxu1 %v7154_v11 }
0x112b   : > { %6483 = vmatprep.subr.bf16.mxu1 %v7155_v8 }
0x112e   : > { %6484 = vmatpush3.bf16.msra.mxu1 %v7156_v41 }
0x112f   : > { %6485 = vmatprep.subr.bf16.mxu1 %v7157_v16 }
0x1132   : > { %6486 = vmatpush3.bf16.msra.mxu1 %v7158_v59 }
0x117e   : > { %v5440_v30 = vpop.xlane.xlu0 %5439 }
0x117f   : > { %v5470_v56 = vmul.f32 0.015625, %v5440_v30 }
0x1180   : > { %v5443_v18 = vpop.xlane.xlu1 %5442 }
0x1181   : > { %v5486_v27 = vadd.f32 1e-05, %v5470_v56  ;;  %v5471_v7 = vmul.f32 0.015625, %v5443_v18 }
0x1182   : > { %v5446_v55 = vpop.xlane.xlu0 %5445 }
0x1183   : > { %7463 = vrsqrt.f32 %v5486_v27  ;;  %v5487_v60 = vadd.f32 1e-05, %v5471_v7  ;;  %v5472_v35 = vmul.f32 0.015625, %v5446_v55 }
0x1184   : > { %v5449_v57 = vpop.xlane.xlu1 %5448 }
0x1185   : > { %7465 = vrsqrt.f32 %v5487_v60  ;;  %v5473_v31 = vmul.f32 0.015625, %v5449_v57  ;;  %v5488_v33 = vadd.f32 1e-05, %v5472_v35 }
0x1186   : > { %v5452_v52 = vpop.xlane.xlu0 %5451 }
0x1187   : > { %v5489_v1 = vadd.f32 1e-05, %v5473_v31  ;;  %v5474_v50 = vmul.f32 0.015625, %v5452_v52 }
0x1188   : > { %v5455_v47 = vpop.xlane.xlu1 %5454 }
0x1189   : > { %7467 = vrsqrt.f32 %v5489_v1  ;;  %v5475_v10 = vmul.f32 0.015625, %v5455_v47  ;;  %v5490_v40 = vadd.f32 1e-05, %v5474_v50 }
0x118a   : > { %7469 = vrsqrt.f32 %v5488_v33  ;;  %v5458_v45 = vpop.xlane.xlu0 %5457 }
0x118b   : > { %v5491_v24 = vadd.f32 1e-05, %v5475_v10  ;;  %v5476_v13 = vmul.f32 0.015625, %v5458_v45 }
0x118c   : > { %v5461_v29 = vpop.xlane.xlu1 %5460 }
0x118d   : > { %v7464_v14 = vpop.eup %7463  ;;  %7471 = vrsqrt.f32 %v5491_v24  ;;  %v5477_v3 = vmul.f32 0.015625, %v5461_v29  ;;  %v5492_v11 = vadd.f32 1e-05, %v5476_v13 }
0x118e   : > { %v5518_v9 = vmul.f32 %v7464_v14, %v9492_v58  ;;  %7473 = vrsqrt.f32 %v5490_v40 }
0x118f   : > { %v7466_v51 = vpop.eup %7465  ;;  %v5493_v15 = vadd.f32 1e-05, %v5477_v3 }
0x1190   : > { %v5519_v38 = vmul.f32 %v7466_v51, %v9495_v26 }
0x1191   : > { %7475 = vrsqrt.f32 %v5493_v15 }
0x1192   : > { %v5530_v22 = vpack.c.bf16 %v5519_v38, %v5518_v9  ;;  %7477 = vrsqrt.f32 %v5492_v11 }
0x1193   : > { %v7468_v19 = vpop.eup %7467 }
0x1194   : > { %6276 = vmatmul.mubr.msk.bf16.gmra.mrb[188].mxu0 %vm398_vm0, %v5530_v22  ;;  %v7470_v23 = vpop.eup %7469  ;;  %v5521_v21 = vmul.f32 %v7468_v19, %v9506_v61 }
0x1195   : > { %5700 = vmatprep.mubr.bf16.mxu0 %v7600_v62  ;;  %v5520_v8 = vmul.f32 %v7470_v23, %v9500_v49 }
0x1197   : > { %v5531_v58 = vpack.c.bf16 %v5521_v21, %v5520_v8  ;;  %v7472_v26 = vpop.eup %7471 }
0x1198   : > { %v7474_v41 = vpop.eup %7473  ;;  %v5523_v16 = vmul.f32 %v7472_v26, %v9518_v6  ;;  %v5542_v6 = vld [vmem:[%s9792_s7] sm:$0x3] }
0x1199   : > { %v5522_v59 = vmul.f32 %v7474_v41, %v9512_v63  ;;  %v9623_v63 = vrot.slane %v5542_v6, %v628_v17  ;;  %v9627_v7 = vrot.slane %v5542_v6, %v632_v46 }
0x119b   : > { %v5532_v30 = vpack.c.bf16 %v5523_v16, %v5522_v59  ;;  %v7476_v56 = vpop.eup %7475 }
0x119c   : > { %6277 = vmatmul.mubr.msk.bf16.gmra.mrb[192].mxu0 %vm398_vm0, %v5531_v58  ;;  %v7478_v61 = vpop.eup %7477  ;;  %v5525_v49 = vmul.f32 %v7476_v56, %v9530_v44 }
0x119d   : > { %5710 = vmatprep.mubr.bf16.mxu0 %v7600_v62  ;;  %v5524_v18 = vmul.f32 %v7478_v61, %v9524_v28 }
0x119f   : > { %v5533_v27 = vpack.c.bf16 %v5525_v49, %v5524_v18 }
0x11a4   : > { %6278 = vmatmul.mubr.msk.bf16.gmra.mrb[196].mxu0 %vm398_vm0, %v5532_v30 }
0x11a5   : > { %5720 = vmatprep.mubr.bf16.mxu0 %v7600_v62 }
0x11ac   : > { %6279 = vmatmul.mubr.msk.bf16.gmra.mrb[200].mxu0 %vm398_vm0, %v5533_v27 }
0x11e2   : > { %v5652_v62 = vpop.f32.mrb[172].mxu0 }
0x11e3   : > { %v5653_v44 = vadd.f32 %v5652_v62, %v9623_v63  ;;  %v5654_v55 = vpop.f32.mrb[173].mxu0 }
0x11e4   : > { %v5655_v28 = vadd.f32 %v5654_v55, %v9627_v7  ;;  %v5656_v60 = vpop.f32.mrb[174].mxu0 }
0x11e5   : > { %v5657_v35 = vadd.f32 %v5656_v60, %v9623_v63  ;;  %v5658_v57 = vpop.f32.mrb[175].mxu0  ;;  %v5731_v33 = vmax.f32 %v5653_v44, 0.0 }
0x11e6   : > { %v5659_v31 = vadd.f32 %v5658_v57, %v9627_v7  ;;  %v5732_v17 = vmax.f32 %v5655_v28, 0.0 }
0x11e7   : > { %v5733_v1 = vmax.f32 %v5657_v35, 0.0 }
0x11e8   : > { %v5734_v52 = vmax.f32 %v5659_v31, 0.0 }
0x11e9   : > { %v5763_v47 = vpack.c.bf16 %v5733_v1, %v5731_v33 }
0x11ea   : > { %v5764_v43 = vpack.c.bf16 %v5734_v52, %v5732_v17  ;;  %v5662_v46 = vpop.f32.mrb[176].mxu0 }
0x11eb   : > { %v5663_v10 = vadd.f32 %v5662_v46, %v9623_v63  ;;  %v5664_v50 = vpop.f32.mrb[177].mxu0 }
0x11ec   : > { %v5665_v14 = vadd.f32 %v5664_v50, %v9627_v7  ;;  %v5666_v24 = vpop.f32.mrb[178].mxu0  ;;  %5946 = vmatprep.mubr.bf16.mxu1 %v5764_v43 }
0x11ed   : > { %v5667_v29 = vadd.f32 %v5666_v24, %v9623_v63  ;;  %v5668_v51 = vpop.f32.mrb[179].mxu0  ;;  %5947 = vmatmul.mubr.bf16.vlgmr.msra.gmra.mrb[132].mxu1 %v5763_v47  ;;  %v5735_v45 = vmax.f32 %v5663_v10, 0.0 }
0x11ee   : > { %v5669_v40 = vadd.f32 %v5668_v51, %v9627_v7  ;;  %v5736_v38 = vmax.f32 %v5665_v14, 0.0 }
0x11ef   : > { %v5737_v9 = vmax.f32 %v5667_v29, 0.0 }
0x11f0   : > { %v5738_v3 = vmax.f32 %v5669_v40, 0.0 }
0x11f1   : > { %v5765_v22 = vpack.c.bf16 %v5737_v9, %v5735_v45 }
0x11f2   : > { %v5766_v19 = vpack.c.bf16 %v5738_v3, %v5736_v38  ;;  %v5672_v13 = vpop.f32.mrb[180].mxu0 }
0x11f3   : > { %v5673_v23 = vadd.f32 %v5672_v13, %v9623_v63  ;;  %v5674_v15 = vpop.f32.mrb[181].mxu0 }
0x11f4   : > { %v5675_v21 = vadd.f32 %v5674_v15, %v9627_v7  ;;  %v5676_v11 = vpop.f32.mrb[182].mxu0  ;;  %5954 = vmatprep.mubr.bf16.mxu1 %v5766_v19 }
0x11f5   : > { %v5677_v8 = vadd.f32 %v5676_v11, %v9623_v63  ;;  %v5678_v58 = vpop.f32.mrb[183].mxu0  ;;  %5955 = vmatmul.mubr.bf16.gmra.mrb[136].mxu1 %v5765_v22  ;;  %v5739_v41 = vmax.f32 %v5673_v23, 0.0 }
0x11f6   : > { %v5679_v26 = vadd.f32 %v5678_v58, %v9627_v7  ;;  %v5740_v59 = vmax.f32 %v5675_v21, 0.0 }
0x11f7   : > { %v5741_v16 = vmax.f32 %v5677_v8, 0.0 }
0x11f8   : > { %v5742_v30 = vmax.f32 %v5679_v26, 0.0 }
0x11f9   : > { %v5767_v56 = vpack.c.bf16 %v5741_v16, %v5739_v41 }
0x11fa   : > { %v5768_v61 = vpack.c.bf16 %v5742_v30, %v5740_v59  ;;  %v5682_v49 = vpop.f32.mrb[184].mxu0 }
0x11fb   : > { %v5683_v18 = vadd.f32 %v5682_v49, %v9623_v63  ;;  %v5684_v27 = vpop.f32.mrb[185].mxu0 }
0x11fc   : > { %v5685_v6 = vadd.f32 %v5684_v27, %v9627_v7  ;;  %v5686_v62 = vpop.f32.mrb[186].mxu0  ;;  %5962 = vmatprep.mubr.bf16.mxu1 %v5768_v61 }
0x11fd   : > { %v5687_v44 = vadd.f32 %v5686_v62, %v9623_v63  ;;  %v5688_v55 = vpop.f32.mrb[187].mxu0  ;;  %5963 = vmatmul.mubr.bf16.gmra.mrb[140].mxu1 %v5767_v56  ;;  %v5743_v60 = vmax.f32 %v5683_v18, 0.0 }
0x11fe   : > { %v5689_v28 = vadd.f32 %v5688_v55, %v9627_v7  ;;  %v5744_v57 = vmax.f32 %v5685_v6, 0.0 }
0x11ff   : > { %v5745_v35 = vmax.f32 %v5687_v44, 0.0 }
0x1200   : > { %v5746_v31 = vmax.f32 %v5689_v28, 0.0 }
0x1201   : > { %v5769_v33 = vpack.c.bf16 %v5745_v35, %v5743_v60 }
0x1202   : > { %v5770_v1 = vpack.c.bf16 %v5746_v31, %v5744_v57 }
0x1204   : > { %5970 = vmatprep.mubr.bf16.mxu1 %v5770_v1 }
0x1205   : > { %5971 = vmatmul.mubr.bf16.gmra.mrb[144].mxu1 %v5769_v33 }
0x1267   : > { %v5692_v17 = vpop.f32.mrb[188].mxu0 }
0x1268   : > { %v5693_v52 = vadd.f32 %v5692_v17, %v9623_v63  ;;  %v5694_v47 = vpop.f32.mrb[189].mxu0 }
0x1269   : > { %v5695_v43 = vadd.f32 %v5694_v47, %v9627_v7  ;;  %v5696_v46 = vpop.f32.mrb[190].mxu0 }
0x126a   : > { %v5697_v10 = vadd.f32 %v5696_v46, %v9623_v63  ;;  %v5698_v50 = vpop.f32.mrb[191].mxu0  ;;  %v5747_v24 = vmax.f32 %v5693_v52, 0.0 }
0x126b   : > { %v5699_v14 = vadd.f32 %v5698_v50, %v9627_v7  ;;  %v5748_v51 = vmax.f32 %v5695_v43, 0.0 }
0x126c   : > { %v5749_v29 = vmax.f32 %v5697_v10, 0.0 }
0x126d   : > { %v5750_v40 = vmax.f32 %v5699_v14, 0.0 }
0x126e   : > { %v5771_v45 = vpack.c.bf16 %v5749_v29, %v5747_v24 }
0x126f   : > { %v5772_v9 = vpack.c.bf16 %v5750_v40, %v5748_v51  ;;  %v5702_v38 = vpop.f32.mrb[192].mxu0  ;;  %v9664_v40 = vld [vmem:[%s9794_s9] ss:$0 sm:$0xff] }
0x1270   : > { %v5703_v3 = vadd.f32 %v5702_v38, %v9623_v63  ;;  %v5704_v22 = vpop.f32.mrb[193].mxu0 }
0x1271   : > { %v5705_v19 = vadd.f32 %v5704_v22, %v9627_v7  ;;  %v5706_v13 = vpop.f32.mrb[194].mxu0  ;;  %5978 = vmatprep.mubr.bf16.mxu1 %v5772_v9 }
0x1272   : > { %v5707_v23 = vadd.f32 %v5706_v13, %v9623_v63  ;;  %v5708_v15 = vpop.f32.mrb[195].mxu0  ;;  %5979 = vmatmul.mubr.bf16.gmra.mrb[148].mxu1 %v5771_v45  ;;  %v5751_v11 = vmax.f32 %v5703_v3, 0.0 }
0x1273   : > { %v5709_v21 = vadd.f32 %v5708_v15, %v9627_v7  ;;  %v5752_v58 = vmax.f32 %v5705_v19, 0.0 }
0x1274   : > { %v5753_v8 = vmax.f32 %v5707_v23, 0.0 }
0x1275   : > { %v5754_v26 = vmax.f32 %v5709_v21, 0.0 }
0x1276   : > { %v5773_v41 = vpack.c.bf16 %v5753_v8, %v5751_v11 }
0x1277   : > { %v5774_v16 = vpack.c.bf16 %v5754_v26, %v5752_v58  ;;  %v5712_v59 = vpop.f32.mrb[196].mxu0 }
0x1278   : > { %v5713_v30 = vadd.f32 %v5712_v59, %v9623_v63  ;;  %v5714_v56 = vpop.f32.mrb[197].mxu0 }
0x1279   : > { %v5715_v61 = vadd.f32 %v5714_v56, %v9627_v7  ;;  %v5716_v49 = vpop.f32.mrb[198].mxu0  ;;  %5986 = vmatprep.mubr.bf16.mxu1 %v5774_v16 }
0x127a   : > { %v5717_v18 = vadd.f32 %v5716_v49, %v9623_v63  ;;  %v5718_v27 = vpop.f32.mrb[199].mxu0  ;;  %5987 = vmatmul.mubr.bf16.gmra.mrb[152].mxu1 %v5773_v41  ;;  %v5755_v62 = vmax.f32 %v5713_v30, 0.0 }
0x127b   : > { %v5719_v6 = vadd.f32 %v5718_v27, %v9627_v7  ;;  %v5756_v55 = vmax.f32 %v5715_v61, 0.0 }
0x127c   : > { %v5757_v44 = vmax.f32 %v5717_v18, 0.0 }
0x127d   : > { %v5758_v28 = vmax.f32 %v5719_v6, 0.0 }
0x127e   : > { %v5775_v60 = vpack.c.bf16 %v5757_v44, %v5755_v62 }
0x127f   : > { %v5776_v35 = vpack.c.bf16 %v5758_v28, %v5756_v55  ;;  %v5722_v57 = vpop.f32.mrb[200].mxu0 }
0x1280   : > { %v5723_v31 = vadd.f32 %v5722_v57, %v9623_v63  ;;  %v5724_v33 = vpop.f32.mrb[201].mxu0 }
0x1281   : > { %v5725_v1 = vadd.f32 %v5724_v33, %v9627_v7  ;;  %v5726_v17 = vpop.f32.mrb[202].mxu0  ;;  %5994 = vmatprep.mubr.bf16.mxu1 %v5776_v35 }
0x1282   : > { %v5727_v52 = vadd.f32 %v5726_v17, %v9623_v63  ;;  %v5728_v47 = vpop.f32.mrb[203].mxu0  ;;  %5995 = vmatmul.mubr.bf16.gmra.mrb[156].mxu1 %v5775_v60  ;;  %v5759_v46 = vmax.f32 %v5723_v31, 0.0 }
0x1283   : > { %v5729_v43 = vadd.f32 %v5728_v47, %v9627_v7  ;;  %v5760_v50 = vmax.f32 %v5725_v1, 0.0 }
0x1284   : > { %v5761_v10 = vmax.f32 %v5727_v52, 0.0 }
0x1285   : > { %v5762_v14 = vmax.f32 %v5729_v43, 0.0 }
0x1286   : > { %v5777_v24 = vpack.c.bf16 %v5761_v10, %v5759_v46 }
0x1287   : > { %v5778_v29 = vpack.c.bf16 %v5762_v14, %v5760_v50 }
0x1289   : > { %6002 = vmatprep.mubr.bf16.mxu1 %v5778_v29 }
0x128a   : > { %6003 = vmatmul.mubr.bf16.gmra.mrb[160].mxu1 %v5777_v24 }
0x12c0   : > { %v6487_v51 = vpop.f32.mrb[132].mxu1 }
0x12c1   : > { %v6488_v63 = vpop.f32.mrb[133].mxu1 }
0x12c2   : > { %v6489_v45 = vadd.f32 %v6488_v63, %v6487_v51  ;;  %v6490_v9 = vpop.f32.mrb[134].mxu1 }
0x12c3   : > { %v6491_v38 = vpop.f32.mrb[135].mxu1 }
0x12c4   : > { %v5949_v7 = vadd.f32 %v6489_v45, %v9664_v40  ;;  %v6492_v3 = vadd.f32 %v6491_v38, %v6490_v9 }
0x12c6   : > { %v6011_v22 = vadd.f32 %v5949_v7, %v9326_v12  ;;  %v5952_v19 = vadd.f32 %v6492_v3, %v9664_v40 }
0x12c8   : > { %6027 = vst.msk [vmem:[%s9671_s20] sm:$0xff] %vm398_vm0, %v6011_v22  ;;  %v6012_v13 = vadd.f32 %v5952_v19, %v9334_v54  ;;  %v6493_v23 = vpop.f32.mrb[136].mxu1 }
0x12c9   : > { %v6494_v15 = vpop.f32.mrb[137].mxu1 }
0x12ca   : > { %6028 = vst.msk [vmem:[%s9671_s20 + $0x8] sm:$0xff] %vm398_vm0, %v6012_v13  ;;  %v6495_v21 = vadd.f32 %v6494_v15, %v6493_v23  ;;  %v6496_v11 = vpop.f32.mrb[138].mxu1 }
0x12cb   : > { %v6497_v12 = vpop.f32.mrb[139].mxu1 }
0x12cc   : > { %v5957_v8 = vadd.f32 %v6495_v21, %v9664_v40  ;;  %v6498_v58 = vadd.f32 %v6497_v12, %v6496_v11 }
0x12ce   : > { %v6013_v26 = vadd.f32 %v5957_v8, %v9330_v32  ;;  %v5960_v41 = vadd.f32 %v6498_v58, %v9664_v40 }
0x12d0   : > { %6029 = vst.msk [vmem:[%s9671_s20 + $0x10] sm:$0xff] %vm398_vm0, %v6013_v26  ;;  %v6014_v54 = vadd.f32 %v5960_v41, %v9341_v5  ;;  %v6499_v16 = vpop.f32.mrb[140].mxu1 }
0x12d1   : > { %v6500_v59 = vpop.f32.mrb[141].mxu1 }
0x12d2   : > { %6030 = vst.msk [vmem:[%s9671_s20 + $0x18] sm:$0xff] %vm398_vm0, %v6014_v54  ;;  %v6501_v30 = vadd.f32 %v6500_v59, %v6499_v16  ;;  %v6502_v56 = vpop.f32.mrb[142].mxu1 }
0x12d3   : > { %v6503_v61 = vpop.f32.mrb[143].mxu1 }
0x12d4   : > { %v5965_v49 = vadd.f32 %v6501_v30, %v9664_v40  ;;  %v6504_v18 = vadd.f32 %v6503_v61, %v6502_v56 }
0x12d6   : > { %v6015_v32 = vadd.f32 %v5965_v49, %v9350_v37  ;;  %v5968_v27 = vadd.f32 %v6504_v18, %v9664_v40 }
0x12d8   : > { %6031 = vst.msk [vmem:[%s9671_s20 + $0x20] sm:$0xff] %vm398_vm0, %v6015_v32  ;;  %v6016_v5 = vadd.f32 %v5968_v27, %v9358_v20  ;;  %v6505_v6 = vpop.f32.mrb[144].mxu1 }
0x12d9   : > { %v6506_v62 = vpop.f32.mrb[145].mxu1 }
0x12da   : > { %6032 = vst.msk [vmem:[%s9671_s20 + $0x28] sm:$0xff] %vm398_vm0, %v6016_v5  ;;  %v6507_v44 = vadd.f32 %v6506_v62, %v6505_v6  ;;  %v6508_v55 = vpop.f32.mrb[146].mxu1 }
0x12db   : > { %v6509_v28 = vpop.f32.mrb[147].mxu1 }
0x12dc   : > { %v5973_v60 = vadd.f32 %v6507_v44, %v9664_v40  ;;  %v6510_v35 = vadd.f32 %v6509_v28, %v6508_v55 }
0x12de   : > { %v6017_v37 = vadd.f32 %v5973_v60, %v9355_v48  ;;  %v5976_v57 = vadd.f32 %v6510_v35, %v9664_v40 }
0x12e0   : > { %6033 = vst.msk [vmem:[%s9671_s20 + $0x30] sm:$0xff] %vm398_vm0, %v6017_v37  ;;  %v6018_v20 = vadd.f32 %v5976_v57, %v9363_v36 }
0x12e2   : > { %6034 = vst.msk [vmem:[%s9671_s20 + $0x38] sm:$0xff] %vm398_vm0, %v6018_v20 }
0x1345   : > { %v6511_v31 = vpop.f32.mrb[148].mxu1 }
0x1346   : > { %v6512_v33 = vpop.f32.mrb[149].mxu1 }
0x1347   : > { %v6513_v1 = vadd.f32 %v6512_v33, %v6511_v31  ;;  %v6514_v17 = vpop.f32.mrb[150].mxu1 }
0x1348   : > { %v6515_v52 = vpop.f32.mrb[151].mxu1 }
0x1349   : > { %v5981_v47 = vadd.f32 %v6513_v1, %v9664_v40  ;;  %v6516_v43 = vadd.f32 %v6515_v52, %v6514_v17 }
0x134b   : > { %v6019_v48 = vadd.f32 %v5981_v47, %v9374_v25  ;;  %v5984_v46 = vadd.f32 %v6516_v43, %v9664_v40 }
0x134d   : > { %6035 = vst.msk [vmem:[%s9671_s20 + $0x40] sm:$0xff] %vm398_vm0, %v6019_v48  ;;  %v6020_v36 = vadd.f32 %v5984_v46, %v9382_v42  ;;  %v6517_v10 = vpop.f32.mrb[152].mxu1 }
0x134e   : > { %v6518_v50 = vpop.f32.mrb[153].mxu1 }
0x134f   : > { %6036 = vst.msk [vmem:[%s9671_s20 + $0x48] sm:$0xff] %vm398_vm0, %v6020_v36  ;;  %v6519_v14 = vadd.f32 %v6518_v50, %v6517_v10  ;;  %v6520_v24 = vpop.f32.mrb[154].mxu1 }
0x1350   : > { %v6521_v29 = vpop.f32.mrb[155].mxu1 }
0x1351   : > { %v5989_v51 = vadd.f32 %v6519_v14, %v9664_v40  ;;  %v6522_v63 = vadd.f32 %v6521_v29, %v6520_v24 }
0x1353   : > { %v6021_v25 = vadd.f32 %v5989_v51, %v9379_v39  ;;  %v5992_v45 = vadd.f32 %v6522_v63, %v9664_v40 }
0x1355   : > { %6037 = vst.msk [vmem:[%s9671_s20 + $0x50] sm:$0xff] %vm398_vm0, %v6021_v25  ;;  %v6022_v42 = vadd.f32 %v5992_v45, %v9387_v2  ;;  %v6523_v9 = vpop.f32.mrb[156].mxu1 }
0x1356   : > { %v6524_v38 = vpop.f32.mrb[157].mxu1 }
0x1357   : > { %6038 = vst.msk [vmem:[%s9671_s20 + $0x58] sm:$0xff] %vm398_vm0, %v6022_v42  ;;  %v6525_v7 = vadd.f32 %v6524_v38, %v6523_v9  ;;  %v6526_v3 = vpop.f32.mrb[158].mxu1 }
0x1358   : > { %v6527_v22 = vpop.f32.mrb[159].mxu1 }
0x1359   : > { %v5997_v19 = vadd.f32 %v6525_v7, %v9664_v40  ;;  %v6528_v13 = vadd.f32 %v6527_v22, %v6526_v3 }
0x135b   : > { %v6023_v39 = vadd.f32 %v5997_v19, %v9396_v0  ;;  %v6000_v23 = vadd.f32 %v6528_v13, %v9664_v40 }
0x135d   : > { %6039 = vst.msk [vmem:[%s9671_s20 + $0x60] sm:$0xff] %vm398_vm0, %v6023_v39  ;;  %v6024_v2 = vadd.f32 %v6000_v23, %v9409_v4  ;;  %v6529_v15 = vpop.f32.mrb[160].mxu1 }
0x135e   : > { %v6530_v21 = vpop.f32.mrb[161].mxu1 }
0x135f   : > { %6040 = vst.msk [vmem:[%s9671_s20 + $0x68] sm:$0xff] %vm398_vm0, %v6024_v2  ;;  %v6531_v11 = vadd.f32 %v6530_v21, %v6529_v15  ;;  %v6532_v12 = vpop.f32.mrb[162].mxu1 }
0x1360   : > { %v6533_v8 = vpop.f32.mrb[163].mxu1 }
0x1361   : > { %v6005_v58 = vadd.f32 %v6531_v11, %v9664_v40  ;;  %v6534_v0 = vadd.f32 %v6533_v8, %v6532_v12 }
0x1363   : > { %v6025_v26 = vadd.f32 %v6005_v58, %v9406_v53  ;;  %v6008_v41 = vadd.f32 %v6534_v0, %v9664_v40 }
0x1365   : > { %6041 = vst.msk [vmem:[%s9671_s20 + $0x70] sm:$0xff] %vm398_vm0, %v6025_v26  ;;  %v6026_v4 = vadd.f32 %v6008_v41, %v9417_v34 }
0x1367   : > { %6042 = vst.msk [vmem:[%s9671_s20 + $0x78] sm:$0xff] %vm398_vm0, %v6026_v4 }
0x1368   : > { %7542 = shalt.err (!%p7539_p2)
}
0x1369   : > { %s7543_s12 = scalar_lea.hbm %s9734_s29, 2048  ;;  %s7547_s11 = scalar_lea.hbm %s9795_s10, 4096 }
0x136a   : > { %p7544_p4 = scmp.ne.s32.totalorder %s9734_s29, %s7543_s12  ;;  %p7548_p9 = scmp.lt.u32.totalorder %s9734_s29, %s9795_s10 }
0x136b   : > { %p7549_p1 = scmp.lt.u32.totalorder %s7547_s11, %s7543_s12  ;;  %p7551_p6 = scmp.lt.u32.totalorder %s7543_s12, %s9734_s29 }
0x136c   : > { %p7545_p5 = pnand %p7544_p4, %p9803_p11 }
0x136d   : > { %p7550_p3 = por %p7549_p1, %p7548_p9 }
0x136e   : > { %p7546_p7 = pneg %p7545_p5 }
0x136f   : > { %p7552_p12 = por %p7551_p6, %p7550_p3 }
0x1371   : > { %p7553_p13 = pnand %p7552_p12, %p7546_p7 }
0x1373   : > { %7556 = shalt.err (!%p7553_p13)
}
0x1374   : > { %s7611_s28 = smov 128   ;;  %s7612_s24 = smov 8  }
0x1375   : > { %7057 = dma.vmem_to_hbm [thread:$0]  (%p9803_p11), %s9736_s21, 2048, %s9734_s29, %s6044_s17, %s7611_s28, %s7611_s28, %s7612_s24  }
0x1376 PF: > { %s6073_s23 = sand.u32 1, %s7583_s13   ;;  %p9804_p8 = scmp.ne.s32.totalorder %s9801_s26, 0 }
0x1377   : > { %p9805_p10 = scmp.ge.s32.totalorder %s7595_s16, 2  ;;  %s6074_s12 = scalar_lea.sflag [#allocation4], %s6073_s23 }
0x1379   : > { %p7064_p0 = pnand %p9805_p10, %p9804_p8 }
0x137b   : > { %7578 = dma.done.wait (!%p7064_p0), %s6074_s12, 2048  }
0x137c   : > { %7580 = vsyncadd (!%p7064_p0), %s6074_s12, 4294965248  ;;  %s9806_s20 = sld [smem:[#allocation8_spill]]  ;;  %p23_p2 = scmp.ge.s32.totalorder %s7693_s19, 4  }
0x137d   : > { %s9807_s13 = smov %s7587_s14  ;;  %s9808_s14 = smov %s7591_s15 }
0x137e   : > { %s9810_s16 = smov %s7693_s19  ;;  %25 = sbr.rel (!%p23_p2) target bundleno = 5 (0x5), region = 108 }
0x1382   : > { %s9809_s15 = smov %s9806_s20 }
0x1385   :  { %6079 = vsyncpa [#allocation3], 1 }
0x1386   :  { %6081 = vsyncpa [#allocation3 + $0x1], 1 }
0x1387   :  { %6082 = vsyncpa [#allocation4], 1 }
0x1388   :  { %6084 = vsyncpa [#allocation4 + $0x1], 1 }

</bundles_post_ra>
